<compile_context>
chip_gen: v6e
topology: v6e:2x2x1
jax: 0.10.0
libtpu: 0.0.40
codegen_flags: <defaults>
</compile_context>

<pallas_src>
import functools
import math

import jax
import jax.numpy as jnp
from jax.experimental import pallas as pl
from jax.experimental.pallas import tpu as pltpu

NP = 8                        # batch padded to one full sublane tile
COMPUTE_DTYPE = jnp.bfloat16  # MXU operand dtype (accumulation is f32)


# ----------------------------- fused Pallas kernel -------------------------

def _dqn_kernel(xs_ref, w1_ref, b1_ref, w2_ref, b2_ref, w3_ref, b3_ref,
                wh1_ref, bh1_ref, wh2_ref, bh2_ref, o_ref,
                *, batch, num_actions, oh1, oh2):
    """Whole DuelingCnnDQN forward on VMEM-resident operands.

    xs_ref : (oh1+1, oh1+1, NP, 16*C) f32  space-to-depth(4) input; dims are
             (block-row p, block-col q, padded batch n, packed (b, b2, c)).
    w*_ref : packed bf16 weight matrices (see pack_params); b*_ref f32 biases.
    o_ref  : (batch, num_actions) f32 Q-values.
    """
    f32 = jnp.float32

    def matmul_bias_relu(x, w_ref, b_ref):
        y = jnp.dot(x.astype(w_ref.dtype), w_ref[...],
                    preferred_element_type=f32) + b_ref[...]
        return jnp.maximum(y, 0.0)

    # ---- conv1: 8x8 stride-4 conv == 2x2 window over the s2d input ---------
    xs = xs_ref[...]
    p1 = jnp.concatenate(
        [xs[a:a + oh1, a2:a2 + oh1, :, :] for a in range(2) for a2 in range(2)],
        axis=-1)                                    # (oh1, oh1, NP, 64*C)
    p1 = p1.reshape(oh1 * oh1 * NP, p1.shape[-1])   # rows = (out_row, out_col, n)
    h1 = matmul_bias_relu(p1, w1_ref, b1_ref)       # (oh1*oh1*NP, 32)

    # ---- conv2: 4x4 stride-2 conv; patches from aligned row-slices ---------
    blk = [[h1[(r * oh1 + s) * NP:(r * oh1 + s) * NP + NP, :]   # (NP, 32)
            for s in range(oh1)] for r in range(oh1)]
    p2 = jnp.concatenate(
        [jnp.concatenate([blk[2 * r + ki][2 * s + kj]
                          for ki in range(4) for kj in range(4)], axis=-1)
         for r in range(oh2) for s in range(oh2)],
        axis=0)                                     # (oh2*oh2*NP, 16*32)
    h2 = matmul_bias_relu(p2, w2_ref, b2_ref)       # (oh2*oh2*NP, 64)

    # ---- conv3: 3x3 stride-1 over the full 3x3 map -> exact dense layer ----
    p3 = jnp.concatenate(
        [h2[i * NP:(i + 1) * NP, :] for i in range(oh2 * oh2)], axis=-1)
    feat = matmul_bias_relu(p3, w3_ref, b3_ref)     # (NP, 64) == torch view(N,-1)

    # ---- dueling heads: lane-dense packed weights + fused combine ----------
    hid = matmul_bias_relu(feat, wh1_ref, bh1_ref)              # (NP, 1024)
    comb = jnp.dot(hid.astype(wh2_ref.dtype), wh2_ref[...],
                   preferred_element_type=f32) + bh2_ref[...]   # (NP, 128)
    adv = comb[:batch, :num_actions]                            # (batch, A)
    val = comb[:batch, num_actions:num_actions + 1]             # (batch, 1)
    # torch: value + advantage - advantage.mean()   (mean over ALL elements)
    o_ref[...] = (val + adv - jnp.mean(adv)).astype(o_ref.dtype)


# --------------------------- host-side weight packing ----------------------

def pack_params(params, num_actions, compute_dtype=COMPUTE_DTYPE):
    """One-time repack of PyTorch-layout params into kernel-ready matrices."""
    c1, c2, c3 = params["c1_w"], params["c2_w"], params["c3_w"]
    oc1, C = c1.shape[0], c1.shape[1]

    # conv1: kernel offset ki = 4a + b, kj = 4a2 + b2; rows ordered
    # (a, a2, b, b2, c) to match the in-kernel (a, a2)-window x (b, b2, c)-lane
    # packing of the space-to-depth input.
    w1m = (c1.reshape(oc1, C, 2, 4, 2, 4)
             .transpose(2, 4, 3, 5, 1, 0)
             .reshape(2 * 2 * 4 * 4 * C, oc1))
    # conv2 / conv3: plain HWIO flatten (matches (ki, kj, c) lane order).
    w2m = c2.transpose(2, 3, 1, 0).reshape(4 * 4 * c2.shape[1], c2.shape[0])
    w3m = c3.transpose(2, 3, 1, 0).reshape(3 * 3 * c3.shape[1], c3.shape[0])

    # dueling heads, packed lane-dense.
    wh1 = jnp.concatenate([params["a1_w"], params["v1_w"]], axis=1)   # (64,1024)
    bh1 = jnp.concatenate([params["a1_b"], params["v1_b"]], axis=0)   # (1024,)
    hdim = params["a1_w"].shape[1]                                    # 512
    A = num_actions
    wh2 = jnp.zeros((2 * hdim, 128), jnp.float32)
    wh2 = wh2.at[:hdim, :A].set(params["a2_w"])
    wh2 = wh2.at[hdim:, A].set(params["v2_w"][:, 0])
    bh2 = jnp.zeros((128,), jnp.float32)
    bh2 = bh2.at[:A].set(params["a2_b"]).at[A].set(params["v2_b"][0])

    cd = compute_dtype
    f32 = jnp.float32
    return {
        "w1": w1m.astype(cd), "b1": params["c1_b"].reshape(1, -1).astype(f32),
        "w2": w2m.astype(cd), "b2": params["c2_b"].reshape(1, -1).astype(f32),
        "w3": w3m.astype(cd), "b3": params["c3_b"].reshape(1, -1).astype(f32),
        "wh1": wh1.astype(cd), "bh1": bh1.reshape(1, -1).astype(f32),
        "wh2": wh2.astype(cd), "bh2": bh2.reshape(1, -1).astype(f32),
    }


# ------------------------------- forward wrapper ---------------------------

@functools.partial(jax.jit, static_argnames=("num_actions",))
def dueling_cnn_dqn_forward(packed, x, num_actions):
    """x: (N, C, H, W) NCHW float32 -> (N, num_actions) Q-values."""
    N, C, H, W = x.shape
    # geometry of the module's conv stack (k=8/s=4, k=4/s=2, k=3/s=1)
    oh1 = (H - 8) // 4 + 1
    oh2 = (oh1 - 4) // 2 + 1
    assert N <= NP, "demo path: batch must fit one padded sublane tile"
    assert H == W and H % 4 == 0 and (H - 8) % 4 == 0, "demo geometry"
    assert oh1 == 2 * oh2 + 2 and (oh2 - 3 + 1) == 1, "demo geometry (1x1 conv3)"

    # space-to-depth (factor 4) + pad batch to a full sublane tile; this is the
    # ONLY per-call host-side layout op (one small fused transpose in XLA).
    xp = jnp.pad(x.astype(jnp.float32), ((0, NP - N), (0, 0), (0, 0), (0, 0)))
    xs = (xp.reshape(NP, C, H // 4, 4, W // 4, 4)
            .transpose(2, 4, 0, 3, 5, 1)
            .reshape(H // 4, W // 4, NP, 16 * C))

    kernel = functools.partial(_dqn_kernel, batch=N, num_actions=num_actions,
                               oh1=oh1, oh2=oh2)
    vmem = pl.BlockSpec(memory_space=pltpu.MemorySpace.VMEM)
    return pl.pallas_call(
        kernel,
        out_shape=jax.ShapeDtypeStruct((N, num_actions), jnp.float32),
        in_specs=[vmem] * 11,
        out_specs=vmem,
    )(xs, packed["w1"], packed["b1"], packed["w2"], packed["b2"],
      packed["w3"], packed["b3"], packed["wh1"], packed["bh1"],
      packed["wh2"], packed["bh2"])


# --------------------------- pure-JAX reference ----------------------------

def ref_forward(params, x):
    def conv(x, w, b, s):
        y = jax.lax.conv_general_dilated(
            x, w, (s, s), "VALID",
            dimension_numbers=("NCHW", "OIHW", "NCHW"))
        return jax.nn.relu(y + b[None, :, None, None])

    h = conv(x, params["c1_w"], params["c1_b"], 4)
    h = conv(h, params["c2_w"], params["c2_b"], 2)
    h = conv(h, params["c3_w"], params["c3_b"], 1)
    feat = h.reshape(h.shape[0], -1)
    a = jax.nn.relu(feat @ params["a1_w"] + params["a1_b"])
    a = a @ params["a2_w"] + params["a2_b"]
    v = jax.nn.relu(feat @ params["v1_w"] + params["v1_b"])
    v = v @ params["v2_w"] + params["v2_b"]
    return v + a - a.mean()


# ------------------------------ param setup --------------------------------

def init_params(key, in_channels, feat_size, num_actions):
    def u(k, shape, fan_in):
        bound = 1.0 / math.sqrt(fan_in)
        return jax.random.uniform(k, shape, jnp.float32, -bound, bound)

    ks = jax.random.split(key, 14)
    p = {}
    # conv weights in PyTorch OIHW layout
    p["c1_w"] = u(ks[0], (32, in_channels, 8, 8), in_channels * 8 * 8)
    p["c1_b"] = u(ks[1], (32,), in_channels * 8 * 8)
    p["c2_w"] = u(ks[2], (64, 32, 4, 4), 32 * 4 * 4)
    p["c2_b"] = u(ks[3], (64,), 32 * 4 * 4)
    p["c3_w"] = u(ks[4], (64, 64, 3, 3), 64 * 3 * 3)
    p["c3_b"] = u(ks[5], (64,), 64 * 3 * 3)
    # linear weights stored matmul-ready as (in, out)
    p["a1_w"] = u(ks[6], (feat_size, 512), feat_size)
    p["a1_b"] = u(ks[7], (512,), feat_size)
    p["a2_w"] = u(ks[8], (512, num_actions), 512)
    p["a2_b"] = u(ks[9], (num_actions,), 512)
    p["v1_w"] = u(ks[10], (feat_size, 512), feat_size)
    p["v1_b"] = u(ks[11], (512,), feat_size)
    p["v2_w"] = u(ks[12], (512, 1), 512)
    p["v2_b"] = u(ks[13], (1,), 512)
    return p


# ---------------------------------- main -----------------------------------

if __name__ == "__main__":
    # Small shapes consistent with the module's conv stack:
    # 36x36 -> conv(8,s4) -> 8x8 -> conv(4,s2) -> 3x3 -> conv(3,s1) -> 1x1
    batch, in_channels, H, W = 2, 4, 36, 36
    num_actions = 4
    feat_size = 64 * 1 * 1  # == module.feature_size() for (4, 36, 36)

    key = jax.random.PRNGKey(0)
    k_param, k_x = jax.random.split(key)
    params = init_params(k_param, in_channels, feat_size, num_actions)
    x = jax.random.normal(k_x, (batch, in_channels, H, W), jnp.float32)

    packed = pack_params(params, num_actions)
    q = dueling_cnn_dqn_forward(packed, x, num_actions)
    q = jax.block_until_ready(q)

    q_ref = ref_forward(params, x)
    assert q.shape == (batch, num_actions)
    # bf16 MXU operands with f32 accumulation -> allow a few 1e-2 of slack.
    assert jnp.allclose(q, q_ref, rtol=3e-2, atol=3e-2), (q, q_ref)

    print("KERNEL_OK")
</pallas_src>

<mosaic_0001>
module attributes {stable_mosaic.version = 11 : i64} {
  func.func @_dqn_kernel(%arg0: memref<9x9x8x64xf32, #tpu.memory_space<vmem>>, %arg1: memref<256x32xbf16, #tpu.memory_space<vmem>>, %arg2: memref<1x32xf32, #tpu.memory_space<vmem>>, %arg3: memref<512x64xbf16, #tpu.memory_space<vmem>>, %arg4: memref<1x64xf32, #tpu.memory_space<vmem>>, %arg5: memref<576x64xbf16, #tpu.memory_space<vmem>>, %arg6: memref<1x64xf32, #tpu.memory_space<vmem>>, %arg7: memref<64x1024xbf16, #tpu.memory_space<vmem>>, %arg8: memref<1x1024xf32, #tpu.memory_space<vmem>>, %arg9: memref<1024x128xbf16, #tpu.memory_space<vmem>>, %arg10: memref<1x128xf32, #tpu.memory_space<vmem>>, %arg11: memref<2x4xf32, #tpu.memory_space<vmem>>) attributes {dimension_semantics = [], scalar_prefetch = 0 : i64, scratch_operands = 0 : i64, tpu.core_type = #tpu.core_type<tc>} {
    %c0 = arith.constant 0 : index
    %c0_0 = arith.constant 0 : index
    %c0_1 = arith.constant 0 : index
    %c0_2 = arith.constant 0 : index
    %0 = vector.load %arg0[%c0, %c0_0, %c0_1, %c0_2] : memref<9x9x8x64xf32, #tpu.memory_space<vmem>>, vector<9x9x8x64xf32>
    %1 = vector.extract_strided_slice %0 {offsets = [0, 0, 0, 0], sizes = [8, 8, 8, 64], strides = [1, 1, 1, 1]} : vector<9x9x8x64xf32> to vector<8x8x8x64xf32>
    %2 = vector.extract_strided_slice %0 {offsets = [0, 1, 0, 0], sizes = [8, 8, 8, 64], strides = [1, 1, 1, 1]} : vector<9x9x8x64xf32> to vector<8x8x8x64xf32>
    %3 = vector.extract_strided_slice %0 {offsets = [1, 0, 0, 0], sizes = [8, 8, 8, 64], strides = [1, 1, 1, 1]} : vector<9x9x8x64xf32> to vector<8x8x8x64xf32>
    %4 = vector.extract_strided_slice %0 {offsets = [1, 1, 0, 0], sizes = [8, 8, 8, 64], strides = [1, 1, 1, 1]} : vector<9x9x8x64xf32> to vector<8x8x8x64xf32>
    %5 = tpu.concatenate %1, %2, %3, %4 in 3 : vector<8x8x8x64xf32>, vector<8x8x8x64xf32>, vector<8x8x8x64xf32>, vector<8x8x8x64xf32> -> vector<8x8x8x256xf32>
    %6 = vector.shape_cast %5 : vector<8x8x8x256xf32> to vector<512x256xf32>
    %7 = arith.truncf %6 : vector<512x256xf32> to vector<512x256xbf16>
    %c0_3 = arith.constant 0 : index
    %c0_4 = arith.constant 0 : index
    %8 = vector.load %arg1[%c0_3, %c0_4] : memref<256x32xbf16, #tpu.memory_space<vmem>>, vector<256x32xbf16>
    %cst = arith.constant dense<0.000000e+00> : vector<512x32xf32>
    %9 = tpu.matmul %7, %8, %cst {dimension_numbers = #tpu.dot_dimension_numbers<[1], [0], [0], [1], [0, 0, 1, 1], [], []>} : vector<512x256xbf16>, vector<256x32xbf16>, vector<512x32xf32> -> vector<512x32xf32>
    %c0_5 = arith.constant 0 : index
    %c0_6 = arith.constant 0 : index
    %10 = vector.load %arg2[%c0_5, %c0_6] : memref<1x32xf32, #tpu.memory_space<vmem>>, vector<1x32xf32>
    %11 = vector.broadcast %10 : vector<1x32xf32> to vector<512x32xf32>
    %12 = arith.addf %9, %11 : vector<512x32xf32>
    %cst_7 = arith.constant 0.000000e+00 : f32
    %13 = vector.broadcast %cst_7 : f32 to vector<512x32xf32>
    %14 = arith.maximumf %12, %13 : vector<512x32xf32>
    %15 = vector.extract_strided_slice %14 {offsets = [0, 0], sizes = [8, 32], strides = [1, 1]} : vector<512x32xf32> to vector<8x32xf32>
    %16 = vector.extract_strided_slice %14 {offsets = [8, 0], sizes = [8, 32], strides = [1, 1]} : vector<512x32xf32> to vector<8x32xf32>
    %17 = vector.extract_strided_slice %14 {offsets = [16, 0], sizes = [8, 32], strides = [1, 1]} : vector<512x32xf32> to vector<8x32xf32>
    %18 = vector.extract_strided_slice %14 {offsets = [24, 0], sizes = [8, 32], strides = [1, 1]} : vector<512x32xf32> to vector<8x32xf32>
    %19 = vector.extract_strided_slice %14 {offsets = [32, 0], sizes = [8, 32], strides = [1, 1]} : vector<512x32xf32> to vector<8x32xf32>
    %20 = vector.extract_strided_slice %14 {offsets = [40, 0], sizes = [8, 32], strides = [1, 1]} : vector<512x32xf32> to vector<8x32xf32>
    %21 = vector.extract_strided_slice %14 {offsets = [48, 0], sizes = [8, 32], strides = [1, 1]} : vector<512x32xf32> to vector<8x32xf32>
    %22 = vector.extract_strided_slice %14 {offsets = [56, 0], sizes = [8, 32], strides = [1, 1]} : vector<512x32xf32> to vector<8x32xf32>
    %23 = vector.extract_strided_slice %14 {offsets = [64, 0], sizes = [8, 32], strides = [1, 1]} : vector<512x32xf32> to vector<8x32xf32>
    %24 = vector.extract_strided_slice %14 {offsets = [72, 0], sizes = [8, 32], strides = [1, 1]} : vector<512x32xf32> to vector<8x32xf32>
    %25 = vector.extract_strided_slice %14 {offsets = [80, 0], sizes = [8, 32], strides = [1, 1]} : vector<512x32xf32> to vector<8x32xf32>
    %26 = vector.extract_strided_slice %14 {offsets = [88, 0], sizes = [8, 32], strides = [1, 1]} : vector<512x32xf32> to vector<8x32xf32>
    %27 = vector.extract_strided_slice %14 {offsets = [96, 0], sizes = [8, 32], strides = [1, 1]} : vector<512x32xf32> to vector<8x32xf32>
    %28 = vector.extract_strided_slice %14 {offsets = [104, 0], sizes = [8, 32], strides = [1, 1]} : vector<512x32xf32> to vector<8x32xf32>
    %29 = vector.extract_strided_slice %14 {offsets = [112, 0], sizes = [8, 32], strides = [1, 1]} : vector<512x32xf32> to vector<8x32xf32>
    %30 = vector.extract_strided_slice %14 {offsets = [120, 0], sizes = [8, 32], strides = [1, 1]} : vector<512x32xf32> to vector<8x32xf32>
    %31 = vector.extract_strided_slice %14 {offsets = [128, 0], sizes = [8, 32], strides = [1, 1]} : vector<512x32xf32> to vector<8x32xf32>
    %32 = vector.extract_strided_slice %14 {offsets = [136, 0], sizes = [8, 32], strides = [1, 1]} : vector<512x32xf32> to vector<8x32xf32>
    %33 = vector.extract_strided_slice %14 {offsets = [144, 0], sizes = [8, 32], strides = [1, 1]} : vector<512x32xf32> to vector<8x32xf32>
    %34 = vector.extract_strided_slice %14 {offsets = [152, 0], sizes = [8, 32], strides = [1, 1]} : vector<512x32xf32> to vector<8x32xf32>
    %35 = vector.extract_strided_slice %14 {offsets = [160, 0], sizes = [8, 32], strides = [1, 1]} : vector<512x32xf32> to vector<8x32xf32>
    %36 = vector.extract_strided_slice %14 {offsets = [168, 0], sizes = [8, 32], strides = [1, 1]} : vector<512x32xf32> to vector<8x32xf32>
    %37 = vector.extract_strided_slice %14 {offsets = [176, 0], sizes = [8, 32], strides = [1, 1]} : vector<512x32xf32> to vector<8x32xf32>
    %38 = vector.extract_strided_slice %14 {offsets = [184, 0], sizes = [8, 32], strides = [1, 1]} : vector<512x32xf32> to vector<8x32xf32>
    %39 = vector.extract_strided_slice %14 {offsets = [192, 0], sizes = [8, 32], strides = [1, 1]} : vector<512x32xf32> to vector<8x32xf32>
    %40 = vector.extract_strided_slice %14 {offsets = [200, 0], sizes = [8, 32], strides = [1, 1]} : vector<512x32xf32> to vector<8x32xf32>
    %41 = vector.extract_strided_slice %14 {offsets = [208, 0], sizes = [8, 32], strides = [1, 1]} : vector<512x32xf32> to vector<8x32xf32>
    %42 = vector.extract_strided_slice %14 {offsets = [216, 0], sizes = [8, 32], strides = [1, 1]} : vector<512x32xf32> to vector<8x32xf32>
    %43 = vector.extract_strided_slice %14 {offsets = [224, 0], sizes = [8, 32], strides = [1, 1]} : vector<512x32xf32> to vector<8x32xf32>
    %44 = vector.extract_strided_slice %14 {offsets = [232, 0], sizes = [8, 32], strides = [1, 1]} : vector<512x32xf32> to vector<8x32xf32>
    %45 = vector.extract_strided_slice %14 {offsets = [240, 0], sizes = [8, 32], strides = [1, 1]} : vector<512x32xf32> to vector<8x32xf32>
    %46 = vector.extract_strided_slice %14 {offsets = [248, 0], sizes = [8, 32], strides = [1, 1]} : vector<512x32xf32> to vector<8x32xf32>
    %47 = vector.extract_strided_slice %14 {offsets = [256, 0], sizes = [8, 32], strides = [1, 1]} : vector<512x32xf32> to vector<8x32xf32>
    %48 = vector.extract_strided_slice %14 {offsets = [264, 0], sizes = [8, 32], strides = [1, 1]} : vector<512x32xf32> to vector<8x32xf32>
    %49 = vector.extract_strided_slice %14 {offsets = [272, 0], sizes = [8, 32], strides = [1, 1]} : vector<512x32xf32> to vector<8x32xf32>
    %50 = vector.extract_strided_slice %14 {offsets = [280, 0], sizes = [8, 32], strides = [1, 1]} : vector<512x32xf32> to vector<8x32xf32>
    %51 = vector.extract_strided_slice %14 {offsets = [288, 0], sizes = [8, 32], strides = [1, 1]} : vector<512x32xf32> to vector<8x32xf32>
    %52 = vector.extract_strided_slice %14 {offsets = [296, 0], sizes = [8, 32], strides = [1, 1]} : vector<512x32xf32> to vector<8x32xf32>
    %53 = vector.extract_strided_slice %14 {offsets = [304, 0], sizes = [8, 32], strides = [1, 1]} : vector<512x32xf32> to vector<8x32xf32>
    %54 = vector.extract_strided_slice %14 {offsets = [312, 0], sizes = [8, 32], strides = [1, 1]} : vector<512x32xf32> to vector<8x32xf32>
    %55 = vector.extract_strided_slice %14 {offsets = [320, 0], sizes = [8, 32], strides = [1, 1]} : vector<512x32xf32> to vector<8x32xf32>
    %56 = vector.extract_strided_slice %14 {offsets = [328, 0], sizes = [8, 32], strides = [1, 1]} : vector<512x32xf32> to vector<8x32xf32>
    %57 = vector.extract_strided_slice %14 {offsets = [336, 0], sizes = [8, 32], strides = [1, 1]} : vector<512x32xf32> to vector<8x32xf32>
    %58 = vector.extract_strided_slice %14 {offsets = [344, 0], sizes = [8, 32], strides = [1, 1]} : vector<512x32xf32> to vector<8x32xf32>
    %59 = vector.extract_strided_slice %14 {offsets = [352, 0], sizes = [8, 32], strides = [1, 1]} : vector<512x32xf32> to vector<8x32xf32>
    %60 = vector.extract_strided_slice %14 {offsets = [360, 0], sizes = [8, 32], strides = [1, 1]} : vector<512x32xf32> to vector<8x32xf32>
    %61 = vector.extract_strided_slice %14 {offsets = [368, 0], sizes = [8, 32], strides = [1, 1]} : vector<512x32xf32> to vector<8x32xf32>
    %62 = vector.extract_strided_slice %14 {offsets = [376, 0], sizes = [8, 32], strides = [1, 1]} : vector<512x32xf32> to vector<8x32xf32>
    %63 = vector.extract_strided_slice %14 {offsets = [384, 0], sizes = [8, 32], strides = [1, 1]} : vector<512x32xf32> to vector<8x32xf32>
    %64 = vector.extract_strided_slice %14 {offsets = [392, 0], sizes = [8, 32], strides = [1, 1]} : vector<512x32xf32> to vector<8x32xf32>
    %65 = vector.extract_strided_slice %14 {offsets = [400, 0], sizes = [8, 32], strides = [1, 1]} : vector<512x32xf32> to vector<8x32xf32>
    %66 = vector.extract_strided_slice %14 {offsets = [408, 0], sizes = [8, 32], strides = [1, 1]} : vector<512x32xf32> to vector<8x32xf32>
    %67 = vector.extract_strided_slice %14 {offsets = [416, 0], sizes = [8, 32], strides = [1, 1]} : vector<512x32xf32> to vector<8x32xf32>
    %68 = vector.extract_strided_slice %14 {offsets = [424, 0], sizes = [8, 32], strides = [1, 1]} : vector<512x32xf32> to vector<8x32xf32>
    %69 = vector.extract_strided_slice %14 {offsets = [432, 0], sizes = [8, 32], strides = [1, 1]} : vector<512x32xf32> to vector<8x32xf32>
    %70 = vector.extract_strided_slice %14 {offsets = [440, 0], sizes = [8, 32], strides = [1, 1]} : vector<512x32xf32> to vector<8x32xf32>
    %71 = vector.extract_strided_slice %14 {offsets = [448, 0], sizes = [8, 32], strides = [1, 1]} : vector<512x32xf32> to vector<8x32xf32>
    %72 = vector.extract_strided_slice %14 {offsets = [456, 0], sizes = [8, 32], strides = [1, 1]} : vector<512x32xf32> to vector<8x32xf32>
    %73 = vector.extract_strided_slice %14 {offsets = [464, 0], sizes = [8, 32], strides = [1, 1]} : vector<512x32xf32> to vector<8x32xf32>
    %74 = vector.extract_strided_slice %14 {offsets = [472, 0], sizes = [8, 32], strides = [1, 1]} : vector<512x32xf32> to vector<8x32xf32>
    %75 = vector.extract_strided_slice %14 {offsets = [480, 0], sizes = [8, 32], strides = [1, 1]} : vector<512x32xf32> to vector<8x32xf32>
    %76 = vector.extract_strided_slice %14 {offsets = [488, 0], sizes = [8, 32], strides = [1, 1]} : vector<512x32xf32> to vector<8x32xf32>
    %77 = vector.extract_strided_slice %14 {offsets = [496, 0], sizes = [8, 32], strides = [1, 1]} : vector<512x32xf32> to vector<8x32xf32>
    %78 = vector.extract_strided_slice %14 {offsets = [504, 0], sizes = [8, 32], strides = [1, 1]} : vector<512x32xf32> to vector<8x32xf32>
    %79 = tpu.concatenate %15, %16, %17, %18, %23, %24, %25, %26, %31, %32, %33, %34, %39, %40, %41, %42 in 1 : vector<8x32xf32>, vector<8x32xf32>, vector<8x32xf32>, vector<8x32xf32>, vector<8x32xf32>, vector<8x32xf32>, vector<8x32xf32>, vector<8x32xf32>, vector<8x32xf32>, vector<8x32xf32>, vector<8x32xf32>, vector<8x32xf32>, vector<8x32xf32>, vector<8x32xf32>, vector<8x32xf32>, vector<8x32xf32> -> vector<8x512xf32>
    %80 = tpu.concatenate %17, %18, %19, %20, %25, %26, %27, %28, %33, %34, %35, %36, %41, %42, %43, %44 in 1 : vector<8x32xf32>, vector<8x32xf32>, vector<8x32xf32>, vector<8x32xf32>, vector<8x32xf32>, vector<8x32xf32>, vector<8x32xf32>, vector<8x32xf32>, vector<8x32xf32>, vector<8x32xf32>, vector<8x32xf32>, vector<8x32xf32>, vector<8x32xf32>, vector<8x32xf32>, vector<8x32xf32>, vector<8x32xf32> -> vector<8x512xf32>
    %81 = tpu.concatenate %19, %20, %21, %22, %27, %28, %29, %30, %35, %36, %37, %38, %43, %44, %45, %46 in 1 : vector<8x32xf32>, vector<8x32xf32>, vector<8x32xf32>, vector<8x32xf32>, vector<8x32xf32>, vector<8x32xf32>, vector<8x32xf32>, vector<8x32xf32>, vector<8x32xf32>, vector<8x32xf32>, vector<8x32xf32>, vector<8x32xf32>, vector<8x32xf32>, vector<8x32xf32>, vector<8x32xf32>, vector<8x32xf32> -> vector<8x512xf32>
    %82 = tpu.concatenate %31, %32, %33, %34, %39, %40, %41, %42, %47, %48, %49, %50, %55, %56, %57, %58 in 1 : vector<8x32xf32>, vector<8x32xf32>, vector<8x32xf32>, vector<8x32xf32>, vector<8x32xf32>, vector<8x32xf32>, vector<8x32xf32>, vector<8x32xf32>, vector<8x32xf32>, vector<8x32xf32>, vector<8x32xf32>, vector<8x32xf32>, vector<8x32xf32>, vector<8x32xf32>, vector<8x32xf32>, vector<8x32xf32> -> vector<8x512xf32>
    %83 = tpu.concatenate %33, %34, %35, %36, %41, %42, %43, %44, %49, %50, %51, %52, %57, %58, %59, %60 in 1 : vector<8x32xf32>, vector<8x32xf32>, vector<8x32xf32>, vector<8x32xf32>, vector<8x32xf32>, vector<8x32xf32>, vector<8x32xf32>, vector<8x32xf32>, vector<8x32xf32>, vector<8x32xf32>, vector<8x32xf32>, vector<8x32xf32>, vector<8x32xf32>, vector<8x32xf32>, vector<8x32xf32>, vector<8x32xf32> -> vector<8x512xf32>
    %84 = tpu.concatenate %35, %36, %37, %38, %43, %44, %45, %46, %51, %52, %53, %54, %59, %60, %61, %62 in 1 : vector<8x32xf32>, vector<8x32xf32>, vector<8x32xf32>, vector<8x32xf32>, vector<8x32xf32>, vector<8x32xf32>, vector<8x32xf32>, vector<8x32xf32>, vector<8x32xf32>, vector<8x32xf32>, vector<8x32xf32>, vector<8x32xf32>, vector<8x32xf32>, vector<8x32xf32>, vector<8x32xf32>, vector<8x32xf32> -> vector<8x512xf32>
    %85 = tpu.concatenate %47, %48, %49, %50, %55, %56, %57, %58, %63, %64, %65, %66, %71, %72, %73, %74 in 1 : vector<8x32xf32>, vector<8x32xf32>, vector<8x32xf32>, vector<8x32xf32>, vector<8x32xf32>, vector<8x32xf32>, vector<8x32xf32>, vector<8x32xf32>, vector<8x32xf32>, vector<8x32xf32>, vector<8x32xf32>, vector<8x32xf32>, vector<8x32xf32>, vector<8x32xf32>, vector<8x32xf32>, vector<8x32xf32> -> vector<8x512xf32>
    %86 = tpu.concatenate %49, %50, %51, %52, %57, %58, %59, %60, %65, %66, %67, %68, %73, %74, %75, %76 in 1 : vector<8x32xf32>, vector<8x32xf32>, vector<8x32xf32>, vector<8x32xf32>, vector<8x32xf32>, vector<8x32xf32>, vector<8x32xf32>, vector<8x32xf32>, vector<8x32xf32>, vector<8x32xf32>, vector<8x32xf32>, vector<8x32xf32>, vector<8x32xf32>, vector<8x32xf32>, vector<8x32xf32>, vector<8x32xf32> -> vector<8x512xf32>
    %87 = tpu.concatenate %51, %52, %53, %54, %59, %60, %61, %62, %67, %68, %69, %70, %75, %76, %77, %78 in 1 : vector<8x32xf32>, vector<8x32xf32>, vector<8x32xf32>, vector<8x32xf32>, vector<8x32xf32>, vector<8x32xf32>, vector<8x32xf32>, vector<8x32xf32>, vector<8x32xf32>, vector<8x32xf32>, vector<8x32xf32>, vector<8x32xf32>, vector<8x32xf32>, vector<8x32xf32>, vector<8x32xf32>, vector<8x32xf32> -> vector<8x512xf32>
    %88 = tpu.concatenate %79, %80, %81, %82, %83, %84, %85, %86, %87 in 0 : vector<8x512xf32>, vector<8x512xf32>, vector<8x512xf32>, vector<8x512xf32>, vector<8x512xf32>, vector<8x512xf32>, vector<8x512xf32>, vector<8x512xf32>, vector<8x512xf32> -> vector<72x512xf32>
    %89 = arith.truncf %88 : vector<72x512xf32> to vector<72x512xbf16>
    %c0_8 = arith.constant 0 : index
    %c0_9 = arith.constant 0 : index
    %90 = vector.load %arg3[%c0_8, %c0_9] : memref<512x64xbf16, #tpu.memory_space<vmem>>, vector<512x64xbf16>
    %cst_10 = arith.constant dense<0.000000e+00> : vector<72x64xf32>
    %91 = tpu.matmul %89, %90, %cst_10 {dimension_numbers = #tpu.dot_dimension_numbers<[1], [0], [0], [1], [0, 0, 1, 1], [], []>} : vector<72x512xbf16>, vector<512x64xbf16>, vector<72x64xf32> -> vector<72x64xf32>
    %c0_11 = arith.constant 0 : index
    %c0_12 = arith.constant 0 : index
    %92 = vector.load %arg4[%c0_11, %c0_12] : memref<1x64xf32, #tpu.memory_space<vmem>>, vector<1x64xf32>
    %93 = vector.broadcast %92 : vector<1x64xf32> to vector<72x64xf32>
    %94 = arith.addf %91, %93 : vector<72x64xf32>
    %cst_13 = arith.constant 0.000000e+00 : f32
    %95 = vector.broadcast %cst_13 : f32 to vector<72x64xf32>
    %96 = arith.maximumf %94, %95 : vector<72x64xf32>
    %97 = vector.extract_strided_slice %96 {offsets = [0, 0], sizes = [8, 64], strides = [1, 1]} : vector<72x64xf32> to vector<8x64xf32>
    %98 = vector.extract_strided_slice %96 {offsets = [8, 0], sizes = [8, 64], strides = [1, 1]} : vector<72x64xf32> to vector<8x64xf32>
    %99 = vector.extract_strided_slice %96 {offsets = [16, 0], sizes = [8, 64], strides = [1, 1]} : vector<72x64xf32> to vector<8x64xf32>
    %100 = vector.extract_strided_slice %96 {offsets = [24, 0], sizes = [8, 64], strides = [1, 1]} : vector<72x64xf32> to vector<8x64xf32>
    %101 = vector.extract_strided_slice %96 {offsets = [32, 0], sizes = [8, 64], strides = [1, 1]} : vector<72x64xf32> to vector<8x64xf32>
    %102 = vector.extract_strided_slice %96 {offsets = [40, 0], sizes = [8, 64], strides = [1, 1]} : vector<72x64xf32> to vector<8x64xf32>
    %103 = vector.extract_strided_slice %96 {offsets = [48, 0], sizes = [8, 64], strides = [1, 1]} : vector<72x64xf32> to vector<8x64xf32>
    %104 = vector.extract_strided_slice %96 {offsets = [56, 0], sizes = [8, 64], strides = [1, 1]} : vector<72x64xf32> to vector<8x64xf32>
    %105 = vector.extract_strided_slice %96 {offsets = [64, 0], sizes = [8, 64], strides = [1, 1]} : vector<72x64xf32> to vector<8x64xf32>
    %106 = tpu.concatenate %97, %98, %99, %100, %101, %102, %103, %104, %105 in 1 : vector<8x64xf32>, vector<8x64xf32>, vector<8x64xf32>, vector<8x64xf32>, vector<8x64xf32>, vector<8x64xf32>, vector<8x64xf32>, vector<8x64xf32>, vector<8x64xf32> -> vector<8x576xf32>
    %107 = arith.truncf %106 : vector<8x576xf32> to vector<8x576xbf16>
    %c0_14 = arith.constant 0 : index
    %c0_15 = arith.constant 0 : index
    %108 = vector.load %arg5[%c0_14, %c0_15] : memref<576x64xbf16, #tpu.memory_space<vmem>>, vector<576x64xbf16>
    %cst_16 = arith.constant dense<0.000000e+00> : vector<8x64xf32>
    %109 = tpu.matmul %107, %108, %cst_16 {dimension_numbers = #tpu.dot_dimension_numbers<[1], [0], [0], [1], [0, 0, 1, 1], [], []>} : vector<8x576xbf16>, vector<576x64xbf16>, vector<8x64xf32> -> vector<8x64xf32>
    %c0_17 = arith.constant 0 : index
    %c0_18 = arith.constant 0 : index
    %110 = vector.load %arg6[%c0_17, %c0_18] : memref<1x64xf32, #tpu.memory_space<vmem>>, vector<1x64xf32>
    %111 = vector.broadcast %110 : vector<1x64xf32> to vector<8x64xf32>
    %112 = arith.addf %109, %111 : vector<8x64xf32>
    %cst_19 = arith.constant 0.000000e+00 : f32
    %113 = vector.broadcast %cst_19 : f32 to vector<8x64xf32>
    %114 = arith.maximumf %112, %113 : vector<8x64xf32>
    %115 = arith.truncf %114 : vector<8x64xf32> to vector<8x64xbf16>
    %c0_20 = arith.constant 0 : index
    %c0_21 = arith.constant 0 : index
    %116 = vector.load %arg7[%c0_20, %c0_21] : memref<64x1024xbf16, #tpu.memory_space<vmem>>, vector<64x1024xbf16>
    %cst_22 = arith.constant dense<0.000000e+00> : vector<8x1024xf32>
    %117 = tpu.matmul %115, %116, %cst_22 {dimension_numbers = #tpu.dot_dimension_numbers<[1], [0], [0], [1], [0, 0, 1, 1], [], []>} : vector<8x64xbf16>, vector<64x1024xbf16>, vector<8x1024xf32> -> vector<8x1024xf32>
    %c0_23 = arith.constant 0 : index
    %c0_24 = arith.constant 0 : index
    %118 = vector.load %arg8[%c0_23, %c0_24] : memref<1x1024xf32, #tpu.memory_space<vmem>>, vector<1x1024xf32>
    %119 = vector.broadcast %118 : vector<1x1024xf32> to vector<8x1024xf32>
    %120 = arith.addf %117, %119 : vector<8x1024xf32>
    %cst_25 = arith.constant 0.000000e+00 : f32
    %121 = vector.broadcast %cst_25 : f32 to vector<8x1024xf32>
    %122 = arith.maximumf %120, %121 : vector<8x1024xf32>
    %123 = arith.truncf %122 : vector<8x1024xf32> to vector<8x1024xbf16>
    %c0_26 = arith.constant 0 : index
    %c0_27 = arith.constant 0 : index
    %124 = vector.load %arg9[%c0_26, %c0_27] : memref<1024x128xbf16, #tpu.memory_space<vmem>>, vector<1024x128xbf16>
    %cst_28 = arith.constant dense<0.000000e+00> : vector<8x128xf32>
    %125 = tpu.matmul %123, %124, %cst_28 {dimension_numbers = #tpu.dot_dimension_numbers<[1], [0], [0], [1], [0, 0, 1, 1], [], []>} : vector<8x1024xbf16>, vector<1024x128xbf16>, vector<8x128xf32> -> vector<8x128xf32>
    %c0_29 = arith.constant 0 : index
    %c0_30 = arith.constant 0 : index
    %126 = vector.load %arg10[%c0_29, %c0_30] : memref<1x128xf32, #tpu.memory_space<vmem>>, vector<1x128xf32>
    %127 = vector.broadcast %126 : vector<1x128xf32> to vector<8x128xf32>
    %128 = arith.addf %125, %127 : vector<8x128xf32>
    %129 = vector.extract_strided_slice %128 {offsets = [0, 0], sizes = [2, 4], strides = [1, 1]} : vector<8x128xf32> to vector<2x4xf32>
    %130 = vector.extract_strided_slice %128 {offsets = [0, 4], sizes = [2, 1], strides = [1, 1]} : vector<8x128xf32> to vector<2x1xf32>
    %131 = vector.broadcast %130 : vector<2x1xf32> to vector<2x4xf32>
    %132 = arith.addf %131, %129 : vector<2x4xf32>
    %133 = vector.shape_cast %129 : vector<2x4xf32> to vector<1x2x4xf32>
    %cst_31 = arith.constant dense<0.000000e+00> : vector<1xf32>
    %134 = vector.multi_reduction <add>, %133, %cst_31 [1, 2] : vector<1x2x4xf32> to vector<1xf32>
    %135 = vector.shape_cast %134 : vector<1xf32> to vector<1x1x1xf32>
    %136 = vector.extract %135[0, 0, 0] : f32 from vector<1x1x1xf32>
    %cst_32 = arith.constant 8.000000e+00 : f32
    %137 = arith.divf %136, %cst_32 : f32
    %138 = vector.broadcast %137 : f32 to vector<2x4xf32>
    %139 = arith.subf %132, %138 : vector<2x4xf32>
    %c0_33 = arith.constant 0 : index
    %c0_34 = arith.constant 0 : index
    %140 = vector.load %arg11[%c0_33, %c0_34] : memref<2x4xf32, #tpu.memory_space<vmem>>, vector<2x4xf32>
    tpu.vector_store %arg11[%c0_33, %c0_34], %139 {strides = array<i32>} : memref<2x4xf32, #tpu.memory_space<vmem>>, vector<2x4xf32>,
    return
  }
}

</mosaic_0001>

<bundles_post_ra>
// kernel: dueling_cnn_dqn_forward.1
= control target key start
LH: loop header
LB: loop body
LE: loop exit
PB: predicated region body
PF: predicated region fallthrough
CT: control target
= control target key end

     0   :  { %v4384_v7 = vmov 0   ;;  %s4385_s14 = smov 64   ;;  %vm409_vm0 = vcmask 523264   ;;  %s6105_s0 = inlined_call_operand.vmem [shape: f32[9,9,8,64], index: 0, kind: input, shape index: {}]   ;;  %s6106_s1 = inlined_call_operand.vmem [shape: bf16[256,32], index: 1, kind: input, shape index: {}]   ;;  %s6107_s2 = inlined_call_operand.vmem [shape: f32[1,32], index: 2, kind: input, shape index: {}]   ;;  %s6108_s3 = inlined_call_operand.vmem [shape: bf16[512,64], index: 3, kind: input, shape index: {}]   ;;  %s6109_s4 = inlined_call_operand.vmem [shape: f32[1,64], index: 4, kind: input, shape index: {}]   ;;  %s6110_s5 = inlined_call_operand.vmem [shape: bf16[576,64], index: 5, kind: input, shape index: {}]   ;;  %s6111_s6 = inlined_call_operand.vmem [shape: f32[1,64], index: 6, kind: input, shape index: {}]   ;;  %s6112_s7 = inlined_call_operand.vmem [shape: bf16[64,1024], index: 7, kind: input, shape index: {}]   ;;  %s6113_s8 = inlined_call_operand.vmem [shape: f32[1,1024], index: 8, kind: input, shape index: {}]   ;;  %s6114_s9 = inlined_call_operand.vmem [shape: bf16[1024,128], index: 9, kind: input, shape index: {}]   ;;  %s6115_s10 = inlined_call_operand.vmem [shape: f32[1,128], index: 10, kind: input, shape index: {}]   ;;  %s6116_s11 = inlined_call_operand.hbm [shape: f32[2,4], index: 11, kind: output, shape index: {}]  }
   0x1   :  { %v4455_v0 = vld [vmem:[%s6105_s0 + $0x50] sm:$0xff]  ;;  %v4460_v1 = vld [vmem:[%s6105_s0 + $0x58] sm:$0xff]  ;;  %v4465_v2 = vld [vmem:[%s6105_s0 + $0x8] sm:$0xff]  ;;  %653 = vmatprep.subr.bf16.mxu0 %v4384_v7 }
   0x2   :  { %v3806_v3 = vpack.i.bf16 %v4460_v1, %v4455_v0  ;;  %v4472_v4 = vld [vmem:[%s6105_s0 + $0x10] sm:$0xff]  ;;  %v4477_v5 = vld [vmem:[%s6105_s0 + $0x60] sm:$0xff]  ;;  %v53_v6 = vld [vmem:[%s6105_s0 + $0x68] sm:$0xff] }
   0x3   :  { %v3816_v8 = vpack.i.bf16 %v53_v6, %v4477_v5  ;;  %v4487_v9 = vld [vmem:[%s6105_s0 + $0x18] sm:$0xff]  ;;  %v44_v10 = vld [vmem:[%s6105_s0 + $0x20] sm:$0xff]  ;;  %v3811_v11 = vpack.i.bf16 %v4472_v4, %v4465_v2  ;;  %v4500_v13 = vld [vmem:[%s6105_s0 + $0x70] sm:$0xff] }
   0x4   :  { %3807 = vrot.lane.b32.xlu0 %v3806_v3, %s4385_s14  ;;  %v3821_v12 = vpack.i.bf16 %v44_v10, %v4487_v9  ;;  %v55_v14 = vld [vmem:[%s6105_s0 + $0x78] sm:$0xff]  ;;  %v45_v15 = vld [vmem:[%s6105_s0 + $0x28] sm:$0xff]  ;;  %v46_v16 = vld [vmem:[%s6105_s0 + $0x30] sm:$0xff] }
   0x5   :  { %3817 = vrot.lane.b32.xlu1 %v3816_v8, %s4385_s14  ;;  %v3826_v17 = vpack.i.bf16 %v55_v14, %v4500_v13  ;;  %v56_v18 = vld [vmem:[%s6105_s0 + $0x80] sm:$0xff]  ;;  %v57_v19 = vld [vmem:[%s6105_s0 + $0x88] sm:$0xff]  ;;  %v47_v20 = vld [vmem:[%s6105_s0 + $0x38] sm:$0xff]  ;;  %v3831_v21 = vpack.i.bf16 %v46_v16, %v45_v15 }
   0x6   :  { %v4178_v22 = vld [vmem:[%s6106_s1 + $0x38] sm:$0xff]   ;;  %v48_v23 = vld [vmem:[%s6105_s0 + $0x40] sm:$0xff]  ;;  %v4179_v24 = vld [vmem:[%s6106_s1 + $0x30] sm:$0xff]   ;;  %v3836_v25 = vpack.i.bf16 %v57_v19, %v56_v18 }
   0x7   :  { %654 = vmatpush1.bf16.msra.mxu0 %v4178_v22  ;;  %v59_v26 = vld [vmem:[%s6105_s0 + $0x98] sm:$0xff]  ;;  %v3841_v27 = vpack.i.bf16 %v48_v23, %v47_v20  ;;  %v60_v28 = vld [vmem:[%s6105_s0 + $0xa0] sm:$0xff]  ;;  %v61_v29 = vld [vmem:[%s6105_s0 + $0xa8] sm:$0xff] }
   0x8   :  { %3812 = vrot.lane.b32.xlu0 %v3811_v11, %s4385_s14  ;;  %655 = vmatprep.subr.bf16.mxu0 %v4384_v7  ;;  %v62_v30 = vld [vmem:[%s6105_s0 + $0xb0] sm:$0xff]  ;;  %v4180_v31 = vld [vmem:[%s6106_s1 + $0x28] sm:$0xff]   ;;  %v3846_v32 = vpack.i.bf16 %v60_v28, %v59_v26  ;;  %v63_v33 = vld [vmem:[%s6105_s0 + $0xb8] sm:$0xff] }
   0x9   :  { %3822 = vrot.lane.b32.xlu1 %v3821_v12, %s4385_s14  ;;  %v64_v34 = vld [vmem:[%s6105_s0 + $0xc0] sm:$0xff]  ;;  %v3851_v35 = vpack.i.bf16 %v62_v30, %v61_v29  ;;  %v65_v36 = vld [vmem:[%s6105_s0 + $0xc8] sm:$0xff]  ;;  %v66_v37 = vld [vmem:[%s6105_s0 + $0xd0] sm:$0xff] }
   0xa   :  { %v4181_v38 = vld [vmem:[%s6106_s1 + $0x20] sm:$0xff]   ;;  %v3856_v39 = vpack.i.bf16 %v64_v34, %v63_v33  ;;  %v3861_v41 = vpack.i.bf16 %v66_v37, %v65_v36  ;;  %v69_v42 = vld [vmem:[%s6105_s0 + $0xe8] sm:$0xff]  ;;  %v70_v43 = vld [vmem:[%s6105_s0 + $0xf0] sm:$0xff] }
   0xb   :  { %656 = vmatpush1.bf16.msra.mxu0 %v4179_v24  ;;  %v68_v40 = vld [vmem:[%s6105_s0 + $0xe0] sm:$0xff]  ;;  %v71_v44 = vld [vmem:[%s6105_s0 + $0xf8] sm:$0xff]  ;;  %v73_v48 = vld [vmem:[%s6105_s0 + $0x108] sm:$0xff] }
   0xc   :  { %3827 = vrot.lane.b32.xlu0 %v3826_v17, %s4385_s14  ;;  %657 = vmatprep.subr.bf16.mxu0 %v4384_v7  ;;  %v4182_v45 = vld [vmem:[%s6106_s1 + $0x18] sm:$0xff]   ;;  %v3866_v46 = vpack.i.bf16 %v69_v42, %v68_v40  ;;  %v4591_v47 = vld [vmem:[%s6105_s0 + $0x100] sm:$0xff]  ;;  %v3871_v49 = vpack.i.bf16 %v71_v44, %v70_v43  ;;  %v74_v50 = vld [vmem:[%s6105_s0 + $0x110] sm:$0xff] }
   0xd   :  { %3832 = vrot.lane.b32.xlu1 %v3831_v21, %s4385_s14  ;;  %v75_v51 = vld [vmem:[%s6105_s0 + $0x118] sm:$0xff]  ;;  %v4183_v52 = vld [vmem:[%s6106_s1 + $0x10] sm:$0xff]   ;;  %v3876_v53 = vpack.i.bf16 %v73_v48, %v4591_v47  ;;  %v77_v54 = vld [vmem:[%s6105_s0 + $0x128] sm:$0xff] }
   0xe   :  { %v3881_v55 = vpack.i.bf16 %v75_v51, %v74_v50  ;;  %v78_v56 = vld [vmem:[%s6105_s0 + $0x130] sm:$0xff]  ;;  %v79_v57 = vld [vmem:[%s6105_s0 + $0x138] sm:$0xff]  ;;  %v80_v58 = vld [vmem:[%s6105_s0 + $0x140] sm:$0xff] }
   0xf   :  { %658 = vmatpush1.bf16.msra.mxu0 %v4180_v31  ;;  %v4184_v59 = vld [vmem:[%s6106_s1 + $0x8] sm:$0xff]   ;;  %v3886_v60 = vpack.i.bf16 %v78_v56, %v77_v54  ;;  %v4185_v61 = vld [vmem:[%s6106_s1] sm:$0xff]   ;;  %v3891_v62 = vpack.i.bf16 %v80_v58, %v79_v57  ;;  %v82_v3 = vld [vmem:[%s6105_s0 + $0x150] sm:$0xff] }
  0x10   :  { %3837 = vrot.lane.b32.xlu0 %v3836_v25, %s4385_s14  ;;  %659 = vmatprep.subr.bf16.mxu0 %v4384_v7  ;;  %v4634_v63 = vld [vmem:[%s6105_s0 + $0x148] sm:$0xff]  ;;  %v83_v6 = vld [vmem:[%s6105_s0 + $0x158] sm:$0xff]  ;;  %v84_v8 = vld [vmem:[%s6105_s0 + $0x160] sm:$0xff] }
  0x11   :  { %3842 = vrot.lane.b32.xlu1 %v3841_v27, %s4385_s14  ;;  %v86_v10 = vld [vmem:[%s6105_s0 + $0x170] sm:$0xff]  ;;  %v87_v11 = vld [vmem:[%s6105_s0 + $0x178] sm:$0xff]  ;;  %v3896_v12 = vpack.i.bf16 %v82_v3, %v4634_v63  ;;  %v88_v14 = vld [vmem:[%s6105_s0 + $0x180] sm:$0xff]  ;;  %v3901_v17 = vpack.i.bf16 %v84_v8, %v83_v6 }
  0x12   :  { %v89_v15 = vld [vmem:[%s6105_s0 + $0x188] sm:$0xff]  ;;  %v4186_v16 = vld [vmem:[%s6106_s1 + $0x78] sm:$0xff]   ;;  %v90_v18 = vld [vmem:[%s6105_s0 + $0x190] sm:$0xff]  ;;  %v3906_v20 = vpack.i.bf16 %v87_v11, %v86_v10 }
  0x13   :  { %660 = vmatpush1.bf16.msra.mxu0 %v4181_v38  ;;  %v91_v19 = vld [vmem:[%s6105_s0 + $0x198] sm:$0xff]  ;;  %v92_v21 = vld [vmem:[%s6105_s0 + $0x1a0] sm:$0xff]  ;;  %v93_v22 = vld [vmem:[%s6105_s0 + $0x1a8] sm:$0xff]  ;;  %v3911_v24 = vpack.i.bf16 %v89_v15, %v88_v14 }
  0x14   :  { %3847 = vrot.lane.b32.xlu0 %v3846_v32, %s4385_s14  ;;  %661 = vmatprep.subr.bf16.mxu0 %v4384_v7  ;;  %v4187_v23 = vld [vmem:[%s6106_s1 + $0x70] sm:$0xff]   ;;  %v4685_v25 = vld [vmem:[%s6105_s0 + $0x1b8] sm:$0xff]  ;;  %v96_v26 = vld [vmem:[%s6105_s0 + $0x1c0] sm:$0xff]  ;;  %v3916_v27 = vpack.i.bf16 %v91_v19, %v90_v18  ;;  %v3921_v31 = vpack.i.bf16 %v93_v22, %v92_v21 }
  0x15   :  { %3852 = vrot.lane.b32.xlu1 %v3851_v35, %s4385_s14  ;;  %v4695_v28 = vld [vmem:[%s6105_s0 + $0x1c8] sm:$0xff]  ;;  %v98_v29 = vld [vmem:[%s6105_s0 + $0x1d0] sm:$0xff]  ;;  %v3926_v32 = vpack.i.bf16 %v96_v26, %v4685_v25  ;;  %v4710_v33 = vld [vmem:[%s6105_s0 + $0x1d8] sm:$0xff] }
  0x16   :  { %v4188_v30 = vld [vmem:[%s6106_s1 + $0x68] sm:$0xff]   ;;  %v4715_v34 = vld [vmem:[%s6105_s0 + $0x1e0] sm:$0xff]  ;;  %v3931_v36 = vpack.i.bf16 %v98_v29, %v4695_v28  ;;  %v4190_v38 = vld [vmem:[%s6106_s1 + $0x58] sm:$0xff]  }
  0x17   :  { %662 = vmatpush1.bf16.msra.mxu0 %v4182_v45  ;;  %v4189_v35 = vld [vmem:[%s6106_s1 + $0x60] sm:$0xff]   ;;  %v3936_v37 = vpack.i.bf16 %v4715_v34, %v4710_v33  ;;  %v102_v40 = vld [vmem:[%s6105_s0 + $0x1f0] sm:$0xff]  ;;  %v4192_v43 = vld [vmem:[%s6106_s1 + $0x48] sm:$0xff]  }
  0x18   :  { %3857 = vrot.lane.b32.xlu0 %v3856_v39, %s4385_s14  ;;  %663 = vmatprep.subr.bf16.mxu0 %v4384_v7  ;;  %v4735_v39 = vld [vmem:[%s6105_s0 + $0x1e8] sm:$0xff]  ;;  %v4753_v44 = vld [vmem:[%s6105_s0 + $0x200] sm:$0xff]  ;;  %v4775_v50 = vld [vmem:[%s6105_s0 + $0x218] sm:$0xff] }
  0x19   :  { %3862 = vrot.lane.b32.xlu1 %v3861_v41, %s4385_s14  ;;  %v4191_v41 = vld [vmem:[%s6106_s1 + $0x50] sm:$0xff]   ;;  %v3941_v42 = vpack.i.bf16 %v102_v40, %v4735_v39  ;;  %v4758_v45 = vld [vmem:[%s6105_s0 + $0x208] sm:$0xff]  ;;  %v111_v56 = vld [vmem:[%s6105_s0 + $0x238] sm:$0xff] }
  0x1a   :  { %v3946_v48 = vpack.i.bf16 %v4758_v45, %v4753_v44  ;;  %v4806_v58 = vld [vmem:[%s6105_s0 + $0x248] sm:$0xff]  ;;  %v4837_v8 = vld [vmem:[%s6105_s0 + $0x270] sm:$0xff]  ;;  %v40_v19 = vld [vmem:[%s6105_s0] sm:$0xff] }
  0x1b   :  { %664 = vmatpush1.bf16.msra.mxu0 %v4183_v52  ;;  %v4783_v52 = vld [vmem:[%s6105_s0 + $0x220] sm:$0xff]  ;;  %v4832_v6 = vld [vmem:[%s6105_s0 + $0x268] sm:$0xff] }
  0x1c   :  { %3867 = vrot.lane.b32.xlu0 %v3866_v46, %s4385_s14  ;;  %665 = vmatprep.subr.bf16.mxu0 %v4384_v7  ;;  %v4193_v46 = vld [vmem:[%s6106_s1 + $0x40] sm:$0xff]   ;;  %v3976_v10 = vpack.i.bf16 %v4837_v8, %v4832_v6  ;;  %v49_v11 = vld [vmem:[%s6105_s0 + $0x48] sm:$0xff] }
  0x1d   :  { %3872 = vrot.lane.b32.xlu1 %v3871_v49, %s4385_s14  ;;  %v4770_v49 = vld [vmem:[%s6105_s0 + $0x210] sm:$0xff]  ;;  %v120_v21 = vld [vmem:[%s6105_s0 + $0x280] sm:$0xff] }
  0x1e   :  { %v3951_v51 = vpack.i.bf16 %v4775_v50, %v4770_v49 }
  0x1f   :  { %666 = vmatpush1.bf16.msra.mxu0 %v4184_v59  ;;  %v4811_v59 = vld [vmem:[%s6105_s0 + $0x250] sm:$0xff] }
  0x20   :  { %3877 = vrot.lane.b32.xlu0 %v3876_v53, %s4385_s14  ;;  %667 = vmatprep.subr.bf16.mxu0 %v4384_v7  ;;  %v4788_v53 = vld [vmem:[%s6105_s0 + $0x228] sm:$0xff] }
  0x21   :  { %3882 = vrot.lane.b32.xlu1 %v3881_v55, %s4385_s14  ;;  %v3956_v54 = vpack.i.bf16 %v4788_v53, %v4783_v52  ;;  %v4796_v55 = vld [vmem:[%s6105_s0 + $0x230] sm:$0xff] }
  0x22   :  { %v3961_v57 = vpack.i.bf16 %v111_v56, %v4796_v55 }
  0x23   :  { %668 = vmatpush1.bf16.msra.mxu0 %v4185_v61  ;;  %v4819_v61 = vld [vmem:[%s6105_s0 + $0x258] sm:$0xff] }
  0x24   :  { %3887 = vrot.lane.b32.xlu0 %v3886_v60, %s4385_s14  ;;  %669 = vmatprep.subr.bf16.mxu0 %v4384_v7  ;;  %v3966_v60 = vpack.i.bf16 %v4811_v59, %v4806_v58 }
  0x25   :  { %3892 = vrot.lane.b32.xlu1 %v3891_v62, %s4385_s14  ;;  %v4824_v62 = vld [vmem:[%s6105_s0 + $0x260] sm:$0xff] }
  0x26   :  { %v3971_v3 = vpack.i.bf16 %v4824_v62, %v4819_v61 }
  0x27   :  { %670 = vmatpush2.bf16.msra.mxu0 %v4186_v16 }
  0x28   :  { %3897 = vrot.lane.b32.xlu0 %v3896_v12, %s4385_s14  ;;  %671 = vmatprep.subr.bf16.mxu0 %v4384_v7 }
  0x29   :  { %3902 = vrot.lane.b32.xlu1 %v3901_v17, %s4385_s14 }
  0x2b   :  { %672 = vmatpush2.bf16.msra.mxu0 %v4187_v23 }
  0x2c   :  { %3907 = vrot.lane.b32.xlu0 %v3906_v20, %s4385_s14  ;;  %673 = vmatprep.subr.bf16.mxu0 %v4384_v7  ;;  %v4851_v20 = vld [vmem:[%s6105_s0 + $0x278] sm:$0xff] }
  0x2d   :  { %3912 = vrot.lane.b32.xlu1 %v3911_v24, %s4385_s14  ;;  %v3981_v24 = vpack.i.bf16 %v120_v21, %v4851_v20 }
  0x2f   :  { %674 = vmatpush2.bf16.msra.mxu0 %v4188_v30 }
  0x30   :  { %3917 = vrot.lane.b32.xlu0 %v3916_v27, %s4385_s14  ;;  %675 = vmatprep.subr.bf16.mxu0 %v4384_v7 }
  0x31   :  { %3922 = vrot.lane.b32.xlu1 %v3921_v31, %s4385_s14 }
  0x33   :  { %676 = vmatpush2.bf16.msra.mxu0 %v4189_v35 }
  0x34   :  { %3927 = vrot.lane.b32.xlu0 %v3926_v32, %s4385_s14  ;;  %677 = vmatprep.subr.bf16.mxu0 %v4384_v7 }
  0x35   :  { %3932 = vrot.lane.b32.xlu1 %v3931_v36, %s4385_s14 }
  0x37   :  { %678 = vmatpush2.bf16.msra.mxu0 %v4190_v38 }
  0x38   :  { %3937 = vrot.lane.b32.xlu0 %v3936_v37, %s4385_s14  ;;  %679 = vmatprep.subr.bf16.mxu0 %v4384_v7 }
  0x39   :  { %3942 = vrot.lane.b32.xlu1 %v3941_v42, %s4385_s14 }
  0x3b   :  { %680 = vmatpush2.bf16.msra.mxu0 %v4191_v41 }
  0x3c   :  { %681 = vmatprep.subr.bf16.mxu0 %v4384_v7  ;;  %3947 = vrot.lane.b32.xlu0 %v3946_v48, %s4385_s14 }
  0x3d   :  { %3952 = vrot.lane.b32.xlu1 %v3951_v51, %s4385_s14 }
  0x3f   :  { %682 = vmatpush2.bf16.msra.mxu0 %v4192_v43 }
  0x40   :  { %683 = vmatprep.subr.bf16.mxu0 %v4384_v7  ;;  %3957 = vrot.lane.b32.xlu0 %v3956_v54, %s4385_s14 }
  0x41   :  { %3962 = vrot.lane.b32.xlu1 %v3961_v57, %s4385_s14 }
  0x43   :  { %684 = vmatpush2.bf16.msra.mxu0 %v4193_v46 }
  0x44   :  { %3967 = vrot.lane.b32.xlu0 %v3966_v60, %s4385_s14 }
  0x45   :  { %3972 = vrot.lane.b32.xlu1 %v3971_v3, %s4385_s14 }
  0x48   :  { %3977 = vrot.lane.b32.xlu0 %v3976_v10, %s4385_s14 }
  0x49   :  { %3982 = vrot.lane.b32.xlu1 %v3981_v24, %s4385_s14 }
  0x76   :  { %v3808_v12 = vpop.permute.xlu0 %3807 }
  0x77   :  { %v3810_v14 = vunpack.i.h.bf16 %v3808_v12  ;;  %v3809_v15 = vunpack.i.l.bf16 %v3808_v12  ;;  %v3818_v16 = vpop.permute.xlu1 %3817 }
  0x78   :  { %v3820_v17 = vunpack.i.h.bf16 %v3818_v16  ;;  %v3819_v18 = vunpack.i.l.bf16 %v3818_v16 }
  0x79   :  { %v418_v22 = vsel %vm409_vm0, %v49_v11, %v3809_v15  ;;  %v419_v23 = vsel %vm409_vm0, %v4455_v0, %v3810_v14 }
  0x7a   :  { %v3813_v26 = vpop.permute.xlu0 %3812  ;;  %v4860_v27 = vpack.c.bf16 %v419_v23, %v418_v22  ;;  %v420_v29 = vsel %vm409_vm0, %v4460_v1, %v3819_v18  ;;  %v421_v30 = vsel %vm409_vm0, %v4477_v5, %v3820_v17 }
  0x7b   :  { %v3815_v31 = vunpack.i.h.bf16 %v3813_v26  ;;  %v3814_v32 = vunpack.i.l.bf16 %v3813_v26  ;;  %v3823_v35 = vpop.permute.xlu1 %3822  ;;  %v4868_v36 = vpack.c.bf16 %v421_v30, %v420_v29 }
  0x7c   :  { %685 = vmatprep.mubr.bf16.mxu0 %v4860_v27  ;;  %v3825_v38 = vunpack.i.h.bf16 %v3823_v35  ;;  %v3824_v40 = vunpack.i.l.bf16 %v3823_v35 }
  0x7d   :  { %v410_v0 = vsel %vm409_vm0, %v40_v19, %v3814_v32  ;;  %v411_v37 = vsel %vm409_vm0, %v4465_v2, %v3815_v31  ;;  %v4326_v2 = vld [vmem:[%s6105_s0 + $0x68] sm:$0xff] }
  0x7e   :  { %v482_v1 = vpack.c.bf16 %v411_v37, %v410_v0  ;;  %v3828_v41 = vpop.permute.xlu0 %3827  ;;  %v412_v43 = vsel %vm409_vm0, %v4472_v4, %v3824_v40  ;;  %v413_v46 = vsel %vm409_vm0, %v4487_v9, %v3825_v38 }
  0x7f   :  { %v3830_v42 = vunpack.i.h.bf16 %v3828_v41  ;;  %v3829_v5 = vunpack.i.l.bf16 %v3828_v41  ;;  %v3833_v48 = vpop.permute.xlu1 %3832 }
  0x80   :  { %686 = vmatmul.mubr.bf16.vlgmr.msra.gmra.mxu0 %v482_v1 }
  0x81   :  { %693 = vmatprep.mubr.bf16.mxu0 %v4868_v36  ;;  %v422_v51 = vsel %vm409_vm0, %v4326_v2, %v3829_v5  ;;  %v423_v54 = vsel %vm409_vm0, %v4500_v13, %v3830_v42 }
  0x82   :  { %v3838_v56 = vpop.permute.xlu0 %3837 }
  0x83   :  { %16 = vsyncpa [#allocation3], 0  ;;  %v484_v57 = vpack.c.bf16 %v413_v46, %v412_v43  ;;  %v3835_v60 = vunpack.i.h.bf16 %v3833_v48  ;;  %v3834_v3 = vunpack.i.l.bf16 %v3833_v48  ;;  %v4884_v10 = vpack.c.bf16 %v423_v54, %v422_v51  ;;  %v4327_v9 = vld [vmem:[%s6105_s0 + $0x20] sm:$0xff]  ;;  %v4328_v13 = vld [vmem:[%s6105_s0 + $0x28] sm:$0xff]  ;;  %v3843_v15 = vpop.permute.xlu1 %3842  ;;  %s4387_s16 = smov 96   ;;  %s4391_s26 = smov [#allocation2]  }
  0x84   :  { %v3840_v4 = vunpack.i.h.bf16 %v3838_v56  ;;  %v3839_v11 = vunpack.i.l.bf16 %v3838_v56  ;;  %v4329_v16 = vld [vmem:[%s6105_s0 + $0x78] sm:$0xff]  ;;  %v4330_v18 = vld [vmem:[%s6105_s0 + $0x80] sm:$0xff]  ;;  %v3845_v23 = vunpack.i.h.bf16 %v3843_v15  ;;  %v3844_v24 = vunpack.i.l.bf16 %v3843_v15  ;;  %v58_v31 = vld [vmem:[%s6105_s0 + $0x90] sm:$0xff]  ;;  %s3358_s27 = sshll.u32 %s4391_s26, 4  ;;  %s3359_s27 = int_to_ptr.vmem [resolvable:$true] %s3358_s27 }
  0x85   :  { %v414_v12 = vsel %vm409_vm0, %v4327_v9, %v3834_v3  ;;  %v415_v14 = vsel %vm409_vm0, %v4328_v13, %v3835_v60  ;;  %v4331_v32 = vld [vmem:[%s6105_s0 + $0x30] sm:$0xff]  ;;  %v4332_v0 = vld [vmem:[%s6105_s0 + $0x38] sm:$0xff]  ;;  %v4334_v48 = vld [vmem:[%s6105_s0 + $0xa0] sm:$0xff]  ;;  %vm1054_vm1 = vcmask 261120   ;;  %vm1057_vm2 = vcmask 785408   ;;  %s4362_s28 = scalar_lea.vmem %s3359_s27, 32  ;;  %p4367_p1 = scmp.lt.s32.totalorder %s3359_s27, %s3359_s27 }
  0x86   :  { %v424_v17 = vsel %vm409_vm0, %v4329_v16, %v3839_v11  ;;  %v425_v19 = vsel %vm409_vm0, %v4330_v18, %v3840_v4  ;;  %v3848_v21 = vpop.permute.xlu0 %3847  ;;  %v486_v22 = vpack.c.bf16 %v415_v14, %v414_v12  ;;  %v416_v35 = vsel %vm409_vm0, %v4331_v32, %v3844_v24  ;;  %v4333_v40 = vld [vmem:[%s6105_s0 + $0x98] sm:$0xff]  ;;  %v4335_v51 = vld [vmem:[%s6105_s0 + $0xa8] sm:$0xff]  ;;  %v4336_v4 = vld [vmem:[%s6105_s0 + $0xb0] sm:$0xff]  ;;  %p4363_p0 = scmp.ne.s32.totalorder %s3359_s27, %s4362_s28  ;;  %p4368_p2 = scmp.lt.s32.totalorder %s4362_s28, %s4362_s28 }
  0x87   :  { %v489_v26 = vpack.c.bf16 %v425_v19, %v424_v17  ;;  %v3850_v29 = vunpack.i.h.bf16 %v3848_v21  ;;  %v3849_v30 = vunpack.i.l.bf16 %v3848_v21  ;;  %v417_v37 = vsel %vm409_vm0, %v4332_v0, %v3845_v23  ;;  %v3853_v41 = vpop.permute.xlu1 %3852  ;;  %v4337_v9 = vld [vmem:[%s6105_s0 + $0xb8] sm:$0xff]  ;;  %v4339_v18 = vld [vmem:[%s6105_s0 + $0xc8] sm:$0xff] }
  0x88   :  { %694 = vmatmul.mubr.bf16.gmra.mxu0 %v484_v57  ;;  %v488_v42 = vpack.c.bf16 %v417_v37, %v416_v35  ;;  %v3855_v43 = vunpack.i.h.bf16 %v3853_v41  ;;  %v3854_v46 = vunpack.i.l.bf16 %v3853_v41  ;;  %vm4389_vm3 = vmmov 0   ;;  %p4369_p3 = por %p4368_p2, %p4367_p1 }
  0x89   :  { %701 = vmatprep.mubr.bf16.mxu0 %v4884_v10  ;;  %v426_v38 = vsel %vm409_vm0, %v58_v31, %v3849_v30  ;;  %v427_v1 = vsel %vm409_vm0, %v4333_v40, %v3850_v29  ;;  %v4340_v30 = vld [vmem:[%s6105_s0 + $0xe0] sm:$0xff]  ;;  %v4342_v40 = vld [vmem:[%s6105_s0 + $0xf0] sm:$0xff]  ;;  %vm3335_vm4 = vcmask 25600  }
  0x8a   :  { %v490_v5 = vpack.c.bf16 %v427_v1, %v426_v38  ;;  %v428_v2 = vsel %vm409_vm0, %v4334_v48, %v3854_v46  ;;  %v429_v54 = vsel %vm409_vm0, %v4335_v51, %v3855_v43  ;;  %v3858_v56 = vpop.permute.xlu0 %3857  ;;  %v4341_v38 = vld [vmem:[%s6105_s0 + $0xe8] sm:$0xff]  ;;  %p4370_p4 = pnand %p4369_p3, %p4363_p0 }
  0x8b   :  { %v491_v57 = vpack.c.bf16 %v429_v54, %v428_v2  ;;  %v3860_v60 = vunpack.i.h.bf16 %v3858_v56  ;;  %v3859_v3 = vunpack.i.l.bf16 %v3858_v56  ;;  %v3863_v13 = vpop.permute.xlu1 %3862 }
  0x8c   :  { %v3865_v15 = vunpack.i.h.bf16 %v3863_v13  ;;  %v3864_v16 = vunpack.i.l.bf16 %v3863_v13 }
  0x8d   :  { %v430_v11 = vsel %vm409_vm0, %v4336_v4, %v3859_v3  ;;  %v431_v12 = vsel %vm409_vm0, %v4337_v9, %v3860_v60  ;;  %v4345_v4 = vld [vmem:[%s6105_s0 + $0x110] sm:$0xff] }
  0x8e   :  { %v492_v14 = vpack.c.bf16 %v431_v12, %v430_v11  ;;  %v433_v19 = vsel %vm409_vm0, %v4339_v18, %v3865_v15  ;;  %v3868_v21 = vpop.permute.xlu0 %3867 }
  0x8f   :  { %v3870_v23 = vunpack.i.h.bf16 %v3868_v21  ;;  %v3869_v24 = vunpack.i.l.bf16 %v3868_v21  ;;  %v3873_v32 = vpop.permute.xlu1 %3872 }
  0x90   :  { %702 = vmatmul.mubr.bf16.gmra.mxu0 %v486_v22  ;;  %v3875_v0 = vunpack.i.h.bf16 %v3873_v32  ;;  %v3874_v37 = vunpack.i.l.bf16 %v3873_v32 }
  0x91   :  { %709 = vmatprep.mubr.bf16.mxu0 %v489_v26  ;;  %v435_v31 = vsel %vm409_vm0, %v4340_v30, %v3870_v23  ;;  %v4347_v23 = vld [vmem:[%s6105_s0 + $0x130] sm:$0xff] }
  0x92   :  { %v437_v1 = vsel %vm409_vm0, %v4342_v40, %v3875_v0  ;;  %v3878_v41 = vpop.permute.xlu0 %3877 }
  0x93   :  { %v3880_v43 = vunpack.i.h.bf16 %v3878_v41  ;;  %v3879_v46 = vunpack.i.l.bf16 %v3878_v41  ;;  %v3883_v51 = vpop.permute.xlu1 %3882 }
  0x94   :  { %v3885_v56 = vunpack.i.h.bf16 %v3883_v51  ;;  %v3884_v60 = vunpack.i.l.bf16 %v3883_v51 }
  0x95   :  { %v439_v2 = vsel %vm409_vm0, %v4591_v47, %v3880_v43  ;;  %v4351_v43 = vld [vmem:[%s6105_s0 + $0x158] sm:$0xff] }
  0x96   :  { %v441_v11 = vsel %vm409_vm0, %v4345_v4, %v3885_v56  ;;  %v3888_v9 = vpop.permute.xlu0 %3887  ;;  %v4352_v56 = vld [vmem:[%s6105_s0 + $0x170] sm:$0xff] }
  0x97   :  { %v3890_v12 = vunpack.i.h.bf16 %v3888_v9  ;;  %v3889_v13 = vunpack.i.l.bf16 %v3888_v9  ;;  %v4353_v9 = vld [vmem:[%s6105_s0 + $0x178] sm:$0xff] }
  0x98   :  { %710 = vmatmul.mubr.bf16.gmra.mxu0 %v488_v42 }
  0x99   :  { %717 = vmatprep.mubr.bf16.mxu0 %v490_v5 }
  0xa0   :  { %718 = vmatmul.mubr.bf16.gmra.mxu0 %v4860_v27  ;;  %v4338_v27 = vld [vmem:[%s6105_s0 + $0xc0] sm:$0xff] }
  0xa1   :  { %725 = vmatprep.mubr.bf16.mxu0 %v491_v57  ;;  %v432_v17 = vsel %vm409_vm0, %v4338_v27, %v3864_v16  ;;  %v4346_v16 = vld [vmem:[%s6105_s0 + $0x128] sm:$0xff] }
  0xa2   :  { %v493_v22 = vpack.c.bf16 %v433_v19, %v432_v17  ;;  %v443_v27 = vsel %vm409_vm0, %v4346_v16, %v3890_v12  ;;  %v3893_v17 = vpop.permute.xlu1 %3892  ;;  %v4354_v12 = vld [vmem:[%s6105_s0 + $0x180] sm:$0xff] }
  0xa3   :  { %v3895_v19 = vunpack.i.h.bf16 %v3893_v17  ;;  %v3894_v21 = vunpack.i.l.bf16 %v3893_v17 }
  0xa8   :  { %726 = vmatmul.mubr.bf16.gmra.mxu0 %v4868_v36  ;;  %v67_v36 = vld [vmem:[%s6105_s0 + $0xd8] sm:$0xff] }
  0xa9   :  { %733 = vmatprep.mubr.bf16.mxu0 %v492_v14  ;;  %v434_v29 = vsel %vm409_vm0, %v67_v36, %v3869_v24  ;;  %v4348_v24 = vld [vmem:[%s6105_s0 + $0x138] sm:$0xff] }
  0xaa   :  { %v494_v35 = vpack.c.bf16 %v435_v31, %v434_v29  ;;  %v445_v36 = vsel %vm409_vm0, %v4348_v24, %v3895_v19  ;;  %v3898_v29 = vpop.permute.xlu0 %3897  ;;  %v4356_v19 = vld [vmem:[%s6105_s0 + $0x190] sm:$0xff] }
  0xab   :  { %v3900_v31 = vunpack.i.h.bf16 %v3898_v29  ;;  %v3899_v32 = vunpack.i.l.bf16 %v3898_v29 }
  0xb0   :  { %734 = vmatmul.mubr.bf16.gmra.mxu0 %v4884_v10  ;;  %v436_v10 = vsel %vm409_vm0, %v4341_v38, %v3874_v37  ;;  %v447_v37 = vsel %vm409_vm0, %v4634_v63, %v3900_v31  ;;  %v3903_v38 = vpop.permute.xlu1 %3902  ;;  %v4358_v31 = vld [vmem:[%s6105_s0 + $0x1a0] sm:$0xff] }
  0xb1   :  { %741 = vmatprep.mubr.bf16.mxu0 %v493_v22  ;;  %v495_v42 = vpack.c.bf16 %v437_v1, %v436_v10  ;;  %v3905_v40 = vunpack.i.h.bf16 %v3903_v38  ;;  %v3904_v1 = vunpack.i.l.bf16 %v3903_v38 }
  0xb8   :  { %742 = vmatmul.mubr.bf16.gmra.mxu0 %v489_v26  ;;  %v4343_v26 = vld [vmem:[%s6105_s0 + $0xf8] sm:$0xff] }
  0xb9   :  { %749 = vmatprep.mubr.bf16.mxu0 %v494_v35  ;;  %v438_v48 = vsel %vm409_vm0, %v4343_v26, %v3879_v46  ;;  %v449_v46 = vsel %vm409_vm0, %v4351_v43, %v3905_v40  ;;  %v3908_v26 = vpop.permute.xlu0 %3907 }
  0xba   :  { %v496_v54 = vpack.c.bf16 %v439_v2, %v438_v48  ;;  %v3910_v48 = vunpack.i.h.bf16 %v3908_v26  ;;  %v3909_v2 = vunpack.i.l.bf16 %v3908_v26  ;;  %v4359_v26 = vld [vmem:[%s6105_s0 + $0x1c0] sm:$0xff] }
  0xc0   :  { %750 = vmatmul.mubr.bf16.gmra.mxu0 %v490_v5  ;;  %v4344_v5 = vld [vmem:[%s6105_s0 + $0x108] sm:$0xff] }
  0xc1   :  { %757 = vmatprep.mubr.bf16.mxu0 %v495_v42  ;;  %v440_v3 = vsel %vm409_vm0, %v4344_v5, %v3884_v60  ;;  %v451_v60 = vsel %vm409_vm0, %v4352_v56, %v3910_v48  ;;  %v3913_v5 = vpop.permute.xlu1 %3912 }
  0xc2   :  { %v497_v47 = vpack.c.bf16 %v441_v11, %v440_v3  ;;  %v3915_v4 = vunpack.i.h.bf16 %v3913_v5  ;;  %v3914_v11 = vunpack.i.l.bf16 %v3913_v5 }
  0xc8   :  { %758 = vmatmul.mubr.bf16.gmra.mxu0 %v491_v57  ;;  %v76_v57 = vld [vmem:[%s6105_s0 + $0x120] sm:$0xff] }
  0xc9   :  { %765 = vmatprep.mubr.bf16.mxu0 %v496_v54  ;;  %v442_v15 = vsel %vm409_vm0, %v76_v57, %v3889_v13  ;;  %v453_v13 = vsel %vm409_vm0, %v4354_v12, %v3915_v4  ;;  %v3918_v57 = vpop.permute.xlu0 %3917 }
  0xca   :  { %v498_v18 = vpack.c.bf16 %v443_v27, %v442_v15  ;;  %v3920_v16 = vunpack.i.h.bf16 %v3918_v57  ;;  %v3919_v27 = vunpack.i.l.bf16 %v3918_v57 }
  0xd0   :  { %766 = vmatmul.mubr.bf16.gmra.mxu0 %v492_v14  ;;  %v444_v14 = vsel %vm409_vm0, %v4347_v23, %v3894_v21  ;;  %v455_v21 = vsel %vm409_vm0, %v4356_v19, %v3920_v16  ;;  %v3923_v23 = vpop.permute.xlu1 %3922 }
  0xd1   :  { %773 = vmatprep.mubr.bf16.mxu0 %v497_v47  ;;  %v499_v30 = vpack.c.bf16 %v445_v36, %v444_v14  ;;  %v3925_v24 = vunpack.i.h.bf16 %v3923_v23  ;;  %v3924_v36 = vunpack.i.l.bf16 %v3923_v23 }
  0xd8   :  { %774 = vmatmul.mubr.bf16.gmra.mxu0 %v493_v22  ;;  %v4349_v22 = vld [vmem:[%s6105_s0 + $0x140] sm:$0xff] }
  0xd9   :  { %781 = vmatprep.mubr.bf16.mxu0 %v498_v18  ;;  %v446_v0 = vsel %vm409_vm0, %v4349_v22, %v3899_v32  ;;  %v457_v32 = vsel %vm409_vm0, %v4358_v31, %v3925_v24  ;;  %v3928_v22 = vpop.permute.xlu0 %3927 }
  0xda   :  { %v500_v10 = vpack.c.bf16 %v447_v37, %v446_v0  ;;  %v3930_v37 = vunpack.i.h.bf16 %v3928_v22  ;;  %v3929_v38 = vunpack.i.l.bf16 %v3928_v22 }
  0xe0   :  { %782 = vmatmul.mubr.bf16.gmra.mxu0 %v494_v35  ;;  %v4350_v35 = vld [vmem:[%s6105_s0 + $0x150] sm:$0xff] }
  0xe1   :  { %789 = vmatprep.mubr.bf16.mxu0 %v499_v30  ;;  %v448_v41 = vsel %vm409_vm0, %v4350_v35, %v3904_v1  ;;  %v459_v1 = vsel %vm409_vm0, %v4685_v25, %v3930_v37  ;;  %v3933_v35 = vpop.permute.xlu1 %3932  ;;  %v4360_v25 = vld [vmem:[%s6105_s0 + $0x1d0] sm:$0xff] }
  0xe2   :  { %v501_v63 = vpack.c.bf16 %v449_v46, %v448_v41  ;;  %v3935_v43 = vunpack.i.h.bf16 %v3933_v35  ;;  %v3934_v46 = vunpack.i.l.bf16 %v3933_v35 }
  0xe4   :  { %v460_v48 = vsel %vm409_vm0, %v4359_v26, %v3934_v46 }
  0xe5   :  { %v3943_v5 = vpop.permute.xlu1 %3942 }
  0xe8   :  { %790 = vmatmul.mubr.bf16.gmra.mxu0 %v495_v42  ;;  %v85_v42 = vld [vmem:[%s6105_s0 + $0x168] sm:$0xff] }
  0xe9   :  { %797 = vmatprep.mubr.bf16.mxu0 %v500_v10  ;;  %v450_v51 = vsel %vm409_vm0, %v85_v42, %v3909_v2  ;;  %v3938_v2 = vpop.permute.xlu0 %3937  ;;  %v3953_v16 = vpop.permute.xlu1 %3952 }
  0xea   :  { %v502_v3 = vpack.c.bf16 %v451_v60, %v450_v51  ;;  %v3940_v51 = vunpack.i.h.bf16 %v3938_v2  ;;  %v3939_v56 = vunpack.i.l.bf16 %v3938_v2 }
  0xec   :  { %v463_v60 = vsel %vm409_vm0, %v4710_v33, %v3940_v51  ;;  %v103_v33 = vld [vmem:[%s6105_s0 + $0x1f8] sm:$0xff] }
  0xf0   :  { %798 = vmatmul.mubr.bf16.gmra.mxu0 %v496_v54  ;;  %v452_v54 = vsel %vm409_vm0, %v4353_v9, %v3914_v11  ;;  %v3945_v11 = vunpack.i.h.bf16 %v3943_v5  ;;  %v3944_v9 = vunpack.i.l.bf16 %v3943_v5  ;;  %v4194_v5 = vld [vmem:[%s6108_s3 + $0x78] sm:$0xff]  }
  0xf1   :  { %805 = vmatprep.mubr.bf16.mxu0 %v501_v63  ;;  %v503_v15 = vpack.c.bf16 %v453_v13, %v452_v54  ;;  %v3948_v54 = vpop.permute.xlu0 %3947  ;;  %3555 = vmatprep.subr.bf16.mxu1 %v4194_v5 }
  0xf2   :  { %v3950_v13 = vunpack.i.h.bf16 %v3948_v54  ;;  %v3949_v57 = vunpack.i.l.bf16 %v3948_v54 }
  0xf8   :  { %806 = vmatmul.mubr.bf16.gmra.mxu0 %v497_v47  ;;  %v4355_v47 = vld [vmem:[%s6105_s0 + $0x188] sm:$0xff] }
  0xf9   :  { %813 = vmatprep.mubr.bf16.mxu0 %v502_v3  ;;  %v454_v17 = vsel %vm409_vm0, %v4355_v47, %v3919_v27  ;;  %v3954_v47 = vunpack.i.l.bf16 %v3953_v16 }
  0xfa   :  { %v504_v14 = vpack.c.bf16 %v455_v21, %v454_v17  ;;  %v3958_v21 = vpop.permute.xlu0 %3957 }
  0xfb   :  { %v468_v17 = vsel %vm409_vm0, %v4758_v45, %v3954_v47  ;;  %v3959_v24 = vunpack.i.l.bf16 %v3958_v21 }
 0x100   :  { %814 = vmatmul.mubr.bf16.gmra.mxu0 %v498_v18  ;;  %v4357_v18 = vld [vmem:[%s6105_s0 + $0x198] sm:$0xff] }
 0x101   :  { %821 = vmatprep.mubr.bf16.mxu0 %v503_v15  ;;  %v456_v29 = vsel %vm409_vm0, %v4357_v18, %v3924_v36  ;;  %v470_v18 = vsel %vm409_vm0, %v4775_v50, %v3959_v24  ;;  %v4198_v24 = vld [vmem:[%s6108_s3 + $0x68] sm:$0xff]  }
 0x102   :  { %v505_v0 = vpack.c.bf16 %v457_v32, %v456_v29  ;;  %v3963_v29 = vpop.permute.xlu1 %3962 }
 0x103   :  { %v3965_v22 = vunpack.i.h.bf16 %v3963_v29 }
 0x108   :  { %822 = vmatmul.mubr.bf16.gmra.mxu0 %v499_v30  ;;  %v94_v30 = vld [vmem:[%s6105_s0 + $0x1b0] sm:$0xff] }
 0x109   :  { %829 = vmatprep.mubr.bf16.mxu0 %v504_v14  ;;  %v458_v40 = vsel %vm409_vm0, %v94_v30, %v3929_v38  ;;  %v5091_v38 = vld [vmem:[%s6107_s2] ss:$0 sm:$0xff]  ;;  %v473_v30 = vsel %vm409_vm0, %v4796_v55, %v3965_v22 }
 0x10a   :  { %v506_v41 = vpack.c.bf16 %v459_v1, %v458_v40  ;;  %v3968_v1 = vpop.permute.xlu0 %3967 }
 0x10b   :  { %v3970_v26 = vunpack.i.h.bf16 %v3968_v1 }
 0x110   :  { %830 = vmatmul.mubr.bf16.gmra.mxu0 %v500_v10  ;;  %v461_v10 = vsel %vm409_vm0, %v4695_v28, %v3935_v43  ;;  %v464_v28 = vsel %vm409_vm0, %v4715_v34, %v3944_v9  ;;  %v467_v34 = vsel %vm409_vm0, %v4753_v44, %v3950_v13  ;;  %v3973_v9 = vpop.permute.xlu1 %3972 }
 0x111   :  { %837 = vmatprep.mubr.bf16.mxu0 %v505_v0  ;;  %v507_v42 = vpack.c.bf16 %v461_v10, %v460_v48  ;;  %v3969_v48 = vunpack.i.l.bf16 %v3968_v1 }
 0x118   :  { %838 = vmatmul.mubr.bf16.gmra.mxu0 %v501_v63  ;;  %v462_v63 = vsel %vm409_vm0, %v4360_v25, %v3939_v56 }
 0x119   :  { %845 = vmatprep.mubr.bf16.mxu0 %v506_v41  ;;  %v508_v4 = vpack.c.bf16 %v463_v60, %v462_v63  ;;  %v475_v60 = vsel %vm409_vm0, %v4806_v58, %v3970_v26 }
 0x120   :  { %846 = vmatmul.mubr.bf16.gmra.mxu0 %v502_v3  ;;  %v465_v3 = vsel %vm409_vm0, %v4735_v39, %v3945_v11  ;;  %v3955_v39 = vunpack.i.h.bf16 %v3953_v16 }
 0x121   :  { %853 = vmatprep.mubr.bf16.mxu0 %v507_v42  ;;  %v5060_v12 = vpack.c.bf16 %v465_v3, %v464_v28  ;;  %v4195_v28 = vld [vmem:[%s6108_s3 + $0x38] sm:$0xff]  }
 0x122   :  { %v469_v19 = vsel %vm409_vm0, %v4770_v49, %v3955_v39  ;;  %3556 = vmatpush3.bf16.msra.mxu1 %v4195_v28  ;;  %v4197_v39 = vld [vmem:[%s6108_s3 + $0x30] sm:$0xff]   ;;  %v4209_v28 = vld [vmem:[%s6108_s3] sm:$0xff]  }
 0x123   :  { %v5076_v23 = vpack.c.bf16 %v469_v19, %v468_v17 }
 0x128   :  { %854 = vmatmul.mubr.bf16.gmra.mxu0 %v503_v15  ;;  %v466_v15 = vsel %vm409_vm0, %v103_v33, %v3949_v57  ;;  %v3975_v33 = vunpack.i.h.bf16 %v3973_v9 }
 0x129   :  { %861 = vmatprep.mubr.bf16.mxu0 %v508_v4  ;;  %v5069_v27 = vpack.c.bf16 %v467_v34, %v466_v15  ;;  %v3974_v15 = vunpack.i.l.bf16 %v3973_v9  ;;  %v4196_v34 = vld [vmem:[%s6108_s3 + $0x70] sm:$0xff]  }
 0x12a   :  { %3557 = vmatprep.subr.bf16.mxu1 %v4196_v34 }
 0x12b   :  { %3558 = vmatpush3.bf16.msra.mxu1 %v4197_v39 }
 0x12c   :  { %3559 = vmatprep.subr.bf16.mxu1 %v4198_v24 }
 0x130   :  { %862 = vmatmul.mubr.bf16.gmra.mxu0 %v504_v14  ;;  %v3960_v14 = vunpack.i.h.bf16 %v3958_v21  ;;  %v476_v21 = vsel %vm409_vm0, %v4811_v59, %v3974_v15 }
 0x131   :  { %869 = vmatprep.mubr.bf16.mxu0 %v5060_v12 }
 0x132   :  { %v471_v45 = vsel %vm409_vm0, %v4783_v52, %v3960_v14  ;;  %v477_v14 = vsel %vm409_vm0, %v4819_v61, %v3975_v33 }
 0x133   :  { %v5085_v49 = vpack.c.bf16 %v471_v45, %v470_v18  ;;  %v515_v45 = vpack.c.bf16 %v477_v14, %v476_v21 }
 0x138   :  { %870 = vmatmul.mubr.bf16.gmra.mxu0 %v505_v0  ;;  %v3964_v0 = vunpack.i.l.bf16 %v3963_v29 }
 0x139   :  { %877 = vmatprep.mubr.bf16.mxu0 %v5069_v27 }
 0x13a   :  { %v472_v52 = vsel %vm409_vm0, %v4788_v53, %v3964_v0  ;;  %v112_v53 = vld [vmem:[%s6105_s0 + $0x240] sm:$0xff]  ;;  %s4386_s0 = smov 32  }
 0x13b   :  { %v5099_v43 = vpack.c.bf16 %v473_v30, %v472_v52  ;;  %v474_v63 = vsel %vm409_vm0, %v112_v53, %v3969_v48  ;;  %v4202_v52 = vld [vmem:[%s6108_s3 + $0x58] sm:$0xff]   ;;  %v3983_v30 = vpop.permute.xlu1 %3982  ;;  %v4206_v53 = vld [vmem:[%s6108_s3 + $0x48] sm:$0xff]  }
 0x13c   :  { %v514_v13 = vpack.c.bf16 %v475_v60, %v474_v63 }
 0x140   :  { %v5078_v44 = vpop.f32.mrf.mxu0  ;;  %878 = vmatmul.mubr.bf16.gmra.mxu0 %v506_v41 }
 0x141   :  { %885 = vmatprep.mubr.bf16.mxu0 %v5076_v23 }
 0x142   :  { %v689_v36 = vpop.f32.mrf.mxu0 }
 0x143   :  { %v4199_v36 = vld [vmem:[%s6108_s3 + $0x28] sm:$0xff]  }
 0x144   :  { %v690_v31 = vpop.f32.mrf.mxu0  ;;  %3560 = vmatpush3.bf16.msra.mxu1 %v4199_v36 }
 0x145   :  { %v691_v40 = vadd.f32 %v5091_v38, %v690_v31  ;;  %v4200_v31 = vld [vmem:[%s6108_s3 + $0x60] sm:$0xff]  }
 0x146   :  { %v692_v32 = vpop.f32.mrf.mxu0  ;;  %3561 = vmatprep.subr.bf16.mxu1 %v4200_v31 }
 0x147   :  { %v943_v10 = vmax.f32 %v691_v40, 0.0  ;;  %v4201_v32 = vld [vmem:[%s6108_s3 + $0x20] sm:$0xff]   ;;  %v4203_v40 = vld [vmem:[%s6108_s3 + $0x18] sm:$0xff]  }
 0x148   :  { %v695_v37 = vpop.f32.mrf.mxu0  ;;  %886 = vmatmul.mubr.bf16.gmra.mxu0 %v507_v42  ;;  %3562 = vmatpush3.bf16.msra.mxu1 %v4201_v32 }
 0x149   :  { %893 = vmatprep.mubr.bf16.mxu0 %v5085_v49  ;;  %v5102_v2 = vadd.f32 %v5091_v38, %v695_v37  ;;  %3563 = vmatprep.subr.bf16.mxu1 %v4202_v52 }
 0x14a   :  { %v697_v50 = vpop.f32.mrf.mxu0 }
 0x14b   :  { %v944_v11 = vmax.f32 %v5102_v2, 0.0 }
 0x14c   :  { %v698_v35 = vpop.f32.mrf.mxu0  ;;  %3564 = vmatpush3.bf16.msra.mxu1 %v4203_v40 }
 0x14d   :  { %v699_v41 = vadd.f32 %v5091_v38, %v698_v35 }
 0x14e   :  { %v700_v46 = vpop.f32.mrf.mxu0 }
 0x14f   :  { %v945_v42 = vmax.f32 %v699_v41, 0.0  ;;  %v3985_v41 = vunpack.i.h.bf16 %v3983_v30  ;;  %v3984_v46 = vunpack.i.l.bf16 %v3983_v30 }
 0x150   :  { %v703_v55 = vpop.f32.mrf.mxu0  ;;  %894 = vmatmul.mubr.bf16.gmra.mxu0 %v508_v4 }
 0x151   :  { %v3986_v51 = vpack.i.bf16 %v945_v42, %v943_v10  ;;  %v5108_v56 = vadd.f32 %v5091_v38, %v703_v55  ;;  %901 = vmatprep.mubr.bf16.mxu0 %v5099_v43  ;;  %v480_v10 = vsel %vm409_vm0, %v4837_v8, %v3984_v46 }
 0x152   :  { %v705_v25 = vpop.f32.mrf.mxu0 }
 0x153   :  { %v946_v4 = vmax.f32 %v5108_v56, 0.0  ;;  %3987 = vrot.lane.b32.xlu1 %v3986_v51, %s4386_s0 }
 0x154   :  { %v706_v3 = vpop.f32.mrf.mxu0 }
 0x155   :  { %v3991_v58 = vpack.i.bf16 %v946_v4, %v944_v11  ;;  %v5128_v54 = vadd.f32 %v5091_v38, %v706_v3 }
 0x156   :  { %v708_v57 = vpop.f32.mrf.mxu0 }
 0x157   :  { %v947_v16 = vmax.f32 %v5128_v54, 0.0  ;;  %3992 = vrot.lane.b32.xlu1 %v3991_v58, %s4385_s14 }
 0x158   :  { %v5138_v47 = vpop.f32.mrf.mxu0  ;;  %902 = vmatmul.mubr.bf16.gmra.mxu0 %v5060_v12  ;;  %v3978_v12 = vpop.permute.xlu0 %3977 }
 0x159   :  { %v3996_v17 = vpack.i.bf16 %v947_v16, %v945_v42  ;;  %909 = vmatprep.mubr.bf16.mxu0 %v514_v13  ;;  %v3980_v29 = vunpack.i.h.bf16 %v3978_v12  ;;  %v3979_v61 = vunpack.i.l.bf16 %v3978_v12  ;;  %v481_v42 = vsel %vm409_vm0, %v4851_v20, %v3985_v41  ;;  %v4208_v20 = vld [vmem:[%s6108_s3 + $0x40] sm:$0xff]  }
 0x15a   :  { %v713_v19 = vpop.f32.mrf.mxu0  ;;  %v517_v63 = vpack.c.bf16 %v481_v42, %v480_v10  ;;  %v712_v32 = vadd.f32 %v5091_v38, %v5138_v47 }
 0x15b   :  { %3997 = vrot.lane.b32.xlu1 %v3996_v17, %s4387_s16  ;;  %v478_v37 = vsel %vm409_vm0, %v4824_v62, %v3979_v61  ;;  %v479_v50 = vsel %vm409_vm0, %v4832_v6, %v3980_v29  ;;  %v4204_v62 = vld [vmem:[%s6108_s3 + $0x50] sm:$0xff]  }
 0x15c   :  { %v5154_v18 = vpop.f32.mrf.mxu0  ;;  %v516_v1 = vpack.c.bf16 %v479_v50, %v478_v37  ;;  %v4205_v6 = vld [vmem:[%s6108_s3 + $0x10] sm:$0xff]   ;;  %3565 = vmatprep.subr.bf16.mxu1 %v4204_v62  ;;  %v948_v30 = vmax.f32 %v712_v32, 0.0 }
 0x15d   :  { %3566 = vmatpush3.bf16.msra.mxu1 %v4205_v6  ;;  %v715_v40 = vadd.f32 %v5091_v38, %v5154_v18 }
 0x15e   :  { %v716_v59 = vpop.f32.mrf.mxu0  ;;  %3567 = vmatprep.subr.bf16.mxu1 %v4206_v53 }
 0x160   :  { %v5162_v22 = vpop.f32.mrf.mxu0  ;;  %910 = vmatmul.mubr.bf16.gmra.mxu0 %v5069_v27 }
 0x161   :  { %917 = vmatprep.mubr.bf16.mxu0 %v515_v45 }
 0x162   :  { %v721_v0 = vpop.f32.mrf.mxu0 }
 0x164   :  { %v722_v27 = vpop.f32.mrf.mxu0 }
 0x165   :  { %v723_v55 = vadd.f32 %v5091_v38, %v722_v27 }
 0x166   :  { %v724_v35 = vpop.f32.mrf.mxu0 }
 0x167   :  { %v951_v60 = vmax.f32 %v723_v55, 0.0 }
 0x168   :  { %v727_v26 = vpop.f32.mrf.mxu0  ;;  %918 = vmatmul.mubr.bf16.gmra.mxu0 %v5076_v23  ;;  %v4207_v23 = vld [vmem:[%s6108_s3 + $0x8] sm:$0xff]  }
 0x169   :  { %925 = vmatprep.mubr.bf16.mxu0 %v516_v1  ;;  %3568 = vmatpush3.bf16.msra.mxu1 %v4207_v23  ;;  %v5198_v5 = vadd.f32 %v5091_v38, %v727_v26 }
 0x16a   :  { %v729_v48 = vpop.f32.mrf.mxu0  ;;  %3569 = vmatprep.subr.bf16.mxu1 %v4208_v20 }
 0x16b   :  { %v952_v33 = vmax.f32 %v5198_v5, 0.0 }
 0x16c   :  { %v730_v51 = vpop.f32.mrf.mxu0 }
 0x16d   :  { %v731_v25 = vadd.f32 %v5091_v38, %v730_v51  ;;  %3570 = vmatpush3.bf16.msra.mxu1 %v4209_v28 }
 0x16e   :  { %v732_v8 = vpop.f32.mrf.mxu0 }
 0x16f   :  { %v953_v9 = vmax.f32 %v731_v25, 0.0 }
 0x170   :  { %v735_v3 = vpop.f32.mrf.mxu0  ;;  %926 = vmatmul.mubr.bf16.gmra.mxu0 %v5085_v49 }
 0x171   :  { %v4001_v58 = vpack.i.bf16 %v953_v9, %v951_v60  ;;  %v5205_v13 = vadd.f32 %v5091_v38, %v735_v3  ;;  %933 = vmatprep.mubr.bf16.mxu0 %v517_v63 }
 0x172   :  { %v737_v57 = vpop.f32.mrf.mxu0 }
 0x173   :  { %v954_v15 = vmax.f32 %v5205_v13, 0.0  ;;  %4002 = vrot.lane.b32.xlu0 %v4001_v58, %s4386_s0 }
 0x174   :  { %v738_v34 = vpop.f32.mrf.mxu0 }
 0x175   :  { %v4006_v49 = vpack.i.bf16 %v954_v15, %v952_v33  ;;  %v5215_v39 = vadd.f32 %v5091_v38, %v738_v34 }
 0x176   :  { %v740_v17 = vpop.f32.mrf.mxu0 }
 0x177   :  { %v955_v19 = vmax.f32 %v5215_v39, 0.0  ;;  %4007 = vrot.lane.b32.xlu0 %v4006_v49, %s4385_s14 }
 0x178   :  { %v743_v21 = vpop.f32.mrf.mxu0  ;;  %934 = vmatmul.mubr.bf16.gmra.mxu0 %v5099_v43 }
 0x179   :  { %v4011_v14 = vpack.i.bf16 %v955_v19, %v953_v9 }
 0x17a   :  { %v745_v24 = vpop.f32.mrf.mxu0 }
 0x17b   :  { %4012 = vrot.lane.b32.xlu0 %v4011_v14, %s4387_s16  ;;  %v744_v14 = vadd.f32 %v5091_v38, %v743_v21 }
 0x17c   :  { %v746_v12 = vpop.f32.mrf.mxu0 }
 0x17d   :  { %v747_v32 = vadd.f32 %v5091_v38, %v746_v12 }
 0x17e   :  { %v748_v36 = vpop.f32.mrf.mxu0 }
 0x17f   :  { %v957_v39 = vmax.f32 %v747_v32, 0.0 }
 0x180   :  { %v5223_v45 = vpop.f32.mrf.mxu0 }
 0x182   :  { %v753_v59 = vpop.f32.mrf.mxu0 }
 0x184   :  { %v754_v29 = vpop.f32.mrf.mxu0 }
 0x185   :  { %v755_v61 = vadd.f32 %v5091_v38, %v754_v29 }
 0x186   :  { %v756_v31 = vpop.f32.mrf.mxu0 }
 0x187   :  { %v959_v0 = vmax.f32 %v755_v61, 0.0  ;;  %v956_v31 = vmax.f32 %v744_v14, 0.0 }
 0x188   :  { %v759_v43 = vpop.f32.mrf.mxu0 }
 0x189   :  { %v4016_v37 = vpack.i.bf16 %v947_v16, %v959_v0  ;;  %v5231_v50 = vadd.f32 %v5091_v38, %v759_v43  ;;  %v949_v16 = vmax.f32 %v715_v40, 0.0 }
 0x18a   :  { %v761_v52 = vpop.f32.mrf.mxu0 }
 0x18b   :  { %v960_v27 = vmax.f32 %v5231_v50, 0.0  ;;  %4017 = vrot.lane.b32.xlu1 %v4016_v37, %s4386_s0 }
 0x18c   :  { %v762_v1 = vpop.f32.mrf.mxu0 }
 0x18d   :  { %v4021_v47 = vpack.i.bf16 %v948_v30, %v960_v27  ;;  %v763_v35 = vadd.f32 %v5091_v38, %v762_v1 }
 0x18e   :  { %v764_v54 = vpop.f32.mrf.mxu0 }
 0x18f   :  { %v961_v41 = vmax.f32 %v763_v35, 0.0  ;;  %4022 = vrot.lane.b32.xlu1 %v4021_v47, %s4385_s14 }
 0x190   :  { %v767_v46 = vpop.f32.mrf.mxu0 }
 0x191   :  { %v4026_v62 = vpack.i.bf16 %v949_v16, %v961_v41  ;;  %v5244_v10 = vadd.f32 %v5091_v38, %v767_v46 }
 0x192   :  { %v769_v6 = vpop.f32.mrf.mxu0 }
 0x193   :  { %4027 = vrot.lane.b32.xlu1 %v4026_v62, %s4387_s16  ;;  %v962_v25 = vmax.f32 %v5244_v10, 0.0 }
 0x194   :  { %v770_v18 = vpop.f32.mrf.mxu0 }
 0x195   :  { %v771_v26 = vadd.f32 %v5091_v38, %v770_v18 }
 0x196   :  { %v772_v48 = vpop.f32.mrf.mxu0 }
 0x197   :  { %v963_v42 = vmax.f32 %v771_v26, 0.0 }
 0x198   :  { %v775_v53 = vpop.f32.mrf.mxu0 }
 0x199   :  { %v4031_v55 = vpack.i.bf16 %v963_v42, %v961_v41  ;;  %v776_v23 = vadd.f32 %v5091_v38, %v775_v53 }
 0x19a   :  { %v777_v51 = vpop.f32.mrf.mxu0 }
 0x19b   :  { %v964_v63 = vmax.f32 %v776_v23, 0.0  ;;  %4032 = vrot.lane.b32.xlu1 %v4031_v55, %s4386_s0 }
 0x19c   :  { %v778_v8 = vpop.f32.mrf.mxu0 }
 0x19d   :  { %v4036_v20 = vpack.i.bf16 %v964_v63, %v962_v25  ;;  %v779_v60 = vadd.f32 %v5091_v38, %v778_v8 }
 0x19e   :  { %v780_v9 = vpop.f32.mrf.mxu0 }
 0x19f   :  { %v965_v28 = vmax.f32 %v779_v60, 0.0  ;;  %4037 = vrot.lane.b32.xlu1 %v4036_v20, %s4385_s14 }
 0x1a0   :  { %v5253_v3 = vpop.f32.mrf.mxu0 }
 0x1a1   :  { %v4041_v58 = vpack.i.bf16 %v965_v28, %v963_v42 }
 0x1a2   :  { %v785_v57 = vpop.f32.mrf.mxu0 }
 0x1a3   :  { %4042 = vrot.lane.b32.xlu1 %v4041_v58, %s4387_s16 }
 0x1a4   :  { %v786_v34 = vpop.f32.mrf.mxu0 }
 0x1a5   :  { %v787_v49 = vadd.f32 %v5091_v38, %v786_v34 }
 0x1a6   :  { %v788_v17 = vpop.f32.mrf.mxu0 }
 0x1a7   :  { %v967_v24 = vmax.f32 %v787_v49, 0.0  ;;  %v4210_v17 = vld [vmem:[%s6108_s3 + $0xf8] sm:$0xff]  }
 0x1a8   :  { %v791_v36 = vpop.f32.mrf.mxu0  ;;  %3601 = vmatprep.subr.bf16.mxu1 %v4210_v17 }
 0x1a9   :  { %v4046_v59 = vpack.i.bf16 %v955_v19, %v967_v24  ;;  %v5261_v29 = vadd.f32 %v5091_v38, %v791_v36 }
 0x1aa   :  { %v793_v61 = vpop.f32.mrf.mxu0 }
 0x1ab   :  { %v968_v0 = vmax.f32 %v5261_v29, 0.0  ;;  %4047 = vrot.lane.b32.xlu0 %v4046_v59, %s4386_s0 }
 0x1ac   :  { %v794_v43 = vpop.f32.mrf.mxu0 }
 0x1ad   :  { %v4051_v21 = vpack.i.bf16 %v956_v31, %v968_v0  ;;  %v795_v37 = vadd.f32 %v5091_v38, %v794_v43 }
 0x1ae   :  { %v796_v52 = vpop.f32.mrf.mxu0 }
 0x1af   :  { %v969_v19 = vmax.f32 %v795_v37, 0.0  ;;  %4052 = vrot.lane.b32.xlu0 %v4051_v21, %s4385_s14 }
 0x1b0   :  { %v799_v30 = vpop.f32.mrf.mxu0 }
 0x1b1   :  { %v4056_v40 = vpack.i.bf16 %v957_v39, %v969_v19  ;;  %v5273_v54 = vadd.f32 %v5091_v38, %v799_v30 }
 0x1b2   :  { %v801_v1 = vpop.f32.mrf.mxu0 }
 0x1b3   :  { %4057 = vrot.lane.b32.xlu0 %v4056_v40, %s4387_s16  ;;  %v970_v18 = vmax.f32 %v5273_v54, 0.0 }
 0x1b4   :  { %v802_v12 = vpop.f32.mrf.mxu0 }
 0x1b5   :  { %v803_v47 = vadd.f32 %v5091_v38, %v802_v12 }
 0x1b6   :  { %v804_v35 = vpop.f32.mrf.mxu0 }
 0x1b7   :  { %v971_v16 = vmax.f32 %v803_v47, 0.0 }
 0x1b8   :  { %v807_v41 = vpop.f32.mrf.mxu0 }
 0x1b9   :  { %v4061_v46 = vpack.i.bf16 %v971_v16, %v969_v19  ;;  %v808_v62 = vadd.f32 %v5091_v38, %v807_v41 }
 0x1ba   :  { %v809_v6 = vpop.f32.mrf.mxu0 }
 0x1bb   :  { %v972_v26 = vmax.f32 %v808_v62, 0.0  ;;  %4062 = vrot.lane.b32.xlu0 %v4061_v46, %s4386_s0 }
 0x1bc   :  { %v810_v48 = vpop.f32.mrf.mxu0 }
 0x1bd   :  { %v4066_v42 = vpack.i.bf16 %v972_v26, %v970_v18  ;;  %v811_v53 = vadd.f32 %v5091_v38, %v810_v48  ;;  %v688_v26 = vadd.f32 %v5091_v38, %v5078_v44 }
 0x1be   :  { %v812_v55 = vpop.f32.mrf.mxu0 }
 0x1bf   :  { %v973_v23 = vmax.f32 %v811_v53, 0.0  ;;  %4067 = vrot.lane.b32.xlu0 %v4066_v42, %s4385_s14 }
 0x1c0   :  { %v5282_v51 = vpop.f32.mrf.mxu0 }
 0x1c1   :  { %v4071_v63 = vpack.i.bf16 %v973_v23, %v971_v16 }
 0x1c2   :  { %v817_v8 = vpop.f32.mrf.mxu0 }
 0x1c3   :  { %4072 = vrot.lane.b32.xlu0 %v4071_v63, %s4387_s16  ;;  %v720_v63 = vadd.f32 %v5091_v38, %v5162_v22 }
 0x1c4   :  { %v818_v20 = vpop.f32.mrf.mxu0 }
 0x1c5   :  { %v819_v58 = vadd.f32 %v5091_v38, %v818_v20  ;;  %v3988_v12 = vpop.permute.xlu1 %3987 }
 0x1c6   :  { %v820_v60 = vpop.f32.mrf.mxu0  ;;  %v3990_v55 = vunpack.i.h.bf16 %v3988_v12  ;;  %v3989_v23 = vunpack.i.l.bf16 %v3988_v12 }
 0x1c7   :  { %v975_v14 = vmax.f32 %v819_v58, 0.0 }
 0x1c8   :  { %v823_v9 = vpop.f32.mrf.mxu0 }
 0x1c9   :  { %v5291_v24 = vadd.f32 %v5091_v38, %v823_v9  ;;  %v3993_v41 = vpop.permute.xlu1 %3992  ;;  %v942_v9 = vmax.f32 %v688_v26, 0.0 }
 0x1ca   :  { %v825_v28 = vpop.f32.mrf.mxu0  ;;  %v3995_v8 = vunpack.i.h.bf16 %v3993_v41  ;;  %v3994_v20 = vunpack.i.l.bf16 %v3993_v41 }
 0x1cb   :  { %v976_v43 = vmax.f32 %v5291_v24, 0.0  ;;  %v1055_v22 = vsel %vm1054_vm1, %v942_v9, %v3989_v23 }
 0x1cc   :  { %v826_v57 = vpop.f32.mrf.mxu0 }
 0x1cd   :  { %v827_v34 = vadd.f32 %v5091_v38, %v826_v57  ;;  %v3998_v42 = vpop.permute.xlu1 %3997 }
 0x1ce   :  { %v828_v49 = vpop.f32.mrf.mxu0  ;;  %v4000_v28 = vunpack.i.h.bf16 %v3998_v42  ;;  %v3999_v58 = vunpack.i.l.bf16 %v3998_v42 }
 0x1cf   :  { %v977_v36 = vmax.f32 %v827_v34, 0.0 }
 0x1d0   :  { %v831_v59 = vpop.f32.mrf.mxu0 }
 0x1d1   :  { %v4076_v61 = vpack.i.bf16 %v977_v36, %v975_v14  ;;  %v5294_v31 = vadd.f32 %v5091_v38, %v831_v59  ;;  %v1112_v14 = vsel %vm1054_vm1, %v944_v11, %v3990_v55 }
 0x1d2   :  { %v833_v32 = vpop.f32.mrf.mxu0 }
 0x1d3   :  { %v978_v21 = vmax.f32 %v5294_v31, 0.0  ;;  %4077 = vrot.lane.b32.xlu1 %v4076_v61, %s4386_s0  ;;  %v950_v61 = vmax.f32 %v720_v63, 0.0  ;;  %v1056_v32 = vsel %vm409_vm0, %v1055_v22, %v3994_v20  ;;  %v4214_v22 = vld [vmem:[%s6108_s3 + $0xe8] sm:$0xff]  }
 0x1d4   :  { %v834_v37 = vpop.f32.mrf.mxu0 }
 0x1d5   :  { %v4081_v52 = vpack.i.bf16 %v978_v21, %v976_v43  ;;  %v5304_v39 = vadd.f32 %v5091_v38, %v834_v37  ;;  %v1113_v37 = vsel %vm409_vm0, %v1112_v14, %v3995_v8 }
 0x1d6   :  { %v836_v19 = vpop.f32.mrf.mxu0  ;;  %v1114_v2 = vsel %vm1057_vm2, %v1113_v37, %v4000_v28  ;;  %v4212_v28 = vld [vmem:[%s6108_s3 + $0xf0] sm:$0xff]  }
 0x1d7   :  { %v979_v30 = vmax.f32 %v5304_v39, 0.0  ;;  %4082 = vrot.lane.b32.xlu1 %v4081_v52, %s4385_s14 }
 0x1d8   :  { %v5308_v40 = vpop.f32.mrf.mxu0 }
 0x1d9   :  { %v4086_v1 = vpack.i.bf16 %v979_v30, %v977_v36 }
 0x1da   :  { %v841_v47 = vpop.f32.mrf.mxu0 }
 0x1db   :  { %4087 = vrot.lane.b32.xlu1 %v4086_v1, %s4387_s16  ;;  %v1058_v47 = vsel %vm1057_vm2, %v1056_v32, %v3999_v58 }
 0x1dc   :  { %v5313_v35 = vpop.f32.mrf.mxu0  ;;  %v1352_v9 = vpack.c.bf16 %v1114_v2, %v1058_v47 }
 0x1de   :  { %v844_v16 = vpop.f32.mrf.mxu0 }
 0x1e0   :  { %v5315_v46 = vpop.f32.mrf.mxu0 }
 0x1e2   :  { %v849_v62 = vpop.f32.mrf.mxu0 }
 0x1e4   :  { %v850_v6 = vpop.f32.mrf.mxu0 }
 0x1e5   :  { %v4003_v48 = vpop.permute.xlu0 %4002  ;;  %v851_v57 = vadd.f32 %v5091_v38, %v850_v6 }
 0x1e6   :  { %v852_v53 = vpop.f32.mrf.mxu0  ;;  %v4005_v49 = vunpack.i.h.bf16 %v4003_v48  ;;  %v4004_v44 = vunpack.i.l.bf16 %v4003_v48 }
 0x1e7   :  { %v983_v19 = vmax.f32 %v851_v57, 0.0 }
 0x1e8   :  { %v855_v60 = vpop.f32.mrf.mxu0  ;;  %v1059_v62 = vsel %vm1054_vm1, %v950_v61, %v4004_v44  ;;  %v1115_v6 = vsel %vm1054_vm1, %v952_v33, %v4005_v49  ;;  %v4211_v33 = vld [vmem:[%s6108_s3 + $0xb8] sm:$0xff]  }
 0x1e9   :  { %v4008_v34 = vpop.permute.xlu0 %4007  ;;  %v5336_v26 = vadd.f32 %v5091_v38, %v855_v60 }
 0x1ea   :  { %v857_v17 = vpop.f32.mrf.mxu0  ;;  %v4010_v36 = vunpack.i.h.bf16 %v4008_v34  ;;  %v4009_v59 = vunpack.i.l.bf16 %v4008_v34 }
 0x1eb   :  { %v984_v58 = vmax.f32 %v5336_v26, 0.0  ;;  %v4213_v17 = vld [vmem:[%s6108_s3 + $0xb0] sm:$0xff]  }
 0x1ec   :  { %v858_v52 = vpop.f32.mrf.mxu0  ;;  %v1060_v42 = vsel %vm409_vm0, %v1059_v62, %v4009_v59  ;;  %v1116_v53 = vsel %vm409_vm0, %v1115_v6, %v4010_v36  ;;  %v840_v36 = vadd.f32 %v5091_v38, %v5308_v40  ;;  %v843_v40 = vadd.f32 %v5091_v38, %v5313_v35  ;;  %v4217_v6 = vld [vmem:[%s6108_s3 + $0xa0] sm:$0xff]   ;;  %v4218_v35 = vld [vmem:[%s6108_s3 + $0xd8] sm:$0xff]  }
 0x1ed   :  { %v859_v1 = vadd.f32 %v5091_v38, %v858_v52  ;;  %v4013_v12 = vpop.permute.xlu0 %4012  ;;  %v4215_v52 = vld [vmem:[%s6108_s3 + $0xa8] sm:$0xff]  }
 0x1ee   :  { %v4015_v16 = vunpack.i.h.bf16 %v4013_v12  ;;  %v4014_v11 = vunpack.i.l.bf16 %v4013_v12  ;;  %v860_v41 = vpop.f32.mrf.mxu0  ;;  %v980_v12 = vmax.f32 %v840_v36, 0.0 }
 0x1ef   :  { %v985_v48 = vmax.f32 %v859_v1, 0.0  ;;  %v4216_v1 = vld [vmem:[%s6108_s3 + $0xe0] sm:$0xff]  }
 0x1f0   :  { %v863_v55 = vpop.f32.mrf.mxu0  ;;  %v1061_v23 = vsel %vm1057_vm2, %v1060_v42, %v4014_v11  ;;  %v1117_v63 = vsel %vm1057_vm2, %v1116_v53, %v4015_v16  ;;  %v981_v42 = vmax.f32 %v843_v40, 0.0 }
 0x1f1   :  { %v4091_v8 = vpack.i.bf16 %v985_v48, %v983_v19  ;;  %v5343_v20 = vadd.f32 %v5091_v38, %v863_v55  ;;  %v1353_v5 = vpack.c.bf16 %v1117_v63, %v1061_v23  ;;  %v4219_v55 = vld [vmem:[%s6108_s3 + $0x98] sm:$0xff]   ;;  %v4220_v63 = vld [vmem:[%s6108_s3 + $0xd0] sm:$0xff]  }
 0x1f2   :  { %v865_v60 = vpop.f32.mrf.mxu0 }
 0x1f3   :  { %v986_v57 = vmax.f32 %v5343_v20, 0.0  ;;  %4092 = vrot.lane.b32.xlu0 %v4091_v8, %s4386_s0  ;;  %1667 = vmatprep.mubr.bf16.mxu1 %v1353_v5 }
 0x1f4   :  { %v866_v34 = vpop.f32.mrf.mxu0  ;;  %1668 = vmatmul.mubr.bf16.vlgmr.msra.gmra.mxu1 %v1352_v9  ;;  %v4222_v9 = vld [vmem:[%s6108_s3 + $0xc8] sm:$0xff]  }
 0x1f5   :  { %v4096_v49 = vpack.i.bf16 %v986_v57, %v984_v58  ;;  %v867_v44 = vadd.f32 %v5091_v38, %v866_v34  ;;  %3602 = vmatpush3.bf16.msra.mxu1 %v4211_v33  ;;  %v4221_v33 = vld [vmem:[%s6108_s3 + $0x90] sm:$0xff]  }
 0x1f6   :  { %v868_v14 = vpop.f32.mrf.mxu0  ;;  %3603 = vmatprep.subr.bf16.mxu1 %v4212_v28 }
 0x1f7   :  { %v987_v59 = vmax.f32 %v867_v44, 0.0  ;;  %4097 = vrot.lane.b32.xlu0 %v4096_v49, %s4385_s14  ;;  %v4223_v49 = vld [vmem:[%s6108_s3 + $0x88] sm:$0xff]  }
 0x1f8   :  { %v871_v61 = vpop.f32.mrf.mxu0 }
 0x1f9   :  { %v4101_v32 = vpack.i.bf16 %v987_v59, %v985_v48  ;;  %v872_v37 = vadd.f32 %v5091_v38, %v871_v61  ;;  %3604 = vmatpush3.bf16.msra.mxu1 %v4213_v17  ;;  %v4106_v16 = vpack.i.bf16 %v979_v30, %v987_v59  ;;  %v4224_v17 = vld [vmem:[%s6108_s3 + $0xc0] sm:$0xff]  }
 0x1fa   :  { %v873_v19 = vpop.f32.mrf.mxu0  ;;  %3605 = vmatprep.subr.bf16.mxu1 %v4214_v22  ;;  %v4225_v61 = vld [vmem:[%s6108_s3 + $0x80] sm:$0xff]  }
 0x1fb   :  { %v988_v47 = vmax.f32 %v872_v37, 0.0  ;;  %4102 = vrot.lane.b32.xlu0 %v4101_v32, %s4387_s16 }
 0x1fc   :  { %v874_v2 = vpop.f32.mrf.mxu0 }
 0x1fd   :  { %v4111_v11 = vpack.i.bf16 %v980_v12, %v988_v47  ;;  %v875_v41 = vadd.f32 %v5091_v38, %v874_v2  ;;  %v5381_v62 = vpop.permute.xlu1 %4017  ;;  %3606 = vmatpush3.bf16.msra.mxu1 %v4215_v52 }
 0x1fe   :  { %v876_v48 = vpop.f32.mrf.mxu0  ;;  %3607 = vmatprep.subr.bf16.mxu1 %v4216_v1  ;;  %v752_v1 = vadd.f32 %v5091_v38, %v5223_v45 }
 0x1ff   :  { %v989_v53 = vmax.f32 %v875_v41, 0.0  ;;  %4107 = vrot.lane.b32.xlu0 %v4106_v16, %s4386_s0  ;;  %4112 = vrot.lane.b32.xlu1 %v4111_v11, %s4385_s14  ;;  %v4019_v16 = vunpack.i.l.bf16 %v5381_v62 }
 0x200   :  { %v5391_v39 = vpop.f32.mrf.mxu0 }
 0x201   :  { %v4116_v30 = vpack.i.bf16 %v981_v42, %v989_v53  ;;  %3608 = vmatpush3.bf16.msra.mxu1 %v4217_v6  ;;  %v5399_v8 = vpop.permute.xlu1 %4022  ;;  %v958_v42 = vmax.f32 %v752_v1, 0.0  ;;  %v784_v1 = vadd.f32 %v5091_v38, %v5253_v3 }
 0x202   :  { %v881_v23 = vpop.f32.mrf.mxu0  ;;  %3609 = vmatprep.subr.bf16.mxu1 %v4218_v35  ;;  %v4024_v6 = vunpack.i.l.bf16 %v5399_v8 }
 0x203   :  { %4117 = vrot.lane.b32.xlu0 %v4116_v30, %s4387_s16 }
 0x204   :  { %v882_v5 = vpop.f32.mrf.mxu0 }
 0x205   :  { %3610 = vmatpush3.bf16.msra.mxu1 %v4219_v55  ;;  %v5408_v34 = vpop.permute.xlu1 %4027  ;;  %v883_v14 = vadd.f32 %v5091_v38, %v882_v5  ;;  %v1062_v5 = vsel %vm1054_vm1, %v958_v42, %v4019_v16  ;;  %v4025_v16 = vunpack.i.h.bf16 %v5399_v8 }
 0x206   :  { %v884_v60 = vpop.f32.mrf.mxu0  ;;  %3611 = vmatprep.subr.bf16.mxu1 %v4220_v63  ;;  %v4029_v53 = vunpack.i.l.bf16 %v5408_v34 }
 0x207   :  { %v991_v37 = vmax.f32 %v883_v14, 0.0 }
 0x208   :  { %v887_v28 = vpop.f32.mrf.mxu0 }
 0x209   :  { %3612 = vmatpush3.bf16.msra.mxu1 %v4221_v33  ;;  %v5424_v52 = vadd.f32 %v5091_v38, %v887_v28  ;;  %v1063_v28 = vsel %vm409_vm0, %v1062_v5, %v4024_v6 }
 0x20a   :  { %v889_v44 = vpop.f32.mrf.mxu0  ;;  %3613 = vmatprep.subr.bf16.mxu1 %v4222_v9  ;;  %v5462_v14 = vsel %vm1057_vm2, %v1063_v28, %v4029_v53 }
 0x20b   :  { %v992_v48 = vmax.f32 %v5424_v52, 0.0 }
 0x20c   :  { %v890_v22 = vpop.f32.mrf.mxu0 }
 0x20d   :  { %v891_v36 = vadd.f32 %v5091_v38, %v890_v22  ;;  %v5418_v59 = vpop.permute.xlu1 %4032  ;;  %3614 = vmatpush3.bf16.msra.mxu1 %v4223_v49 }
 0x20e   :  { %v892_v32 = vpop.f32.mrf.mxu0  ;;  %3615 = vmatprep.subr.bf16.mxu1 %v4224_v17  ;;  %v4034_v11 = vunpack.i.l.bf16 %v5418_v59 }
 0x20f   :  { %v993_v19 = vmax.f32 %v891_v36, 0.0 }
 0x210   :  { %v895_v12 = vpop.f32.mrf.mxu0  ;;  %v1118_v33 = vsel %vm1054_vm1, %v960_v27, %v4034_v11 }
 0x211   :  { %v4121_v40 = vpack.i.bf16 %v993_v19, %v991_v37  ;;  %v5429_v47 = vadd.f32 %v5091_v38, %v895_v12  ;;  %v5431_v2 = vpop.permute.xlu1 %4037  ;;  %3616 = vmatpush3.bf16.msra.mxu1 %v4225_v61  ;;  %v4020_v12 = vunpack.i.h.bf16 %v5381_v62 }
 0x212   :  { %v897_v41 = vpop.f32.mrf.mxu0  ;;  %v4039_v45 = vunpack.i.l.bf16 %v5431_v2 }
 0x213   :  { %v994_v35 = vmax.f32 %v5429_v47, 0.0  ;;  %4122 = vrot.lane.b32.xlu0 %v4121_v40, %s4386_s0 }
 0x214   :  { %v898_v30 = vpop.f32.mrf.mxu0  ;;  %v1119_v49 = vsel %vm409_vm0, %v1118_v33, %v4039_v45  ;;  %v4030_v45 = vunpack.i.h.bf16 %v5408_v34 }
 0x215   :  { %v4126_v55 = vpack.i.bf16 %v994_v35, %v992_v48  ;;  %v5446_v23 = vadd.f32 %v5091_v38, %v898_v30  ;;  %v5448_v63 = vpop.permute.xlu1 %4042  ;;  %v966_v30 = vmax.f32 %v784_v1, 0.0 }
 0x216   :  { %v4044_v60 = vunpack.i.l.bf16 %v5448_v63  ;;  %v900_v9 = vpop.f32.mrf.mxu0 }
 0x217   :  { %v995_v44 = vmax.f32 %v5446_v23, 0.0  ;;  %4127 = vrot.lane.b32.xlu0 %v4126_v55, %s4385_s14  ;;  %v1168_v55 = vsel %vm1054_vm1, %v946_v4, %v4020_v12 }
 0x218   :  { %v5459_v17 = vpop.f32.mrf.mxu0  ;;  %v5465_v50 = vsel %vm1057_vm2, %v1119_v49, %v4044_v60  ;;  %v1169_v62 = vsel %vm409_vm0, %v1168_v55, %v4025_v16 }
 0x219   :  { %v4146_v27 = vpack.i.bf16 %v995_v44, %v993_v19  ;;  %v1354_v22 = vpack.c.bf16 %v5465_v50, %v5462_v14  ;;  %v1170_v56 = vsel %vm1057_vm2, %v1169_v62, %v4030_v45 }
 0x21a   :  { %v905_v36 = vpop.f32.mrf.mxu0 }
 0x21b   :  { %4147 = vrot.lane.b32.xlu0 %v4146_v27, %s4387_s16 }
 0x21c   :  { %v5472_v61 = vpop.f32.mrf.mxu0 }
 0x21d   :  { %v4048_v32 = vpop.permute.xlu0 %4047 }
 0x21e   :  { %v908_v37 = vpop.f32.mrf.mxu0  ;;  %v4050_v11 = vunpack.i.h.bf16 %v4048_v32  ;;  %v4049_v41 = vunpack.i.l.bf16 %v4048_v32  ;;  %v1356_v32 = vpack.c.bf16 %v5462_v14, %v1170_v56 }
 0x220   :  { %v5477_v40 = vpop.f32.mrf.mxu0  ;;  %v1171_v8 = vsel %vm1054_vm1, %v954_v15, %v4050_v11  ;;  %v1065_v33 = vsel %vm1054_vm1, %v966_v30, %v4049_v41  ;;  %v4045_v30 = vunpack.i.h.bf16 %v5448_v63 }
 0x221   :  { %v4053_v19 = vpop.permute.xlu0 %4052 }
 0x222   :  { %v913_v6 = vpop.f32.mrf.mxu0  ;;  %v4055_v42 = vunpack.i.h.bf16 %v4053_v19  ;;  %v4054_v53 = vunpack.i.l.bf16 %v4053_v19  ;;  %v4035_v19 = vunpack.i.h.bf16 %v5418_v59 }
 0x224   :  { %v914_v3 = vpop.f32.mrf.mxu0  ;;  %v1066_v28 = vsel %vm409_vm0, %v1065_v33, %v4054_v53  ;;  %v1172_v49 = vsel %vm409_vm0, %v1171_v8, %v4055_v42  ;;  %v4040_v42 = vunpack.i.h.bf16 %v5431_v2  ;;  %v1174_v59 = vsel %vm1054_vm1, %v962_v25, %v4035_v19 }
 0x225   :  { %v4058_v5 = vpop.permute.xlu0 %4057  ;;  %v915_v37 = vadd.f32 %v5091_v38, %v914_v3 }
 0x226   :  { %v4060_v60 = vunpack.i.h.bf16 %v4058_v5  ;;  %v4059_v9 = vunpack.i.l.bf16 %v4058_v5  ;;  %v916_v34 = vpop.f32.mrf.mxu0  ;;  %v1175_v63 = vsel %vm409_vm0, %v1174_v59, %v4040_v42 }
 0x227   :  { %v999_v41 = vmax.f32 %v915_v37, 0.0  ;;  %v5522_v56 = vsel %vm1057_vm2, %v1175_v63, %v4045_v30  ;;  %v904_v37 = vadd.f32 %v5091_v38, %v5459_v17  ;;  %v907_v30 = vadd.f32 %v5091_v38, %v5472_v61 }
 0x228   :  { %v919_v4 = vpop.f32.mrf.mxu0  ;;  %v5493_v27 = vsel %vm1057_vm2, %v1066_v28, %v4059_v9  ;;  %v1173_v36 = vsel %vm1057_vm2, %v1172_v49, %v4060_v60 }
 0x229   :  { %v1357_v13 = vpack.c.bf16 %v5493_v27, %v1173_v36  ;;  %v5502_v6 = vadd.f32 %v5091_v38, %v919_v4 }
 0x22a   :  { %v921_v15 = vpop.f32.mrf.mxu0 }
 0x22b   :  { %1675 = vmatprep.mubr.bf16.mxu1 %v1357_v13  ;;  %v1000_v60 = vmax.f32 %v5502_v6, 0.0 }
 0x22c   :  { %v922_v1 = vpop.f32.mrf.mxu0  ;;  %1676 = vmatmul.mubr.bf16.gmra.mxu1 %v1356_v32 }
 0x22d   :  { %v923_v12 = vadd.f32 %v5091_v38, %v922_v1  ;;  %v4063_v16 = vpop.permute.xlu0 %4062 }
 0x22e   :  { %v924_v11 = vpop.f32.mrf.mxu0  ;;  %v4065_v5 = vunpack.i.h.bf16 %v4063_v16  ;;  %v4064_v8 = vunpack.i.l.bf16 %v4063_v16 }
 0x22f   :  { %v1001_v45 = vmax.f32 %v923_v12, 0.0 }
 0x230   :  { %v927_v53 = vpop.f32.mrf.mxu0  ;;  %v1177_v4 = vsel %vm1054_vm1, %v970_v18, %v4065_v5  ;;  %v1121_v36 = vsel %vm1054_vm1, %v968_v0, %v4064_v8  ;;  %v5556_v5 = vld [vmem:[%s6107_s2] ss:$0 sm:$0xff] }
 0x231   :  { %v4131_v55 = vpack.i.bf16 %v1001_v45, %v999_v41  ;;  %v5507_v3 = vadd.f32 %v5091_v38, %v927_v53  ;;  %v4068_v62 = vpop.permute.xlu0 %4067  ;;  %v1360_v41 = vpack.c.bf16 %v5522_v56, %v5465_v50  ;;  %v996_v53 = vmax.f32 %v904_v37, 0.0 }
 0x232   :  { %v929_v33 = vpop.f32.mrf.mxu0  ;;  %v4070_v2 = vunpack.i.h.bf16 %v4068_v62  ;;  %v4069_v34 = vunpack.i.l.bf16 %v4068_v62  ;;  %v848_v37 = vadd.f32 %v5556_v5, %v5315_v46 }
 0x233   :  { %v1002_v9 = vmax.f32 %v5507_v3, 0.0  ;;  %4132 = vrot.lane.b32.xlu1 %v4131_v55, %s4386_s0 }
 0x234   :  { %v930_v28 = vpop.f32.mrf.mxu0  ;;  %v1122_v1 = vsel %vm409_vm0, %v1121_v36, %v4069_v34  ;;  %v1178_v12 = vsel %vm409_vm0, %v1177_v4, %v4070_v2  ;;  %v997_v2 = vmax.f32 %v907_v30, 0.0 }
 0x235   :  { %v4136_v10 = vpack.i.bf16 %v1002_v9, %v1000_v60  ;;  %v931_v25 = vadd.f32 %v5091_v38, %v930_v28  ;;  %v4073_v49 = vpop.permute.xlu0 %4072 }
 0x236   :  { %v4075_v13 = vunpack.i.h.bf16 %v4073_v49  ;;  %v4074_v15 = vunpack.i.l.bf16 %v4073_v49  ;;  %v932_v32 = vpop.f32.mrf.mxu0 }
 0x237   :  { %v1003_v16 = vmax.f32 %v931_v25, 0.0  ;;  %4137 = vrot.lane.b32.xlu1 %v4136_v10, %s4385_s14 }
 0x238   :  { %v935_v54 = vpop.f32.mrf.mxu0  ;;  %v5536_v18 = vsel %vm1057_vm2, %v1122_v1, %v4074_v15  ;;  %v5539_v29 = vsel %vm1057_vm2, %v1178_v12, %v4075_v13 }
 0x239   :  { %v4141_v0 = vpack.i.bf16 %v1003_v16, %v1001_v45  ;;  %v936_v19 = vadd.f32 %v5091_v38, %v935_v54  ;;  %v1361_v17 = vpack.c.bf16 %v5539_v29, %v5536_v18  ;;  %v1355_v42 = vpack.c.bf16 %v5536_v18, %v5493_v27 }
 0x23a   :  { %v937_v11 = vpop.f32.mrf.mxu0  ;;  %v4151_v62 = vpack.i.bf16 %v995_v44, %v1003_v16  ;;  %v816_v44 = vadd.f32 %v5556_v5, %v5282_v51  ;;  %v912_v27 = vadd.f32 %v5556_v5, %v5477_v40 }
 0x23b   :  { %v1004_v55 = vmax.f32 %v936_v19, 0.0  ;;  %4142 = vrot.lane.b32.xlu1 %v4141_v0, %s4387_s16  ;;  %1683 = vmatprep.mubr.bf16.mxu1 %v1361_v17  ;;  %v982_v11 = vmax.f32 %v848_v37, 0.0 }
 0x23c   :  { %v938_v45 = vpop.f32.mrf.mxu0  ;;  %1684 = vmatmul.mubr.bf16.gmra.mxu1 %v1360_v41  ;;  %v974_v10 = vmax.f32 %v816_v44, 0.0 }
 0x23d   :  { %v4156_v59 = vpack.i.bf16 %v996_v53, %v1004_v55  ;;  %v939_v8 = vadd.f32 %v5556_v5, %v938_v45 }
 0x23e   :  { %v940_v33 = vpop.f32.mrf.mxu0 }
 0x23f   :  { %v1005_v38 = vmax.f32 %v939_v8, 0.0  ;;  %4157 = vrot.lane.b32.xlu0 %v4156_v59, %s4385_s14  ;;  %4152 = vrot.lane.b32.xlu1 %v4151_v62, %s4386_s0 }
 0x241   :  { %v4161_v61 = vpack.i.bf16 %v997_v2, %v1005_v38 }
 0x243   :  { %4162 = vrot.lane.b32.xlu1 %v4161_v61, %s4387_s16 }
 0x245   :  { %v4078_v23 = vpop.permute.xlu1 %4077 }
 0x246   :  { %v4079_v63 = vunpack.i.l.bf16 %v4078_v23  ;;  %v4080_v1 = vunpack.i.h.bf16 %v4078_v23 }
 0x248   :  { %v1204_v49 = vsel %vm1054_vm1, %v974_v10, %v4079_v63  ;;  %v1232_v41 = vsel %vm1054_vm1, %v976_v43, %v4080_v1 }
 0x249   :  { %v4083_v34 = vpop.permute.xlu1 %4082 }
 0x24a   :  { %v4084_v28 = vunpack.i.l.bf16 %v4083_v34  ;;  %v4085_v51 = vunpack.i.h.bf16 %v4083_v34 }
 0x24c   :  { %v1205_v36 = vsel %vm409_vm0, %v1204_v49, %v4084_v28  ;;  %v1233_v53 = vsel %vm409_vm0, %v1232_v41, %v4085_v51  ;;  %v880_v51 = vadd.f32 %v5556_v5, %v5391_v39  ;;  %v998_v41 = vmax.f32 %v912_v27, 0.0 }
 0x24d   :  { %v4088_v25 = vpop.permute.xlu1 %4087 }
 0x24e   :  { %v4089_v4 = vunpack.i.l.bf16 %v4088_v25  ;;  %v4090_v0 = vunpack.i.h.bf16 %v4088_v25 }
 0x250   :  { %v1206_v13 = vsel %vm1057_vm2, %v1205_v36, %v4089_v4  ;;  %v1234_v8 = vsel %vm1057_vm2, %v1233_v53, %v4090_v0 }
 0x251   :  { %v1358_v15 = vpack.c.bf16 %v1206_v13, %v5522_v56  ;;  %v1364_v23 = vpack.c.bf16 %v1234_v8, %v1206_v13 }
 0x265   :  { %v4093_v32 = vpop.permute.xlu0 %4092 }
 0x266   :  { %v4095_v16 = vunpack.i.h.bf16 %v4093_v32  ;;  %v4094_v54 = vunpack.i.l.bf16 %v4093_v32 }
 0x268   :  { %v1235_v46 = vsel %vm1054_vm1, %v984_v58, %v4095_v16  ;;  %v1207_v30 = vsel %vm1054_vm1, %v982_v11, %v4094_v54  ;;  %v990_v16 = vmax.f32 %v880_v51, 0.0 }
 0x269   :  { %v4098_v12 = vpop.permute.xlu0 %4097 }
 0x26a   :  { %v4100_v19 = vunpack.i.h.bf16 %v4098_v12  ;;  %v4099_v17 = vunpack.i.l.bf16 %v4098_v12 }
 0x26c   :  { %v1208_v62 = vsel %vm409_vm0, %v1207_v30, %v4099_v17  ;;  %v1236_v59 = vsel %vm409_vm0, %v1235_v46, %v4100_v19 }
 0x26d   :  { %v4103_v56 = vpop.permute.xlu0 %4102 }
 0x26e   :  { %v4105_v55 = vunpack.i.h.bf16 %v4103_v56  ;;  %v4104_v45 = vunpack.i.l.bf16 %v4103_v56 }
 0x270   :  { %v1209_v24 = vsel %vm1057_vm2, %v1208_v62, %v4104_v45  ;;  %v1237_v43 = vsel %vm1057_vm2, %v1236_v59, %v4105_v55 }
 0x271   :  { %v4108_v33 = vpop.permute.xlu0 %4107  ;;  %v4113_v2 = vpop.permute.xlu1 %4112  ;;  %v1365_v38 = vpack.c.bf16 %v1237_v43, %v1209_v24  ;;  %v1359_v26 = vpack.c.bf16 %v1209_v24, %v5539_v29 }
 0x272   :  { %v4110_v58 = vunpack.i.h.bf16 %v4108_v33  ;;  %v4109_v61 = vunpack.i.l.bf16 %v4108_v33  ;;  %v4115_v44 = vunpack.i.h.bf16 %v4113_v2  ;;  %v4114_v34 = vunpack.i.l.bf16 %v4113_v2 }
 0x273   :  { %1691 = vmatprep.mubr.bf16.mxu1 %v1365_v38 }
 0x274   :  { %v1260_v63 = vsel %vm1054_vm1, %v978_v21, %v4110_v58  ;;  %v1263_v28 = vsel %vm1054_vm1, %v986_v57, %v4109_v61  ;;  %1692 = vmatmul.mubr.bf16.gmra.mxu1 %v1364_v23 }
 0x275   :  { %v4118_v10 = vpop.permute.xlu0 %4117  ;;  %v1261_v29 = vsel %vm409_vm0, %v1260_v63, %v4115_v44  ;;  %v1264_v4 = vsel %vm409_vm0, %v1263_v28, %v4114_v34 }
 0x276   :  { %v4120_v25 = vunpack.i.h.bf16 %v4118_v10  ;;  %v4119_v49 = vunpack.i.l.bf16 %v4118_v10 }
 0x278   :  { %v1265_v36 = vsel %vm1057_vm2, %v1264_v4, %v4119_v49  ;;  %v1262_v13 = vsel %vm1057_vm2, %v1261_v29, %v4120_v25 }
 0x279   :  { %v1369_v32 = vpack.c.bf16 %v1265_v36, %v1265_v36  ;;  %v1368_v31 = vpack.c.bf16 %v1262_v13, %v1262_v13  ;;  %v1363_v21 = vpack.c.bf16 %v1265_v36, %v1237_v43  ;;  %v1362_v20 = vpack.c.bf16 %v1262_v13, %v1234_v8 }
 0x27b   :  { %1699 = vmatprep.mubr.bf16.mxu1 %v1369_v32 }
 0x27c   :  { %1700 = vmatmul.mubr.bf16.gmra.mxu1 %v1368_v31 }
 0x27d   :  { %1739 = vmatprep.mubr.bf16.mxu1 %v1355_v42 }
 0x284   :  { %1740 = vmatmul.mubr.bf16.vlgmr.msra.gmra.mxu1 %v1354_v22 }
 0x285   :  { %1747 = vmatprep.mubr.bf16.mxu1 %v1359_v26  ;;  %v4123_v57 = vpop.permute.xlu0 %4122 }
 0x286   :  { %v4125_v18 = vunpack.i.h.bf16 %v4123_v57  ;;  %v4124_v42 = vunpack.i.l.bf16 %v4123_v57 }
 0x288   :  { %v1318_v39 = vsel %vm1054_vm1, %v992_v48, %v4125_v18  ;;  %v1290_v40 = vsel %vm1054_vm1, %v990_v16, %v4124_v42  ;;  %v4226_v42 = vld [vmem:[%s6110_s5 + $0x78] sm:$0xff]   ;;  %v4231_v16 = vld [vmem:[%s6110_s5 + $0x28] sm:$0xff]  }
 0x289   :  { %v4128_v37 = vpop.permute.xlu0 %4127  ;;  %3647 = vmatprep.subr.bf16.mxu1 %v4226_v42 }
 0x28a   :  { %v4130_v14 = vunpack.i.h.bf16 %v4128_v37  ;;  %v4129_v50 = vunpack.i.l.bf16 %v4128_v37 }
 0x28c   :  { %1748 = vmatmul.mubr.bf16.gmra.mxu1 %v1358_v15  ;;  %v1291_v5 = vsel %vm409_vm0, %v1290_v40, %v4129_v50  ;;  %v1319_v53 = vsel %vm409_vm0, %v1318_v39, %v4130_v14  ;;  %v4228_v14 = vld [vmem:[%s6110_s5 + $0x70] sm:$0xff]   ;;  %v4239_v39 = vld [vmem:[%s6110_s5 + $0x8] sm:$0xff]  }
 0x28d   :  { %1755 = vmatprep.mubr.bf16.mxu1 %v1363_v21  ;;  %v4148_v12 = vpop.permute.xlu0 %4147  ;;  %v4229_v50 = vld [vmem:[%s6110_s5 + $0x30] sm:$0xff]  }
 0x28e   :  { %v4150_v0 = vunpack.i.h.bf16 %v4148_v12  ;;  %v4149_v19 = vunpack.i.l.bf16 %v4148_v12  ;;  %v4227_v12 = vld [vmem:[%s6110_s5 + $0x38] sm:$0xff]  }
 0x28f   :  { %3648 = vmatpush3.bf16.msra.mxu1 %v4227_v12 }
 0x290   :  { %v1292_v48 = vsel %vm1057_vm2, %v1291_v5, %v4149_v19  ;;  %v1320_v59 = vsel %vm1057_vm2, %v1319_v53, %v4150_v0  ;;  %3649 = vmatprep.subr.bf16.mxu1 %v4228_v14  ;;  %v4234_v0 = vld [vmem:[%s6110_s5 + $0x58] sm:$0xff]  }
 0x291   :  { %v1366_v38 = vpack.c.bf16 %v1320_v59, %v1292_v48  ;;  %v4235_v19 = vld [vmem:[%s6110_s5 + $0x18] sm:$0xff]   ;;  %v3383_v48 = vld [vmem:[%s6109_s4] ss:$0 sm:$0xff] }
 0x293   :  { %3650 = vmatpush3.bf16.msra.mxu1 %v4229_v50 }
 0x294   :  { %1756 = vmatmul.mubr.bf16.gmra.mxu1 %v1362_v20 }
 0x2a5   :  { %v4133_v1 = vpop.permute.xlu1 %4132 }
 0x2a6   :  { %v4135_v15 = vunpack.i.h.bf16 %v4133_v1  ;;  %v4134_v54 = vunpack.i.l.bf16 %v4133_v1 }
 0x2a8   :  { %v1321_v46 = vsel %vm1054_vm1, %v1000_v60, %v4135_v15  ;;  %v1293_v30 = vsel %vm1054_vm1, %v998_v41, %v4134_v54  ;;  %v4232_v15 = vld [vmem:[%s6110_s5 + $0x60] sm:$0xff]   ;;  %v4238_v41 = vld [vmem:[%s6110_s5 + $0x48] sm:$0xff]  }
 0x2a9   :  { %v4138_v22 = vpop.permute.xlu1 %4137  ;;  %v4233_v54 = vld [vmem:[%s6110_s5 + $0x20] sm:$0xff]  }
 0x2aa   :  { %v4140_v17 = vunpack.i.h.bf16 %v4138_v22  ;;  %v4139_v11 = vunpack.i.l.bf16 %v4138_v22  ;;  %v4230_v22 = vld [vmem:[%s6110_s5 + $0x68] sm:$0xff]  }
 0x2ab   :  { %3651 = vmatprep.subr.bf16.mxu1 %v4230_v22 }
 0x2ac   :  { %v1294_v62 = vsel %vm409_vm0, %v1293_v30, %v4139_v11  ;;  %v1322_v52 = vsel %vm409_vm0, %v1321_v46, %v4140_v17  ;;  %3652 = vmatpush3.bf16.msra.mxu1 %v4231_v16  ;;  %v4236_v17 = vld [vmem:[%s6110_s5 + $0x50] sm:$0xff]  }
 0x2ad   :  { %v4143_v56 = vpop.permute.xlu1 %4142  ;;  %3653 = vmatprep.subr.bf16.mxu1 %v4232_v15  ;;  %v4237_v11 = vld [vmem:[%s6110_s5 + $0x10] sm:$0xff]  }
 0x2ae   :  { %v4145_v55 = vunpack.i.h.bf16 %v4143_v56  ;;  %v4144_v45 = vunpack.i.l.bf16 %v4143_v56 }
 0x2b0   :  { %v1295_v8 = vsel %vm1057_vm2, %v1294_v62, %v4144_v45  ;;  %v1323_v24 = vsel %vm1057_vm2, %v1322_v52, %v4145_v55  ;;  %3654 = vmatpush3.bf16.msra.mxu1 %v4233_v54 }
 0x2b1   :  { %v4158_v43 = vpop.permute.xlu0 %4157  ;;  %v4153_v6 = vpop.permute.xlu1 %4152  ;;  %v1367_v33 = vpack.c.bf16 %v1323_v24, %v1295_v8  ;;  %3655 = vmatprep.subr.bf16.mxu1 %v4234_v0 }
 0x2b2   :  { %v4155_v60 = vunpack.i.h.bf16 %v4153_v6  ;;  %v4154_v2 = vunpack.i.l.bf16 %v4153_v6  ;;  %v4160_v26 = vunpack.i.h.bf16 %v4158_v43  ;;  %v4159_v58 = vunpack.i.l.bf16 %v4158_v43 }
 0x2b3   :  { %1763 = vmatprep.mubr.bf16.mxu1 %v1367_v33 }
 0x2b4   :  { %v1346_v61 = vsel %vm1054_vm1, %v994_v35, %v4155_v60  ;;  %v1349_v23 = vsel %vm1054_vm1, %v1002_v9, %v4154_v2  ;;  %v3571_v44 = vpop.f32.mrf.mxu1  ;;  %1764 = vmatmul.mubr.bf16.gmra.mxu1 %v1366_v38 }
 0x2b5   :  { %v4163_v34 = vpop.permute.xlu1 %4162  ;;  %v1350_v49 = vsel %vm409_vm0, %v1349_v23, %v4159_v58  ;;  %v1347_v29 = vsel %vm409_vm0, %v1346_v61, %v4160_v26  ;;  %3656 = vmatpush3.bf16.msra.mxu1 %v4235_v19 }
 0x2b6   :  { %v4165_v63 = vunpack.i.h.bf16 %v4163_v34  ;;  %v4164_v28 = vunpack.i.l.bf16 %v4163_v34  ;;  %v3572_v10 = vpop.f32.mrf.mxu1  ;;  %3657 = vmatprep.subr.bf16.mxu1 %v4236_v17  ;;  %v4240_v34 = vld [vmem:[%s6110_s5 + $0x40] sm:$0xff]  }
 0x2b7   :  { %v5626_v25 = vadd.f32 %v3572_v10, %v3571_v44 }
 0x2b8   :  { %v1351_v47 = vsel %vm1057_vm2, %v1350_v49, %v4164_v28  ;;  %v1348_v35 = vsel %vm1057_vm2, %v1347_v29, %v4165_v63  ;;  %v3574_v9 = vpop.f32.mrf.mxu1  ;;  %v4241_v28 = vld [vmem:[%s6110_s5] sm:$0xff]  }
 0x2b9   :  { %v1371_v4 = vpack.c.bf16 %v1351_v47, %v1351_v47  ;;  %v1370_v3 = vpack.c.bf16 %v1348_v35, %v1348_v35  ;;  %3658 = vmatpush3.bf16.msra.mxu1 %v4237_v11  ;;  %v1670_v24 = vadd.f32 %v5626_v25, %v3383_v48 }
 0x2ba   :  { %v3575_v36 = vpop.f32.mrf.mxu1  ;;  %3659 = vmatprep.subr.bf16.mxu1 %v4238_v41 }
 0x2bb   :  { %1771 = vmatprep.mubr.bf16.mxu1 %v1371_v4  ;;  %v3576_v38 = vadd.f32 %v3575_v36, %v3574_v9 }
 0x2bc   :  { %1772 = vmatmul.mubr.bf16.gmra.mxu1 %v1370_v3  ;;  %v4242_v3 = vld [vmem:[%s6110_s5 + $0xf8] sm:$0xff]  }
 0x2bd   :  { %3660 = vmatpush3.bf16.msra.mxu1 %v4239_v39  ;;  %v1673_v10 = vadd.f32 %v3576_v38, %v3383_v48  ;;  %v4246_v38 = vld [vmem:[%s6110_s5 + $0xe8] sm:$0xff]  }
 0x2be   :  { %3661 = vmatprep.subr.bf16.mxu1 %v4240_v34  ;;  %v4252_v34 = vld [vmem:[%s6110_s5 + $0xd0] sm:$0xff]  }
 0x2c1   :  { %3662 = vmatpush3.bf16.msra.mxu1 %v4241_v28  ;;  %v4254_v28 = vld [vmem:[%s6110_s5 + $0xc8] sm:$0xff]  }
 0x2c2   :  { %3669 = vmatprep.subr.bf16.mxu1 %v4242_v3 }
 0x2ec   :  { %v3577_v13 = vpop.f32.mrf.mxu1 }
 0x2ee   :  { %v3578_v32 = vpop.f32.mrf.mxu1 }
 0x2ef   :  { %v3579_v31 = vadd.f32 %v3578_v32, %v3577_v13 }
 0x2f0   :  { %v3580_v21 = vpop.f32.mrf.mxu1 }
 0x2f1   :  { %v1678_v58 = vadd.f32 %v3579_v31, %v3383_v48 }
 0x2f2   :  { %v3581_v20 = vpop.f32.mrf.mxu1 }
 0x2f3   :  { %v3582_v61 = vadd.f32 %v3581_v20, %v3580_v21 }
 0x2f5   :  { %v1681_v29 = vadd.f32 %v3582_v61, %v3383_v48  ;;  %v4249_v61 = vld [vmem:[%s6110_s5 + $0xa0] sm:$0xff]  }
 0x2fc   :  { %v3583_v57 = vpop.f32.mrf.mxu1 }
 0x2fe   :  { %v3584_v37 = vpop.f32.mrf.mxu1 }
 0x2ff   :  { %v5632_v1 = vadd.f32 %v3584_v37, %v3583_v57 }
 0x300   :  { %v3586_v51 = vpop.f32.mrf.mxu1 }
 0x301   :  { %v1686_v13 = vadd.f32 %v5632_v1, %v3383_v48 }
 0x302   :  { %v3587_v27 = vpop.f32.mrf.mxu1 }
 0x303   :  { %v5634_v18 = vadd.f32 %v3587_v27, %v3586_v51 }
 0x305   :  { %v1689_v15 = vadd.f32 %v5634_v18, %v3383_v48 }
 0x334   :  { %v3589_v40 = vpop.f32.mrf.mxu1 }
 0x336   :  { %v3590_v5 = vpop.f32.mrf.mxu1 }
 0x337   :  { %v3591_v53 = vadd.f32 %v3590_v5, %v3589_v40 }
 0x338   :  { %v3592_v56 = vpop.f32.mrf.mxu1 }
 0x339   :  { %v1694_v12 = vadd.f32 %v3591_v53, %v3383_v48 }
 0x33a   :  { %v3593_v46 = vpop.f32.mrf.mxu1 }
 0x33b   :  { %v3594_v14 = vadd.f32 %v3593_v46, %v3592_v56 }
 0x33c   :  { %v3595_v30 = vpop.f32.mrf.mxu1 }
 0x33d   :  { %v1697_v0 = vadd.f32 %v3594_v14, %v3383_v48 }
 0x33e   :  { %v3596_v55 = vpop.f32.mrf.mxu1 }
 0x33f   :  { %v3597_v45 = vadd.f32 %v3596_v55, %v3595_v30 }
 0x340   :  { %v3598_v62 = vpop.f32.mrf.mxu1 }
 0x341   :  { %v1702_v40 = vadd.f32 %v3597_v45, %v3383_v48 }
 0x342   :  { %v3599_v52 = vpop.f32.mrf.mxu1 }
 0x344   :  { %v3617_v59 = vpop.f32.mrf.mxu1 }
 0x346   :  { %v3618_v8 = vpop.f32.mrf.mxu1 }
 0x347   :  { %v3619_v43 = vadd.f32 %v3618_v8, %v3617_v59 }
 0x348   :  { %v3620_v6 = vpop.f32.mrf.mxu1 }
 0x349   :  { %v5682_v33 = vadd.f32 %v3619_v43, %v1670_v24 }
 0x34a   :  { %v3621_v60 = vpop.f32.mrf.mxu1 }
 0x34b   :  { %v3622_v23 = vadd.f32 %v3621_v60, %v3620_v6  ;;  %v1779_v52 = vmax.f32 %v5682_v33, 0.0  ;;  %v4243_v60 = vld [vmem:[%s6110_s5 + $0xb8] sm:$0xff]   ;;  %v4245_v33 = vld [vmem:[%s6110_s5 + $0xb0] sm:$0xff]  }
 0x34c   :  { %v3623_v2 = vpop.f32.mrf.mxu1 }
 0x34d   :  { %v1745_v47 = vadd.f32 %v3622_v23, %v1673_v10  ;;  %v4250_v23 = vld [vmem:[%s6110_s5 + $0xd8] sm:$0xff]   ;;  %v4255_v10 = vld [vmem:[%s6110_s5 + $0x88] sm:$0xff]  }
 0x34e   :  { %v3624_v26 = vpop.f32.mrf.mxu1 }
 0x34f   :  { %v3625_v44 = vadd.f32 %v3624_v26, %v3623_v2  ;;  %v1780_v32 = vmax.f32 %v1745_v47, 0.0  ;;  %v4244_v2 = vld [vmem:[%s6110_s5 + $0xf0] sm:$0xff]   ;;  %v4247_v26 = vld [vmem:[%s6110_s5 + $0xa8] sm:$0xff]  }
 0x350   :  { %v3626_v63 = vpop.f32.mrf.mxu1 }
 0x351   :  { %v1750_v25 = vadd.f32 %v3625_v44, %v1678_v58  ;;  %v4248_v58 = vld [vmem:[%s6110_s5 + $0xe0] sm:$0xff]   ;;  %v4251_v44 = vld [vmem:[%s6110_s5 + $0x98] sm:$0xff]  }
 0x352   :  { %v3627_v49 = vpop.f32.mrf.mxu1 }
 0x353   :  { %v3628_v35 = vadd.f32 %v3627_v49, %v3626_v63  ;;  %v1781_v59 = vmax.f32 %v1750_v25, 0.0  ;;  %v4253_v63 = vld [vmem:[%s6110_s5 + $0x90] sm:$0xff]   ;;  %v4256_v25 = vld [vmem:[%s6110_s5 + $0xc0] sm:$0xff]  }
 0x354   :  { %v3629_v4 = vpop.f32.mrf.mxu1  ;;  %v4257_v49 = vld [vmem:[%s6110_s5 + $0x80] sm:$0xff]  }
 0x355   :  { %v1753_v9 = vadd.f32 %v3628_v35, %v1681_v29  ;;  %v4388_v29 = vmov 0.0  }
 0x356   :  { %v3630_v36 = vpop.f32.mrf.mxu1 }
 0x357   :  { %v1782_v31 = vmax.f32 %v1753_v9, 0.0  ;;  %v3631_v21 = vadd.f32 %v3630_v36, %v3629_v4 }
 0x358   :  { %v3632_v37 = vpop.f32.mrf.mxu1 }
 0x359   :  { %v5694_v20 = vadd.f32 %v3631_v21, %v1686_v13  ;;  %v4166_v57 = vpack.i.bf16 %v1780_v32, %v1782_v31  ;;  %v4258_v21 = vld [vmem:[%s6110_s5 + $0x118] sm:$0xff]  }
 0x35a   :  { %v3633_v51 = vpop.f32.mrf.mxu1 }
 0x35b   :  { %4167 = vrot.lane.b32.xlu0 %v4166_v57, %s4385_s14  ;;  %v3634_v50 = vadd.f32 %v3633_v51, %v3632_v37  ;;  %v1783_v35 = vmax.f32 %v5694_v20, 0.0  ;;  %v4259_v20 = vld [vmem:[%s6110_s5 + $0x110] sm:$0xff]   ;;  %v4260_v57 = vld [vmem:[%s6110_s5 + $0x108] sm:$0xff]   ;;  %v4261_v37 = vld [vmem:[%s6110_s5 + $0x100] sm:$0xff]  }
 0x35d   :  { %v1761_v19 = vadd.f32 %v3634_v50, %v1689_v15  ;;  %v2241_v15 = vld [vmem:[%s6112_s7 + $0x40] sm:$0xff] }
 0x35f   :  { %v1784_v5 = vmax.f32 %v1761_v19, 0.0 }
 0x374   :  { %v3635_v27 = vpop.f32.mrf.mxu1 }
 0x376   :  { %v3636_v42 = vpop.f32.mrf.mxu1 }
 0x377   :  { %v3637_v22 = vadd.f32 %v3636_v42, %v3635_v27  ;;  %v2257_v42 = vld [vmem:[%s6112_s7 + $0xc0] sm:$0xff] }
 0x378   :  { %v3638_v16 = vpop.f32.mrf.mxu1 }
 0x379   :  { %v5698_v1 = vadd.f32 %v3637_v22, %v1694_v12  ;;  %v2261_v12 = vld [vmem:[%s6112_s7 + $0xe0] sm:$0xff] }
 0x37a   :  { %v3639_v54 = vpop.f32.mrf.mxu1  ;;  %v3478_v14 = vcombine.low %v2257_v42, %v2261_v12  ;;  %v3479_v50 = vcombine.high %v2257_v42, %v2261_v12  ;;  %v2249_v22 = vld [vmem:[%s6112_s7 + $0x80] sm:$0xff]  ;;  %v2259_v42 = vld [vmem:[%s6112_s7 + $0xd0] sm:$0xff] }
 0x37b   :  { %v3640_v17 = vadd.f32 %v3639_v54, %v3638_v16  ;;  %v1785_v4 = vmax.f32 %v5698_v1, 0.0  ;;  %v2253_v16 = vld [vmem:[%s6112_s7 + $0xa0] sm:$0xff]  ;;  %v2263_v12 = vld [vmem:[%s6112_s7 + $0xf0] sm:$0xff] }
 0x37c   :  { %v3641_v11 = vpop.f32.mrf.mxu1  ;;  %v3470_v1 = vcombine.low %v2249_v22, %v2253_v16  ;;  %v3471_v54 = vcombine.high %v2249_v22, %v2253_v16  ;;  %v2251_v22 = vld [vmem:[%s6112_s7 + $0x90] sm:$0xff] }
 0x37d   :  { %v1769_v41 = vadd.f32 %v3640_v17, %v1697_v0  ;;  %v2245_v0 = vld [vmem:[%s6112_s7 + $0x60] sm:$0xff]  ;;  %v2255_v16 = vld [vmem:[%s6112_s7 + $0xb0] sm:$0xff] }
 0x37e   :  { %v3642_v39 = vpop.f32.mrf.mxu1  ;;  %v3463_v19 = vcombine.high %v2241_v15, %v2245_v0  ;;  %v3462_v17 = vcombine.low %v2241_v15, %v2245_v0  ;;  %v3482_v15 = vcombine.low %v2259_v42, %v2263_v12  ;;  %v2247_v0 = vld [vmem:[%s6112_s7 + $0x70] sm:$0xff] }
 0x37f   :  { %v1786_v30 = vmax.f32 %v1769_v41, 0.0  ;;  %v3643_v55 = vadd.f32 %v3642_v39, %v3641_v11  ;;  %v2233_v11 = vld [vmem:[%s6112_s7] sm:$0xff] }
 0x380   :  { %v3644_v53 = vpop.f32.mrf.mxu1  ;;  %v2237_v41 = vld [vmem:[%s6112_s7 + $0x20] sm:$0xff] }
 0x381   :  { %v5700_v56 = vadd.f32 %v3643_v55, %v1702_v40  ;;  %v4171_v46 = vpack.i.bf16 %v1784_v5, %v1786_v30  ;;  %v3455_v39 = vcombine.high %v2233_v11, %v2237_v41  ;;  %v3454_v40 = vcombine.low %v2233_v11, %v2237_v41  ;;  %v2258_v5 = vld [vmem:[%s6112_s7 + $0xc8] sm:$0xff]  ;;  %v2235_v11 = vld [vmem:[%s6112_s7 + $0x10] sm:$0xff] }
 0x382   :  { %v3645_v62 = vpop.f32.mrf.mxu1  ;;  %v2262_v30 = vld [vmem:[%s6112_s7 + $0xe8] sm:$0xff]  ;;  %v2239_v41 = vld [vmem:[%s6112_s7 + $0x30] sm:$0xff] }
 0x383   :  { %4172 = vrot.lane.b32.xlu1 %v4171_v46, %s4385_s14  ;;  %v1787_v51 = vmax.f32 %v5700_v56, 0.0  ;;  %v3481_v55 = vcombine.high %v2258_v5, %v2262_v30  ;;  %v3480_v53 = vcombine.low %v2258_v5, %v2262_v30  ;;  %v4262_v56 = vld [vmem:[%s6114_s9 + $0x178] sm:$0xff]   ;;  %v4264_v62 = vld [vmem:[%s6114_s9 + $0x170] sm:$0xff]  }
 0x384   :  { %v4263_v46 = vld [vmem:[%s6114_s9 + $0x138] sm:$0xff]   ;;  %3740 = vmatprep.subr.bf16.mxu0 %v4262_v56 }
 0x385   :  { %v1812_v27 = vpack.c.bf16 %v1787_v51, %v1787_v51  ;;  %3741 = vmatpush3.bf16.msra.mxu0 %v4263_v46  ;;  %v2260_v5 = vld [vmem:[%s6112_s7 + $0xd8] sm:$0xff] }
 0x386   :  { %3742 = vmatprep.subr.bf16.mxu0 %v4264_v62  ;;  %v2264_v30 = vld [vmem:[%s6112_s7 + $0xf8] sm:$0xff] }
 0x387   :  { %v2252_v56 = vld [vmem:[%s6112_s7 + $0x98] sm:$0xff]  ;;  %v3484_v62 = vcombine.low %v2260_v5, %v2264_v30 }
 0x388   :  { %v2256_v46 = vld [vmem:[%s6112_s7 + $0xb8] sm:$0xff] }
 0x3cd   :  { %v4168_v18 = vpop.permute.xlu0 %4167 }
 0x3ce   :  { %v4170_v8 = vunpack.i.h.bf16 %v4168_v18  ;;  %v4169_v24 = vunpack.i.l.bf16 %v4168_v18  ;;  %v4265_v18 = vld [vmem:[%s6114_s9 + $0x130] sm:$0xff]  }
 0x3cf   :  { %3743 = vmatpush3.bf16.msra.mxu0 %v4265_v18  ;;  %v3477_v18 = vcombine.high %v2252_v56, %v2256_v46 }
 0x3d0   :  { %v1804_v43 = vsel %vm409_vm0, %v1779_v52, %v4170_v8  ;;  %v1805_v45 = vsel %vm409_vm0, %v1781_v59, %v4169_v24  ;;  %v4266_v52 = vld [vmem:[%s6114_s9 + $0x168] sm:$0xff]   ;;  %v4268_v8 = vld [vmem:[%s6114_s9 + $0x160] sm:$0xff]  }
 0x3d1   :  { %v1808_v48 = vpack.c.bf16 %v1804_v43, %v1804_v43  ;;  %v1809_v6 = vpack.c.bf16 %v1805_v45, %v1805_v45  ;;  %v4267_v59 = vld [vmem:[%s6114_s9 + $0x128] sm:$0xff]   ;;  %3744 = vmatprep.subr.bf16.mxu0 %v4266_v52  ;;  %v4269_v24 = vld [vmem:[%s6114_s9 + $0x120] sm:$0xff]   ;;  %v4270_v43 = vld [vmem:[%s6114_s9 + $0x158] sm:$0xff]  }
 0x3d2   :  { %v4271_v45 = vld [vmem:[%s6114_s9 + $0x118] sm:$0xff]  }
 0x3d3   :  { %2143 = vmatprep.mubr.bf16.mxu1 %v1809_v6  ;;  %3745 = vmatpush3.bf16.msra.mxu0 %v4267_v59  ;;  %v4273_v6 = vld [vmem:[%s6114_s9 + $0x110] sm:$0xff]   ;;  %v2244_v52 = vld [vmem:[%s6112_s7 + $0x58] sm:$0xff] }
 0x3d4   :  { %2144 = vmatmul.mubr.bf16.vlgmr.msra.gmra.mxu1 %v1808_v48  ;;  %3746 = vmatprep.subr.bf16.mxu0 %v4268_v8  ;;  %v4272_v48 = vld [vmem:[%s6114_s9 + $0x150] sm:$0xff]   ;;  %v2248_v59 = vld [vmem:[%s6112_s7 + $0x78] sm:$0xff]  ;;  %v3476_v8 = vcombine.low %v2252_v56, %v2256_v46 }
 0x3d5   :  { %3670 = vmatpush3.bf16.msra.mxu1 %v4243_v60  ;;  %v4300_v56 = vld [vmem:[%s6114_s9 + $0xd8] sm:$0xff]  }
 0x3d6   :  { %3671 = vmatprep.subr.bf16.mxu1 %v4244_v2 }
 0x3d7   :  { %3747 = vmatpush3.bf16.msra.mxu0 %v4269_v24  ;;  %v3469_v24 = vcombine.high %v2244_v52, %v2248_v59 }
 0x3d8   :  { %3748 = vmatprep.subr.bf16.mxu0 %v4270_v43  ;;  %v2236_v43 = vld [vmem:[%s6112_s7 + $0x18] sm:$0xff] }
 0x3d9   :  { %3672 = vmatpush3.bf16.msra.mxu1 %v4245_v33 }
 0x3da   :  { %3673 = vmatprep.subr.bf16.mxu1 %v4246_v38 }
 0x3db   :  { %3749 = vmatpush3.bf16.msra.mxu0 %v4271_v45  ;;  %v2240_v45 = vld [vmem:[%s6112_s7 + $0x38] sm:$0xff] }
 0x3dc   :  { %3750 = vmatprep.subr.bf16.mxu0 %v4272_v48  ;;  %v3468_v48 = vcombine.low %v2244_v52, %v2248_v59  ;;  %v4301_v52 = vld [vmem:[%s6114_s9 + $0x98] sm:$0xff]  }
 0x3dd   :  { %3674 = vmatpush3.bf16.msra.mxu1 %v4247_v26 }
 0x3de   :  { %3675 = vmatprep.subr.bf16.mxu1 %v4248_v58 }
 0x3df   :  { %3751 = vmatpush3.bf16.msra.mxu0 %v4273_v6  ;;  %v3461_v6 = vcombine.high %v2236_v43, %v2240_v45 }
 0x3e1   :  { %3676 = vmatpush3.bf16.msra.mxu1 %v4249_v61 }
 0x3e2   :  { %3677 = vmatprep.subr.bf16.mxu1 %v4250_v23 }
 0x3e5   :  { %3678 = vmatpush3.bf16.msra.mxu1 %v4251_v44 }
 0x3e6   :  { %3679 = vmatprep.subr.bf16.mxu1 %v4252_v34  ;;  %v3416_v34 = vld [vmem:[%s6111_s6] ss:$0 sm:$0xff] }
 0x3e9   :  { %3680 = vmatpush3.bf16.msra.mxu1 %v4253_v63 }
 0x3ea   :  { %3681 = vmatprep.subr.bf16.mxu1 %v4254_v28 }
 0x3ed   :  { %3682 = vmatpush3.bf16.msra.mxu1 %v4255_v10 }
 0x3ee   :  { %3683 = vmatprep.subr.bf16.mxu1 %v4256_v25 }
 0x3f1   :  { %3684 = vmatpush3.bf16.msra.mxu1 %v4257_v49 }
 0x3f2   :  { %3784 = vmatprep.subr.bf16.mxu1 %v4388_v29 }
 0x3f5   :  { %v4173_v47 = vpop.permute.xlu1 %4172 }
 0x3f6   :  { %v4175_v3 = vunpack.i.h.bf16 %v4173_v47  ;;  %v4174_v9 = vunpack.i.l.bf16 %v4173_v47  ;;  %v2250_v47 = vld [vmem:[%s6112_s7 + $0x88] sm:$0xff] }
 0x3f8   :  { %v1806_v36 = vsel %vm409_vm0, %v1783_v35, %v4175_v3  ;;  %v1807_v13 = vsel %vm409_vm0, %v1785_v4, %v4174_v9  ;;  %v2254_v35 = vld [vmem:[%s6112_s7 + $0xa8] sm:$0xff] }
 0x3f9   :  { %v1810_v32 = vpack.c.bf16 %v1806_v36, %v1806_v36  ;;  %v1811_v31 = vpack.c.bf16 %v1807_v13, %v1807_v13  ;;  %v3473_v36 = vcombine.high %v2250_v47, %v2254_v35 }
 0x3fb   :  { %2183 = vmatprep.mubr.bf16.mxu1 %v1811_v31  ;;  %v2246_v31 = vld [vmem:[%s6112_s7 + $0x68] sm:$0xff] }
 0x3fc   :  { %2184 = vmatmul.mubr.bf16.vlgmr.msra.gmra.mxu1 %v1810_v32  ;;  %v2242_v32 = vld [vmem:[%s6112_s7 + $0x48] sm:$0xff] }
 0x3fd   :  { %3785 = vmatpush3.bf16.msra.mxu1 %v4258_v21  ;;  %3792 = vmatprep.mubr.msk.bf16.mxu1 %vm4389_vm3, %v4388_v29  ;;  %v3472_v21 = vcombine.low %v2250_v47, %v2254_v35  ;;  %v3464_v51 = vcombine.low %v2242_v32, %v2246_v31  ;;  %v4291_v47 = vld [vmem:[%s6114_s9 + $0x108] sm:$0xff]   ;;  %v4289_v35 = vld [vmem:[%s6114_s9] sm:$0xff]  }
 0x3fe   :  { %3786 = vmatprep.subr.bf16.mxu1 %v4388_v29 }
 0x401   :  { %3787 = vmatpush3.bf16.msra.mxu1 %v4259_v20  ;;  %v3465_v20 = vcombine.high %v2242_v32, %v2246_v31  ;;  %v5987_v31 = vld [vmem:[%s6113_s8] sm:$0xff] }
 0x402   :  { %3788 = vmatprep.subr.bf16.mxu1 %v4388_v29 }
 0x405   :  { %3789 = vmatpush3.bf16.msra.mxu1 %v4260_v57  ;;  %v2234_v57 = vld [vmem:[%s6112_s7 + $0x8] sm:$0xff] }
 0x406   :  { %3790 = vmatprep.subr.bf16.mxu1 %v4388_v29 }
 0x409   :  { %3791 = vmatpush3.bf16.msra.mxu1 %v4261_v37  ;;  %v2238_v37 = vld [vmem:[%s6112_s7 + $0x28] sm:$0xff] }
 0x40a   :  { %2478 = vmatprep.subr.bf16.mxu1 %v3479_v50  ;;  %v3483_v50 = vcombine.high %v2259_v42, %v2263_v12 }
 0x40c   :  { %3793 = vmatmul.mubr.msk.bf16.vlgmr.msra.gmra.mxu1 %vm409_vm0, %v1812_v27  ;;  %v3457_v27 = vcombine.high %v2234_v57, %v2238_v37 }
 0x40d   :  { %2502 = vmatprep.mubr.bf16.mxu1 %v4384_v7  ;;  %2479 = vmatpush1.bf16.msra.mxu1 %v3478_v14  ;;  %v3456_v14 = vcombine.low %v2234_v57, %v2238_v37 }
 0x40e   :  { %2480 = vmatprep.subr.bf16.mxu1 %v3471_v54  ;;  %v2243_v54 = vld [vmem:[%s6112_s7 + $0x50] sm:$0xff] }
 0x411   :  { %2481 = vmatpush1.bf16.msra.mxu1 %v3470_v1  ;;  %v3475_v1 = vcombine.high %v2251_v22, %v2255_v16 }
 0x412   :  { %2482 = vmatprep.subr.bf16.mxu1 %v3463_v19  ;;  %v3474_v19 = vcombine.low %v2251_v22, %v2255_v16 }
 0x415   :  { %2483 = vmatpush1.bf16.msra.mxu1 %v3462_v17  ;;  %v3467_v17 = vcombine.high %v2243_v54, %v2247_v0 }
 0x416   :  { %2484 = vmatprep.subr.bf16.mxu1 %v3455_v39  ;;  %v3466_v39 = vcombine.low %v2243_v54, %v2247_v0  ;;  %v4294_v54 = vld [vmem:[%s6114_s9 + $0xf0] sm:$0xff]  }
 0x417   :  { %v4295_v0 = vld [vmem:[%s6114_s9 + $0xb0] sm:$0xff]  }
 0x419   :  { %2485 = vmatpush1.bf16.msra.mxu1 %v3454_v40  ;;  %v3459_v40 = vcombine.high %v2235_v11, %v2239_v41 }
 0x41a   :  { %2519 = vmatprep.subr.bf16.mxu1 %v3481_v55  ;;  %v3458_v55 = vcombine.low %v2235_v11, %v2239_v41  ;;  %v4297_v41 = vld [vmem:[%s6114_s9 + $0xa8] sm:$0xff]  }
 0x494   :  { %v3663_v60 = vpop.f32.mrf.mxu1 }
 0x496   :  { %v3664_v2 = vpop.f32.mrf.mxu1 }
 0x497   :  { %v3665_v44 = vadd.f32 %v3664_v2, %v3663_v60  ;;  %v3460_v60 = vcombine.low %v2236_v43, %v2240_v45  ;;  %v4275_v2 = vld [vmem:[%s6114_s9 + $0x38] sm:$0xff]   ;;  %v4303_v43 = vld [vmem:[%s6114_s9 + $0x90] sm:$0xff]  }
 0x498   :  { %v3666_v33 = vpop.f32.mrf.mxu1 }
 0x499   :  { %v2146_v28 = vadd.f32 %v3665_v44, %v3416_v34  ;;  %v4276_v33 = vld [vmem:[%s6114_s9 + $0x70] sm:$0xff]   ;;  %v4282_v44 = vld [vmem:[%s6114_s9 + $0x58] sm:$0xff]  }
 0x49a   :  { %v3667_v38 = vpop.f32.mrf.mxu1  ;;  %v4283_v34 = vld [vmem:[%s6114_s9 + $0x18] sm:$0xff]  }
 0x49b   :  { %v4277_v38 = vld [vmem:[%s6114_s9 + $0x30] sm:$0xff]  }
 0x4bc   :  { %v3685_v26 = vpop.f32.mrf.mxu1 }
 0x4be   :  { %v3686_v58 = vpop.f32.mrf.mxu1 }
 0x4bf   :  { %v3687_v63 = vadd.f32 %v3686_v58, %v3685_v26  ;;  %v4278_v26 = vld [vmem:[%s6114_s9 + $0x68] sm:$0xff]  }
 0x4c0   :  { %v3688_v61 = vpop.f32.mrf.mxu1  ;;  %v4279_v58 = vld [vmem:[%s6114_s9 + $0x28] sm:$0xff]  }
 0x4c1   :  { %v2186_v10 = vadd.f32 %v3687_v63, %v2146_v28  ;;  %v4280_v61 = vld [vmem:[%s6114_s9 + $0x60] sm:$0xff]   ;;  %v4284_v63 = vld [vmem:[%s6114_s9 + $0x50] sm:$0xff]  }
 0x4c2   :  { %v3689_v23 = vpop.f32.mrf.mxu1  ;;  %v4285_v28 = vld [vmem:[%s6114_s9 + $0x10] sm:$0xff]  }
 0x4c3   :  { %v4281_v23 = vld [vmem:[%s6114_s9 + $0x20] sm:$0xff]  }
 0x4cc   :  { %v2225_v25 = vpop.f32.mrf.mxu1 }
 0x4cd   :  { %v2226_v49 = vadd.f32 %v2225_v25, %v2186_v10  ;;  %v4286_v10 = vld [vmem:[%s6114_s9 + $0x48] sm:$0xff]  }
 0x4ce   :  { %v3794_v29 = vpop.f32.mrf.mxu1  ;;  %v4287_v25 = vld [vmem:[%s6114_s9 + $0x8] sm:$0xff]  }
 0x4cf   :  { %v2231_v4 = vmax.f32 %v2226_v49, 0.0  ;;  %v4288_v49 = vld [vmem:[%s6114_s9 + $0x40] sm:$0xff]   ;;  %v4290_v29 = vld [vmem:[%s6114_s9 + $0x148] sm:$0xff]  }
 0x4d0   :  { %v2228_v3 = vpop.f32.mrf.mxu1  ;;  %3752 = vmatprep.subr.bf16.mxu0 %v4290_v29 }
 0x4d1   :  { %v5845_v9 = vpack.c.bf16 %v2231_v4, %v2231_v4  ;;  %3753 = vmatpush3.bf16.msra.mxu0 %v4291_v47  ;;  %v4292_v4 = vld [vmem:[%s6114_s9 + $0xf8] sm:$0xff]   ;;  %v4307_v3 = vld [vmem:[%s6114_s9 + $0x140] sm:$0xff]  }
 0x4d2   :  { %v3795_v13 = vpop.f32.mrf.mxu1  ;;  %3754 = vmatprep.subr.bf16.mxu0 %v4307_v3  ;;  %v4311_v47 = vld [vmem:[%s6114_s9 + $0x1b8] sm:$0xff]   ;;  %v4312_v3 = vld [vmem:[%s6114_s9 + $0x1f0] sm:$0xff]  }
 0x4d3   :  { %3486 = vmatmul.mubr.msk.bf16.vlgmr.msra.gmra.mxu1 %vm409_vm0, %v5845_v9 }
 0x4d4   :  { %2520 = vmatpush1.bf16.msra.mxu1 %v3480_v53  ;;  %2543 = vmatprep.mubr.bf16.mxu1 %v4384_v7  ;;  %v3485_v53 = vcombine.high %v2260_v5, %v2264_v30 }
 0x4d5   :  { %2521 = vmatprep.subr.bf16.mxu1 %v3473_v36  ;;  %v2267_v36 = vlaneseq }
 0x4d7   :  { %v5981_v13 = vshrl.u32 %v2267_v36, 7 }
 0x4d8   :  { %2522 = vmatpush1.bf16.msra.mxu1 %v3472_v21 }
 0x4d9   :  { %2523 = vmatprep.subr.bf16.mxu1 %v3465_v20  ;;  %v2269_v32 = vsub.s32 0, %v5981_v13  ;;  %v2273_v21 = vsub.s32 1, %v5981_v13  ;;  %v2277_v59 = vsub.s32 2, %v5981_v13  ;;  %v2289_v45 = vsub.s32 5, %v5981_v13 }
 0x4da   :  { %v2297_v36 = vsub.s32 7, %v5981_v13 }
 0x4db   :  { %v2270_v20 = vrot.slane %v5987_v31, %v2269_v32  ;;  %v2274_v57 = vrot.slane %v5987_v31, %v2273_v21  ;;  %v4314_v32 = vld [vmem:[%s6114_s9 + $0x1e8] sm:$0xff]  }
 0x4dc   :  { %2524 = vmatpush1.bf16.msra.mxu1 %v3464_v51  ;;  %v2298_v21 = vrot.slane %v5987_v31, %v2297_v36 }
 0x4dd   :  { %2525 = vmatprep.subr.bf16.mxu1 %v3457_v27 }
 0x4e0   :  { %2526 = vmatpush1.bf16.msra.mxu1 %v3456_v14 }
 0x4e1   :  { %2560 = vmatprep.subr.bf16.mxu1 %v3483_v50 }
 0x4e3   :  { %3487 = vmatmul.mubr.msk.bf16.vlgmr.msra.gmra.mxu1 %vm409_vm0, %v5845_v9 }
 0x4e4   :  { %2561 = vmatpush1.bf16.msra.mxu1 %v3482_v15  ;;  %2584 = vmatprep.mubr.bf16.mxu1 %v4384_v7  ;;  %v4293_v15 = vld [vmem:[%s6114_s9 + $0xb8] sm:$0xff]  }
 0x4e5   :  { %2562 = vmatprep.subr.bf16.mxu1 %v3475_v1 }
 0x4e8   :  { %2563 = vmatpush1.bf16.msra.mxu1 %v3474_v19  ;;  %v2281_v19 = vsub.s32 3, %v5981_v13 }
 0x4e9   :  { %2564 = vmatprep.subr.bf16.mxu1 %v3467_v17  ;;  %v4296_v17 = vld [vmem:[%s6114_s9 + $0xe8] sm:$0xff]  }
 0x4ea   :  { %v2282_v11 = vrot.slane %v5987_v31, %v2281_v19 }
 0x4ec   :  { %2565 = vmatpush1.bf16.msra.mxu1 %v3466_v39 }
 0x4ed   :  { %2566 = vmatprep.subr.bf16.mxu1 %v3459_v40  ;;  %v4298_v40 = vld [vmem:[%s6114_s9 + $0xe0] sm:$0xff]  }
 0x4f0   :  { %2567 = vmatpush1.bf16.msra.mxu1 %v3458_v55  ;;  %v4299_v55 = vld [vmem:[%s6114_s9 + $0xa0] sm:$0xff]  }
 0x4f1   :  { %2601 = vmatprep.subr.bf16.mxu1 %v3485_v53 }
 0x4f3   :  { %3488 = vmatmul.mubr.msk.bf16.vlgmr.msra.gmra.mxu1 %vm409_vm0, %v5845_v9 }
 0x4f4   :  { %2602 = vmatpush1.bf16.msra.mxu1 %v3484_v62  ;;  %2625 = vmatprep.mubr.bf16.mxu1 %v4384_v7  ;;  %v4274_v7 = vld [vmem:[%s6114_s9 + $0x78] sm:$0xff]  }
 0x4f5   :  { %2603 = vmatprep.subr.bf16.mxu1 %v3477_v18 }
 0x4f8   :  { %2604 = vmatpush1.bf16.msra.mxu1 %v3476_v8  ;;  %v4302_v8 = vld [vmem:[%s6114_s9 + $0xd0] sm:$0xff]  }
 0x4f9   :  { %2605 = vmatprep.subr.bf16.mxu1 %v3469_v24  ;;  %v2285_v24 = vsub.s32 4, %v5981_v13 }
 0x4fc   :  { %2606 = vmatpush1.bf16.msra.mxu1 %v3468_v48  ;;  %v2278_v48 = vrot.slane %v5987_v31, %v2277_v59 }
 0x4fd   :  { %2607 = vmatprep.subr.bf16.mxu1 %v3461_v6  ;;  %v4304_v6 = vld [vmem:[%s6114_s9 + $0xc8] sm:$0xff]  }
 0x500   :  { %2608 = vmatpush1.bf16.msra.mxu1 %v3460_v60  ;;  %v2286_v60 = vrot.slane %v5987_v31, %v2285_v24 }
 0x501   :  { %3696 = vmatprep.subr.bf16.mxu1 %v4274_v7  ;;  %v2290_v7 = vrot.slane %v5987_v31, %v2289_v45 }
 0x503   :  { %3489 = vmatmul.mubr.msk.bf16.vlgmr.msra.gmra.mxu1 %vm409_vm0, %v5845_v9  ;;  %v4309_v9 = vld [vmem:[%s6114_s9 + $0x100] sm:$0xff]  }
 0x504   :  { %3697 = vmatpush3.bf16.msra.mxu1 %v4275_v2  ;;  %3755 = vmatpush3.bf16.msra.mxu0 %v4309_v9  ;;  %v4305_v2 = vld [vmem:[%s6114_s9 + $0x88] sm:$0xff]   ;;  %v4313_v9 = vld [vmem:[%s6114_s9 + $0x1b0] sm:$0xff]  }
 0x505   :  { %3698 = vmatprep.subr.bf16.mxu1 %v4276_v33 }
 0x508   :  { %3699 = vmatpush3.bf16.msra.mxu1 %v4277_v38 }
 0x509   :  { %3700 = vmatprep.subr.bf16.mxu1 %v4278_v26  ;;  %v4306_v26 = vld [vmem:[%s6114_s9 + $0xc0] sm:$0xff]  }
 0x50c   :  { %3701 = vmatpush3.bf16.msra.mxu1 %v4279_v58 }
 0x50d   :  { %3702 = vmatprep.subr.bf16.mxu1 %v4280_v61 }
 0x510   :  { %3703 = vmatpush3.bf16.msra.mxu1 %v4281_v23 }
 0x511   :  { %3704 = vmatprep.subr.bf16.mxu1 %v4282_v44  ;;  %v4308_v44 = vld [vmem:[%s6114_s9 + $0x80] sm:$0xff]  }
 0x514   :  { %3705 = vmatpush3.bf16.msra.mxu1 %v4283_v34 }
 0x515   :  { %3706 = vmatprep.subr.bf16.mxu1 %v4284_v63 }
 0x518   :  { %3707 = vmatpush3.bf16.msra.mxu1 %v4285_v28 }
 0x519   :  { %3708 = vmatprep.subr.bf16.mxu1 %v4286_v10  ;;  %v4310_v10 = vld [vmem:[%s6114_s9 + $0x1f8] sm:$0xff]  }
 0x51c   :  { %3709 = vmatpush3.bf16.msra.mxu1 %v4287_v25 }
 0x51d   :  { %3710 = vmatprep.subr.bf16.mxu1 %v4288_v49 }
 0x520   :  { %3711 = vmatpush3.bf16.msra.mxu1 %v4289_v35 }
 0x521   :  { %3718 = vmatprep.subr.bf16.mxu1 %v4292_v4 }
 0x593   :  { %v2504_v37 = vpop.f32.mrf.mxu1 }
 0x594   :  { %v2505_v51 = vadd.f32 %v2504_v37, %v2270_v20  ;;  %v4315_v20 = vld [vmem:[%s6114_s9 + $0x1a8] sm:$0xff]   ;;  %v4316_v37 = vld [vmem:[%s6114_s9 + $0x1e0] sm:$0xff]  }
 0x595   :  { %v2506_v27 = vpop.f32.mrf.mxu1 }
 0x596   :  { %v2507_v42 = vadd.f32 %v2506_v27, %v2274_v57  ;;  %v2634_v12 = vmax.f32 %v2505_v51, 0.0 }
 0x597   :  { %v2508_v14 = vpop.f32.mrf.mxu1 }
 0x598   :  { %v2635_v50 = vmax.f32 %v2507_v42, 0.0  ;;  %v2642_v1 = vpack.c.bf16 %v2634_v12, %v2634_v12  ;;  %v4317_v42 = vld [vmem:[%s6114_s9 + $0x1a0] sm:$0xff]   ;;  %v4318_v14 = vld [vmem:[%s6114_s9 + $0x1d8] sm:$0xff]  }
 0x599   :  { %v2509_v22 = vpop.f32.mrf.mxu1 }
 0x59a   :  { %v2643_v16 = vpack.c.bf16 %v2635_v50, %v2635_v50 }
 0x59c   :  { %3201 = vmatprep.mubr.bf16.mxu1 %v2643_v16 }
 0x59d   :  { %3202 = vmatmul.mubr.bf16.vlgmr.msra.gmra.mxu1 %v2642_v1  ;;  %v2293_v1 = vsub.s32 6, %v5981_v13  ;;  %v4323_v13 = vld [vmem:[%s6114_s9 + $0x188] sm:$0xff]  }
 0x59e   :  { %3719 = vmatpush3.bf16.msra.mxu1 %v4293_v15  ;;  %v4319_v15 = vld [vmem:[%s6114_s9 + $0x198] sm:$0xff]  }
 0x59f   :  { %3720 = vmatprep.subr.bf16.mxu1 %v4294_v54  ;;  %v4320_v54 = vld [vmem:[%s6114_s9 + $0x1d0] sm:$0xff]   ;;  %v2294_v19 = vrot.slane %v5987_v31, %v2293_v1  ;;  %v4325_v31 = vld [vmem:[%s6114_s9 + $0x180] sm:$0xff]  }
 0x5a2   :  { %3721 = vmatpush3.bf16.msra.mxu1 %v4295_v0  ;;  %v4321_v0 = vld [vmem:[%s6114_s9 + $0x190] sm:$0xff]  }
 0x5a3   :  { %v2545_v39 = vpop.f32.mrf.mxu1  ;;  %3722 = vmatprep.subr.bf16.mxu1 %v4296_v17  ;;  %v4322_v17 = vld [vmem:[%s6114_s9 + $0x1c8] sm:$0xff]  }
 0x5a4   :  { %v2546_v33 = vadd.f32 %v2545_v39, %v2278_v48  ;;  %v3490_v48 = vld [vmem:[%s6115_s10] ss:$0 sm:$0xff] }
 0x5a5   :  { %v2547_v5 = vpop.f32.mrf.mxu1 }
 0x5a6   :  { %v2548_v30 = vadd.f32 %v2547_v5, %v2282_v11  ;;  %3723 = vmatpush3.bf16.msra.mxu1 %v4297_v41  ;;  %v2636_v34 = vmax.f32 %v2546_v33, 0.0  ;;  %v4324_v41 = vld [vmem:[%s6114_s9 + $0x1c0] sm:$0xff]   ;;  %v4390_v5 = vmov 4  }
 0x5a7   :  { %v2549_v53 = vpop.f32.mrf.mxu1  ;;  %3724 = vmatprep.subr.bf16.mxu1 %v4298_v40  ;;  %4176 = vset.pattern.permute.xlu1 %v4390_v5 }
 0x5a8   :  { %v2637_v46 = vmax.f32 %v2548_v30, 0.0  ;;  %v2644_v35 = vpack.c.bf16 %v2636_v34, %v2636_v34  ;;  %4177 = vset.pattern.permute.xlu0 %v4390_v5 }
 0x5a9   :  { %v2550_v62 = vpop.f32.mrf.mxu1 }
 0x5aa   :  { %v2645_v18 = vpack.c.bf16 %v2637_v46, %v2637_v46  ;;  %3725 = vmatpush3.bf16.msra.mxu1 %v4299_v55 }
 0x5ab   :  { %3726 = vmatprep.subr.bf16.mxu1 %v4300_v56 }
 0x5ac   :  { %3241 = vmatprep.mubr.bf16.mxu1 %v2645_v18 }
 0x5ae   :  { %3727 = vmatpush3.bf16.msra.mxu1 %v4301_v52 }
 0x5af   :  { %3728 = vmatprep.subr.bf16.mxu1 %v4302_v8 }
 0x5b2   :  { %3729 = vmatpush3.bf16.msra.mxu1 %v4303_v43 }
 0x5b3   :  { %v2586_v38 = vpop.f32.mrf.mxu1  ;;  %3730 = vmatprep.subr.bf16.mxu1 %v4304_v6 }
 0x5b4   :  { %v2587_v58 = vadd.f32 %v2586_v38, %v2286_v60 }
 0x5b5   :  { %v2588_v61 = vpop.f32.mrf.mxu1 }
 0x5b6   :  { %v2589_v23 = vadd.f32 %v2588_v61, %v2290_v7  ;;  %3731 = vmatpush3.bf16.msra.mxu1 %v4305_v2  ;;  %v2638_v63 = vmax.f32 %v2587_v58, 0.0 }
 0x5b7   :  { %v2590_v28 = vpop.f32.mrf.mxu1  ;;  %3732 = vmatprep.subr.bf16.mxu1 %v4306_v26 }
 0x5b8   :  { %v2639_v25 = vmax.f32 %v2589_v23, 0.0  ;;  %v2646_v4 = vpack.c.bf16 %v2638_v63, %v2638_v63 }
 0x5b9   :  { %v2591_v49 = vpop.f32.mrf.mxu1 }
 0x5ba   :  { %v2647_v29 = vpack.c.bf16 %v2639_v25, %v2639_v25  ;;  %3733 = vmatpush3.bf16.msra.mxu1 %v4308_v44 }
 0x5bb   :  { %3762 = vmatprep.subr.bf16.mxu1 %v4310_v10 }
 0x5bc   :  { %3281 = vmatprep.mubr.bf16.mxu0 %v2647_v29 }
 0x5bd   :  { %3242 = vmatmul.mubr.bf16.vlgmr.msra.gmra.mxu1 %v2644_v35  ;;  %3282 = vmatmul.mubr.bf16.vlgmr.msra.gmra.mxu0 %v2646_v4 }
 0x5be   :  { %3763 = vmatpush3.bf16.msra.mxu1 %v4311_v47 }
 0x5bf   :  { %3764 = vmatprep.subr.bf16.mxu1 %v4312_v3 }
 0x5c2   :  { %3765 = vmatpush3.bf16.msra.mxu1 %v4313_v9 }
 0x5c3   :  { %v2627_v57 = vpop.f32.mrf.mxu1  ;;  %3766 = vmatprep.subr.bf16.mxu1 %v4314_v32 }
 0x5c4   :  { %v2628_v11 = vadd.f32 %v2627_v57, %v2294_v19 }
 0x5c5   :  { %v2629_v51 = vpop.f32.mrf.mxu1 }
 0x5c6   :  { %v2630_v27 = vadd.f32 %v2629_v51, %v2298_v21  ;;  %3767 = vmatpush3.bf16.msra.mxu1 %v4315_v20  ;;  %v2640_v39 = vmax.f32 %v2628_v11, 0.0 }
 0x5c7   :  { %v2631_v12 = vpop.f32.mrf.mxu1  ;;  %3768 = vmatprep.subr.bf16.mxu1 %v4316_v37 }
 0x5c8   :  { %v2641_v50 = vmax.f32 %v2630_v27, 0.0  ;;  %v2648_v40 = vpack.c.bf16 %v2640_v39, %v2640_v39 }
 0x5c9   :  { %v2632_v22 = vpop.f32.mrf.mxu1 }
 0x5ca   :  { %v2649_v16 = vpack.c.bf16 %v2641_v50, %v2641_v50  ;;  %3769 = vmatpush3.bf16.msra.mxu1 %v4317_v42 }
 0x5cb   :  { %3770 = vmatprep.subr.bf16.mxu1 %v4318_v14 }
 0x5cc   :  { %3321 = vmatprep.mubr.bf16.mxu1 %v2649_v16 }
 0x5ce   :  { %3771 = vmatpush3.bf16.msra.mxu1 %v4319_v15 }
 0x5cf   :  { %3772 = vmatprep.subr.bf16.mxu1 %v4320_v54 }
 0x5d2   :  { %3773 = vmatpush3.bf16.msra.mxu1 %v4321_v0 }
 0x5d3   :  { %3774 = vmatprep.subr.bf16.mxu1 %v4322_v17 }
 0x5d6   :  { %3775 = vmatpush3.bf16.msra.mxu1 %v4323_v13 }
 0x5d7   :  { %3776 = vmatprep.subr.bf16.mxu1 %v4324_v41 }
 0x5da   :  { %3777 = vmatpush3.bf16.msra.mxu1 %v4325_v31 }
 0x5dd   :  { %3322 = vmatmul.mubr.bf16.vlgmr.msra.gmra.mxu1 %v2648_v40 }
 0x65d   :  { %v3712_v30 = vpop.f32.mrf.mxu1 }
 0x65f   :  { %v3713_v55 = vpop.f32.mrf.mxu1 }
 0x660   :  { %v3714_v45 = vadd.f32 %v3713_v55, %v3712_v30 }
 0x661   :  { %v3715_v53 = vpop.f32.mrf.mxu1 }
 0x662   :  { %v3204_v60 = vadd.f32 %v3714_v45, %v3490_v48 }
 0x663   :  { %v3716_v56 = vpop.f32.mrf.mxu1 }
 0x67d   :  { %v3734_v46 = vpop.f32.mrf.mxu1  ;;  %v3756_v62 = vpop.f32.mrf.mxu0 }
 0x67f   :  { %v3735_v18 = vpop.f32.mrf.mxu1  ;;  %v3757_v52 = vpop.f32.mrf.mxu0 }
 0x680   :  { %v3736_v6 = vadd.f32 %v3735_v18, %v3734_v46  ;;  %v3758_v33 = vadd.f32 %v3757_v52, %v3756_v62 }
 0x681   :  { %v3737_v59 = vpop.f32.mrf.mxu1  ;;  %v3759_v8 = vpop.f32.mrf.mxu0 }
 0x682   :  { %v3244_v7 = vadd.f32 %v3736_v6, %v3204_v60 }
 0x683   :  { %v3738_v24 = vpop.f32.mrf.mxu1  ;;  %v3760_v43 = vpop.f32.mrf.mxu0 }
 0x684   :  { %v3284_v26 = vadd.f32 %v3758_v33, %v3244_v7 }
 0x69d   :  { %v3778_v2 = vpop.f32.mrf.mxu1 }
 0x69f   :  { %v3779_v38 = vpop.f32.mrf.mxu1 }
 0x6a0   :  { %v3780_v58 = vadd.f32 %v3779_v38, %v3778_v2 }
 0x6a1   :  { %v3781_v61 = vpop.f32.mrf.mxu1 }
 0x6a2   :  { %v3324_v23 = vadd.f32 %v3780_v58, %v3284_v26 }
 0x6a3   :  { %v3782_v44 = vpop.f32.mrf.mxu1 }
 0x6a4   :  { %3331 = vperm.xlu1 %4176, %v3324_v23   ;;  %v3336_v34 = vsel %vm3335_vm4, %v3324_v23, 0.0 }
 0x6a5   :  { %3337 = vadd.xlane.f32.xlu0 %v3336_v34 }
 0x71f   :  { %v3332_v35 = vpop.permute.xlu1 %3331 }
 0x720   :  { %v3334_v4 = vadd.f32 %v3332_v35, %v3324_v23 }
 0x72e   :  { %v3338_v63 = vpop.xlane.xlu0 %3337 }
 0x72f   :  { %v3339_v28 = vrot.slane %v3338_v63, 4 }
 0x731   :  { %v3340_v10 = vadd.f32 %v3339_v28, %v3338_v63 }
 0x733   :  { %v3341_v25 = vrot.slane %v3340_v10, 2 }
 0x735   :  { %v3342_v49 = vadd.f32 %v3341_v25, %v3340_v10 }
 0x737   :  { %v3343_v29 = vrot.slane %v3342_v49, 1 }
 0x739   :  { %v3344_v47 = vadd.f32 %v3343_v29, %v3342_v49 }
 0x73b   :  { %3796 = vpush %v3344_v47 }
 0x76c   :  { %s3797_s10 = spop %3796 }
 0x76d   :  { %s3348_s25 = smul.f32 0.125, %s3797_s10 }
 0x76f   :  { %v3349_v3 = vstv %s3348_s25 }
 0x770   :  { %v3350_v9 = vsub.f32 %v3334_v4, %v3349_v3 }
 0x772   :  { %3351 = vst.msk [vmem:[#allocation2] sm:$0x3] %vm3335_vm4, %v3350_v9 }
 0x773   :  { %4373 = shalt.err (!%p4370_p4)
}
 0x774   :  { %3361 = dma.vmem_to_hbm [thread:$0]  %s3359_s27, 32, %s6116_s11, [#allocation3]  }
 0x775   :  { %4382 = dma.done.wait [#allocation3], 32  }
 0x776   :  { %4383 = vsyncadd [#allocation3], 4294967264 }
 0x777   :  { %3365 = vsyncpa [#allocation3], 1 }

</bundles_post_ra>
